<compile_context>
chip_gen: v6e
topology: v6e:2x2x1
jax: 0.10.0
libtpu: 0.0.40
codegen_flags: <defaults>
</compile_context>

<pallas_src>
import functools

import jax
import jax.numpy as jnp
from jax.experimental import pallas as pl
from jax.experimental.pallas import tpu as pltpu


def _round_up(x, m):
    return (x + m - 1) // m * m


def _vmem_budgets():
    """(streamed-tile budget bytes, vmem_limit_bytes) per TPU generation."""
    try:
        vmem_cap = pltpu.get_tpu_info().vmem_capacity_bytes
    except Exception:
        vmem_cap = 64 * 1024 * 1024          # conservative (v7x-safe) fallback
    if vmem_cap >= 96 * 1024 * 1024:          # v5e / v6e: 128 MiB physical
        return 6 * 1024 * 1024, 96 * 1024 * 1024
    return 2 * 1024 * 1024, 48 * 1024 * 1024  # v7x: 64 MiB physical


def _choose_tb(B):
    """Batch tile: multiple of 8; >= 2 batch blocks whenever B allows so the
    'parallel' grid axis occupies both v7x TensorCores."""
    bp8 = _round_up(B, 8)
    if bp8 <= 8:
        return 8                       # B too small to split across cores
    tb = min(32, bp8 // 2)
    return max(8, (tb // 8) * 8)


def _choose_tl(L, D, tb, stream_bytes, tile_budget_bytes):
    """Sequence tile: multiple of 128, one streamed (tb, TL, D) tile within the
    per-generation budget (2 streams x 2 double-buffers stay inside VMEM)."""
    tl = tile_budget_bytes // max(1, tb * D * stream_bytes)
    tl = max(128, (tl // 128) * 128)
    tl = min(tl, _round_up(L, 128))
    return tl


def _attention_kernel(is_coverage, tl, *args):
    if is_coverage:
        (s_t_ref, enc_out_ref, enc_fea_ref, mask_ref, cov_ref,
         w_dec_ref, b_dec_ref, v_ref, w_cov_ref,
         c_t_ref, attn_ref, cov_out_ref,
         dec_s, sc_s, m_s, den_s, acc_s) = args
    else:
        (s_t_ref, enc_out_ref, enc_fea_ref, mask_ref,
         w_dec_ref, b_dec_ref, v_ref,
         c_t_ref, attn_ref,
         dec_s, sc_s, m_s, den_s, acc_s) = args
        cov_ref = w_cov_ref = cov_out_ref = None

    l = pl.program_id(1)
    nl = pl.num_programs(1)
    start = pl.multiple_of(l * tl, 128)

    # ----- per batch-block init (first sequence tile) -----
    @pl.when(l == 0)
    def _init():
        # dec_fea = s_t @ W_dec^T + b, once per batch block (MXU).
        dec_s[...] = (
            jnp.dot(s_t_ref[...], w_dec_ref[...],
                    preferred_element_type=jnp.float32)
            + b_dec_ref[...])
        m_s[...] = jnp.full_like(m_s, -1e30)
        den_s[...] = jnp.zeros_like(den_s)
        acc_s[...] = jnp.zeros_like(acc_s)

    # ----- masked scores for this tile (VPU / EUP, f32 accumulation) -----
    att = enc_fea_ref[...] + dec_s[...][:, None, :]            # bf16+f32 -> f32
    if is_coverage:
        cov_t = cov_ref[:, pl.ds(start, tl)]                    # (tb, tl)
        att = att + cov_t[:, :, None] * w_cov_ref[...][None, :, :]
    s = jnp.sum(jnp.tanh(att) * v_ref[...][None, :, :], axis=-1)   # (tb, tl)
    mask_t = mask_ref[:, pl.ds(start, tl)]
    # Bake padding mask into the scores: single fused masked softmax,
    # no separate softmax -> mask -> renormalize passes.
    s = jnp.where(mask_t > 0.0, s, -1e30)
    sc_s[:, pl.ds(start, tl)] = s          # keep scores to emit the attn row

    # ----- online (flash-style) softmax + context accumulation -----
    m_prev = m_s[...]                                           # (tb, 1)
    m_new = jnp.maximum(m_prev, jnp.max(s, axis=-1, keepdims=True))
    alpha = jnp.exp(m_prev - m_new)
    p = jnp.exp(s - m_new)                                      # (tb, tl) f32
    den_s[...] = alpha * den_s[...] + jnp.sum(p, axis=-1, keepdims=True)
    # VPU weighted sum (NOT an M=1 MXU matvec): f32 x bf16 -> f32.
    ctx = jnp.sum(p[:, :, None] * enc_out_ref[...], axis=1)     # (tb, D)
    acc_s[...] = alpha * acc_s[...] + ctx
    m_s[...] = m_new

    # ----- finalize on the last sequence tile -----
    @pl.when(l == nl - 1)
    def _finalize():
        inv_den = pl.reciprocal(den_s[...], approx=True)        # EUP slot, ~free
        c_t_ref[...] = (acc_s[...] * inv_den).astype(c_t_ref.dtype)
        attn_full = jnp.exp(sc_s[...] - m_s[...]) * inv_den     # (tb, Lp)
        attn_ref[...] = attn_full.astype(attn_ref.dtype)
        if is_coverage:
            cov_out_ref[...] = (cov_ref[...] + attn_full).astype(
                cov_out_ref.dtype)


def attention_forward(params, s_t, enc_out, enc_fea, enc_pad_mask, coverage,
                      *, is_coverage=True, stream_dtype=jnp.bfloat16, tb=None):
    B, L, D = enc_out.shape
    enc_fea3 = enc_fea.reshape(B, L, D)

    if tb is None:
        tb = _choose_tb(B)
    tile_budget, vmem_limit = _vmem_budgets()
    stream_bytes = jnp.dtype(stream_dtype).itemsize
    tl = _choose_tl(L, D, tb, stream_bytes, tile_budget)
    Bp = _round_up(B, tb)
    Lp = _round_up(L, tl)
    num_l = Lp // tl
    pad_b, pad_l = Bp - B, Lp - L

    # Pad to (8k, 128m): streamed tiles obey (8,128) and (B,L) outputs are
    # lane-dense.  (Production callers would supply pre-padded / pre-cast
    # bf16 inputs so these pads and casts fuse away.)
    s_t_p = jnp.pad(s_t.astype(jnp.float32), ((0, pad_b), (0, 0)))
    enc_out_p = jnp.pad(enc_out, ((0, pad_b), (0, pad_l), (0, 0))).astype(stream_dtype)
    enc_fea_p = jnp.pad(enc_fea3, ((0, pad_b), (0, pad_l), (0, 0))).astype(stream_dtype)
    mask_p = jnp.pad(enc_pad_mask.astype(jnp.float32), ((0, pad_b), (0, pad_l)))

    w_dec_t = params["dec_fc_w"].T.astype(jnp.float32)       # (D, D), x @ W^T form
    b_dec = params["dec_fc_b"].reshape(1, D).astype(jnp.float32)
    v = params["att_fc_w"].reshape(1, D).astype(jnp.float32)

    grid = (Bp // tb, num_l)

    row_spec = pl.BlockSpec((tb, Lp), lambda b, l: (b, 0))     # resident (B,L) row
    stream_spec = pl.BlockSpec((tb, tl, D), lambda b, l: (b, l, 0))

    def param_spec(shape):
        return pl.BlockSpec(shape, lambda b, l: (0, 0))

    in_specs = [
        pl.BlockSpec((tb, D), lambda b, l: (b, 0)),            # s_t
        stream_spec,                                           # enc_out (bf16)
        stream_spec,                                           # enc_fea (bf16)
        row_spec,                                              # mask
    ]
    inputs = [s_t_p, enc_out_p, enc_fea_p, mask_p]

    if is_coverage:
        cov_p = jnp.pad(coverage.astype(jnp.float32), ((0, pad_b), (0, pad_l)))
        in_specs.append(row_spec)                              # coverage
        inputs.append(cov_p)

    in_specs += [param_spec((D, D)), param_spec((1, D)), param_spec((1, D))]
    inputs += [w_dec_t, b_dec, v]
    if is_coverage:
        w_cov = params["cov_fc_w"].reshape(1, D).astype(jnp.float32)
        in_specs.append(param_spec((1, D)))
        inputs.append(w_cov)

    out_shape = [
        jax.ShapeDtypeStruct((Bp, D), jnp.float32),     # c_t
        jax.ShapeDtypeStruct((Bp, Lp), jnp.float32),    # attn
    ]
    out_specs = [
        pl.BlockSpec((tb, D), lambda b, l: (b, 0)),
        row_spec,
    ]
    if is_coverage:
        out_shape.append(jax.ShapeDtypeStruct((Bp, Lp), jnp.float32))   # coverage
        out_specs.append(row_spec)

    kernel = functools.partial(_attention_kernel, is_coverage, tl)

    outs = pl.pallas_call(
        kernel,
        grid=grid,
        in_specs=in_specs,
        out_specs=tuple(out_specs),
        out_shape=tuple(out_shape),
        scratch_shapes=[
            pltpu.VMEM((tb, D), jnp.float32),       # dec_fea (per batch block)
            pltpu.VMEM((tb, Lp), jnp.float32),      # masked scores row
            pltpu.VMEM((tb, 1), jnp.float32),       # running max
            pltpu.VMEM((tb, 1), jnp.float32),       # running denominator
            pltpu.VMEM((tb, D), jnp.float32),       # c_t accumulator
        ],
        compiler_params=pltpu.CompilerParams(
            dimension_semantics=("parallel", "arbitrary"),
            vmem_limit_bytes=vmem_limit,
        ),
    )(*inputs)

    if is_coverage:
        c_t, attn, cov_out = outs
        cov_ret = cov_out[:B, :L]
    else:
        c_t, attn = outs
        cov_ret = coverage          # unchanged — no dead HBM read/writeback

    return c_t[:B, :], attn[:B, :L], cov_ret


def _reference(params, s_t, enc_out, enc_fea, enc_pad_mask, coverage,
               *, is_coverage=True):
    B, L, D = enc_out.shape
    dec_fea = s_t @ params["dec_fc_w"].T + params["dec_fc_b"]
    att_fea = enc_fea.reshape(B, L, D) + dec_fea[:, None, :]
    if is_coverage:
        att_fea = att_fea + coverage[:, :, None] * params["cov_fc_w"].reshape(1, 1, D)
    scores = jnp.tanh(att_fea) @ params["att_fc_w"].reshape(D)
    attn = jax.nn.softmax(scores, axis=1) * enc_pad_mask
    attn = attn / jnp.sum(attn, axis=1, keepdims=True)
    c_t = jnp.einsum("bl,bld->bd", attn, enc_out)
    cov_out = coverage + attn if is_coverage else coverage
    return c_t, attn, cov_out


if __name__ == "__main__":
    hid_dim = 16
    D = hid_dim * 2          # 32
    B, L = 2, 8

    key = jax.random.PRNGKey(0)
    keys = jax.random.split(key, 8)

    params = {
        "dec_fc_w": jax.random.normal(keys[0], (D, D), jnp.float32) * 0.1,
        "dec_fc_b": jax.random.normal(keys[1], (D,), jnp.float32) * 0.1,
        "att_fc_w": jax.random.normal(keys[2], (1, D), jnp.float32) * 0.1,
        "cov_fc_w": jax.random.normal(keys[3], (D, 1), jnp.float32) * 0.1,
    }

    s_t = jax.random.normal(keys[4], (B, D), jnp.float32)
    enc_out = jax.random.normal(keys[5], (B, L, D), jnp.float32)
    enc_fea = jax.random.normal(keys[6], (B * L, D), jnp.float32)
    coverage = jax.random.uniform(keys[7], (B, L), jnp.float32)
    # padding mask: row 0 has 6 valid positions, row 1 all 8
    enc_pad_mask = jnp.array(
        [[1, 1, 1, 1, 1, 1, 0, 0],
         [1, 1, 1, 1, 1, 1, 1, 1]], jnp.float32)

    for is_cov in (True, False):
        c_ref, a_ref, cov_ref = _reference(
            params, s_t, enc_out, enc_fea, enc_pad_mask, coverage,
            is_coverage=is_cov)

        # f32 streaming: tight check; bf16 streaming (the production default):
        # looser check — a precision trade-off, not a bug.
        for sdt, tol in ((jnp.float32, 2e-3), (jnp.bfloat16, 3e-2)):
            c_t, attn, cov_out = attention_forward(
                params, s_t, enc_out, enc_fea, enc_pad_mask, coverage,
                is_coverage=is_cov, stream_dtype=sdt)
            jax.block_until_ready((c_t, attn, cov_out))

            assert c_t.shape == (B, D) and attn.shape == (B, L)
            assert cov_out.shape == (B, L)
            assert jnp.allclose(c_t, c_ref, atol=tol, rtol=tol), ("c_t", is_cov, sdt)
            assert jnp.allclose(attn, a_ref, atol=tol, rtol=tol), ("attn", is_cov, sdt)
            assert jnp.allclose(cov_out, cov_ref, atol=tol, rtol=tol), ("cov", is_cov, sdt)

    print("KERNEL_OK")
</pallas_src>

<mosaic_0001>
module attributes {stable_mosaic.version = 11 : i64} {
  func.func @_attention_kernel(%arg0: i32, %arg1: i32, %arg2: memref<8x32xf32, #tpu.memory_space<vmem>>, %arg3: memref<8x128x32xf32, #tpu.memory_space<vmem>>, %arg4: memref<8x128x32xf32, #tpu.memory_space<vmem>>, %arg5: memref<8x128xf32, #tpu.memory_space<vmem>>, %arg6: memref<8x128xf32, #tpu.memory_space<vmem>>, %arg7: memref<32x32xf32, #tpu.memory_space<vmem>>, %arg8: memref<1x32xf32, #tpu.memory_space<vmem>>, %arg9: memref<1x32xf32, #tpu.memory_space<vmem>>, %arg10: memref<1x32xf32, #tpu.memory_space<vmem>>, %arg11: memref<8x32xf32, #tpu.memory_space<vmem>>, %arg12: memref<8x128xf32, #tpu.memory_space<vmem>>, %arg13: memref<8x128xf32, #tpu.memory_space<vmem>>, %arg14: memref<8x32xf32, #tpu.memory_space<vmem>>, %arg15: memref<8x128xf32, #tpu.memory_space<vmem>>, %arg16: memref<8x1xf32, #tpu.memory_space<vmem>>, %arg17: memref<8x1xf32, #tpu.memory_space<vmem>>, %arg18: memref<8x32xf32, #tpu.memory_space<vmem>>) attributes {dimension_semantics = [#tpu.dimension_semantics<parallel>, #tpu.dimension_semantics<arbitrary>], iteration_bounds = array<i64: 1, 1>, scalar_prefetch = 0 : i64, scratch_operands = 5 : i64, tpu.core_type = #tpu.core_type<tc>, window_params = [{transform_indices = @transform_0, window_bounds = array<i64: 8, 32>}, {transform_indices = @transform_1, window_bounds = array<i64: 8, 128, 32>}, {transform_indices = @transform_2, window_bounds = array<i64: 8, 128, 32>}, {transform_indices = @transform_3, window_bounds = array<i64: 8, 128>}, {transform_indices = @transform_4, window_bounds = array<i64: 8, 128>}, {pipeline_mode = #tpu.pipeline_mode<synchronous>, transform_indices = @transform_5, window_bounds = array<i64: 32, 32>}, {pipeline_mode = #tpu.pipeline_mode<synchronous>, transform_indices = @transform_6, window_bounds = array<i64: 1, 32>}, {pipeline_mode = #tpu.pipeline_mode<synchronous>, transform_indices = @transform_7, window_bounds = array<i64: 1, 32>}, {pipeline_mode = #tpu.pipeline_mode<synchronous>, transform_indices = @transform_8, window_bounds = array<i64: 1, 32>}, {transform_indices = @transform_9, window_bounds = array<i64: 8, 32>}, {transform_indices = @transform_10, window_bounds = array<i64: 8, 128>}, {transform_indices = @transform_11, window_bounds = array<i64: 8, 128>}]} {
    %c128_i32 = arith.constant 128 : i32
    %0 = arith.muli %arg1, %c128_i32 : i32
    %1 = tpu.assume_multiple %0, 128 : i32
    %c0_i32 = arith.constant 0 : i32
    %2 = arith.cmpi eq, %arg1, %c0_i32 : i32
    %3 = arith.extui %2 : i1 to i32
    %c0_i32_0 = arith.constant 0 : i32
    %4 = arith.cmpi ne, %3, %c0_i32_0 : i32
    scf.if %4 {
      %c0_34 = arith.constant 0 : index
      %c0_35 = arith.constant 0 : index
      %62 = vector.load %arg2[%c0_34, %c0_35] : memref<8x32xf32, #tpu.memory_space<vmem>>, vector<8x32xf32>
      %c0_36 = arith.constant 0 : index
      %c0_37 = arith.constant 0 : index
      %63 = vector.load %arg7[%c0_36, %c0_37] : memref<32x32xf32, #tpu.memory_space<vmem>>, vector<32x32xf32>
      %cst_38 = arith.constant dense<0.000000e+00> : vector<8x32xf32>
      %64 = tpu.matmul %62, %63, %cst_38 {dimension_numbers = #tpu.dot_dimension_numbers<[1], [0], [0], [1], [0, 0, 1, 1], [], []>} : vector<8x32xf32>, vector<32x32xf32>, vector<8x32xf32> -> vector<8x32xf32>
      %c0_39 = arith.constant 0 : index
      %c0_40 = arith.constant 0 : index
      %65 = vector.load %arg8[%c0_39, %c0_40] : memref<1x32xf32, #tpu.memory_space<vmem>>, vector<1x32xf32>
      %66 = vector.broadcast %65 : vector<1x32xf32> to vector<8x32xf32>
      %67 = arith.addf %64, %66 : vector<8x32xf32>
      %c0_41 = arith.constant 0 : index
      %c0_42 = arith.constant 0 : index
      %68 = vector.load %arg14[%c0_41, %c0_42] : memref<8x32xf32, #tpu.memory_space<vmem>>, vector<8x32xf32>
      tpu.vector_store %arg14[%c0_41, %c0_42], %67 {strides = array<i32>} : memref<8x32xf32, #tpu.memory_space<vmem>>, vector<8x32xf32>,
      %cst_43 = arith.constant -1.000000e+30 : f32
      %69 = vector.broadcast %cst_43 : f32 to vector<8x1xf32>
      %c0_44 = arith.constant 0 : index
      %c0_45 = arith.constant 0 : index
      %70 = vector.load %arg16[%c0_44, %c0_45] : memref<8x1xf32, #tpu.memory_space<vmem>>, vector<8x1xf32>
      tpu.vector_store %arg16[%c0_44, %c0_45], %69 {strides = array<i32>} : memref<8x1xf32, #tpu.memory_space<vmem>>, vector<8x1xf32>,
      %cst_46 = arith.constant 0.000000e+00 : f32
      %71 = vector.broadcast %cst_46 : f32 to vector<8x1xf32>
      %c0_47 = arith.constant 0 : index
      %c0_48 = arith.constant 0 : index
      %72 = vector.load %arg17[%c0_47, %c0_48] : memref<8x1xf32, #tpu.memory_space<vmem>>, vector<8x1xf32>
      tpu.vector_store %arg17[%c0_47, %c0_48], %71 {strides = array<i32>} : memref<8x1xf32, #tpu.memory_space<vmem>>, vector<8x1xf32>,
      %cst_49 = arith.constant 0.000000e+00 : f32
      %73 = vector.broadcast %cst_49 : f32 to vector<8x32xf32>
      %c0_50 = arith.constant 0 : index
      %c0_51 = arith.constant 0 : index
      %74 = vector.load %arg18[%c0_50, %c0_51] : memref<8x32xf32, #tpu.memory_space<vmem>>, vector<8x32xf32>
      tpu.vector_store %arg18[%c0_50, %c0_51], %73 {strides = array<i32>} : memref<8x32xf32, #tpu.memory_space<vmem>>, vector<8x32xf32>,
    } else {
    }
    %c0 = arith.constant 0 : index
    %c0_1 = arith.constant 0 : index
    %c0_2 = arith.constant 0 : index
    %5 = vector.load %arg4[%c0, %c0_1, %c0_2] : memref<8x128x32xf32, #tpu.memory_space<vmem>>, vector<8x128x32xf32>
    %c0_3 = arith.constant 0 : index
    %c0_4 = arith.constant 0 : index
    %6 = vector.load %arg14[%c0_3, %c0_4] : memref<8x32xf32, #tpu.memory_space<vmem>>, vector<8x32xf32>
    %7 = vector.shape_cast %6 : vector<8x32xf32> to vector<8x1x32xf32>
    %8 = vector.broadcast %7 : vector<8x1x32xf32> to vector<8x128x32xf32>
    %9 = arith.addf %5, %8 : vector<8x128x32xf32>
    %c0_5 = arith.constant 0 : index
    %10 = arith.index_cast %1 : i32 to index
    %11 = vector.load %arg6[%c0_5, %10] : memref<8x128xf32, #tpu.memory_space<vmem>>, vector<8x128xf32>
    %12 = vector.shape_cast %11 : vector<8x128xf32> to vector<8x128x1xf32>
    %c0_6 = arith.constant 0 : index
    %c0_7 = arith.constant 0 : index
    %13 = vector.load %arg10[%c0_6, %c0_7] : memref<1x32xf32, #tpu.memory_space<vmem>>, vector<1x32xf32>
    %14 = vector.shape_cast %13 : vector<1x32xf32> to vector<1x1x32xf32>
    %15 = vector.broadcast %12 : vector<8x128x1xf32> to vector<8x128x32xf32>
    %16 = vector.broadcast %14 : vector<1x1x32xf32> to vector<8x128x32xf32>
    %17 = arith.mulf %15, %16 : vector<8x128x32xf32>
    %18 = arith.addf %9, %17 : vector<8x128x32xf32>
    %19 = math.tanh %18 : vector<8x128x32xf32>
    %c0_8 = arith.constant 0 : index
    %c0_9 = arith.constant 0 : index
    %20 = vector.load %arg9[%c0_8, %c0_9] : memref<1x32xf32, #tpu.memory_space<vmem>>, vector<1x32xf32>
    %21 = vector.shape_cast %20 : vector<1x32xf32> to vector<1x1x32xf32>
    %22 = vector.broadcast %21 : vector<1x1x32xf32> to vector<8x128x32xf32>
    %23 = arith.mulf %19, %22 : vector<8x128x32xf32>
    %cst = arith.constant dense<0.000000e+00> : vector<8x128xf32>
    %24 = vector.multi_reduction <add>, %23, %cst [2] : vector<8x128x32xf32> to vector<8x128xf32>
    %c0_10 = arith.constant 0 : index
    %25 = arith.index_cast %1 : i32 to index
    %26 = vector.load %arg5[%c0_10, %25] : memref<8x128xf32, #tpu.memory_space<vmem>>, vector<8x128xf32>
    %cst_11 = arith.constant 0.000000e+00 : f32
    %27 = vector.broadcast %cst_11 : f32 to vector<8x128xf32>
    %28 = arith.cmpf ogt, %26, %27 : vector<8x128xf32>
    %cst_12 = arith.constant -1.000000e+30 : f32
    %29 = vector.broadcast %cst_12 : f32 to vector<8x128xf32>
    %30 = arith.select %28, %24, %29 : vector<8x128xi1>, vector<8x128xf32>
    %c0_13 = arith.constant 0 : index
    %31 = arith.index_cast %1 : i32 to index
    %32 = vector.load %arg15[%c0_13, %31] : memref<8x128xf32, #tpu.memory_space<vmem>>, vector<8x128xf32>
    tpu.vector_store %arg15[%c0_13, %31], %30 {strides = array<i32>} : memref<8x128xf32, #tpu.memory_space<vmem>>, vector<8x128xf32>,
    %c0_14 = arith.constant 0 : index
    %c0_15 = arith.constant 0 : index
    %33 = vector.load %arg16[%c0_14, %c0_15] : memref<8x1xf32, #tpu.memory_space<vmem>>, vector<8x1xf32>
    %cst_16 = arith.constant dense<0xFF800000> : vector<8xf32>
    %34 = vector.multi_reduction <maximumf>, %30, %cst_16 [1] : vector<8x128xf32> to vector<8xf32>
    %35 = vector.shape_cast %34 : vector<8xf32> to vector<8x1xf32>
    %36 = arith.maximumf %33, %35 : vector<8x1xf32>
    %37 = arith.subf %33, %36 : vector<8x1xf32>
    %38 = math.exp %37 : vector<8x1xf32>
    %39 = vector.broadcast %36 : vector<8x1xf32> to vector<8x128xf32>
    %40 = arith.subf %30, %39 : vector<8x128xf32>
    %41 = math.exp %40 : vector<8x128xf32>
    %c0_17 = arith.constant 0 : index
    %c0_18 = arith.constant 0 : index
    %42 = vector.load %arg17[%c0_17, %c0_18] : memref<8x1xf32, #tpu.memory_space<vmem>>, vector<8x1xf32>
    %43 = arith.mulf %38, %42 : vector<8x1xf32>
    %cst_19 = arith.constant dense<0.000000e+00> : vector<8xf32>
    %44 = vector.multi_reduction <add>, %41, %cst_19 [1] : vector<8x128xf32> to vector<8xf32>
    %45 = vector.shape_cast %44 : vector<8xf32> to vector<8x1xf32>
    %46 = arith.addf %43, %45 : vector<8x1xf32>
    %c0_20 = arith.constant 0 : index
    %c0_21 = arith.constant 0 : index
    %47 = vector.load %arg17[%c0_20, %c0_21] : memref<8x1xf32, #tpu.memory_space<vmem>>, vector<8x1xf32>
    tpu.vector_store %arg17[%c0_20, %c0_21], %46 {strides = array<i32>} : memref<8x1xf32, #tpu.memory_space<vmem>>, vector<8x1xf32>,
    %48 = vector.shape_cast %41 : vector<8x128xf32> to vector<8x128x1xf32>
    %c0_22 = arith.constant 0 : index
    %c0_23 = arith.constant 0 : index
    %c0_24 = arith.constant 0 : index
    %49 = vector.load %arg3[%c0_22, %c0_23, %c0_24] : memref<8x128x32xf32, #tpu.memory_space<vmem>>, vector<8x128x32xf32>
    %50 = vector.broadcast %48 : vector<8x128x1xf32> to vector<8x128x32xf32>
    %51 = arith.mulf %50, %49 : vector<8x128x32xf32>
    %cst_25 = arith.constant dense<0.000000e+00> : vector<8x32xf32>
    %52 = vector.multi_reduction <add>, %51, %cst_25 [1] : vector<8x128x32xf32> to vector<8x32xf32>
    %c0_26 = arith.constant 0 : index
    %c0_27 = arith.constant 0 : index
    %53 = vector.load %arg18[%c0_26, %c0_27] : memref<8x32xf32, #tpu.memory_space<vmem>>, vector<8x32xf32>
    %54 = vector.broadcast %38 : vector<8x1xf32> to vector<8x32xf32>
    %55 = arith.mulf %54, %53 : vector<8x32xf32>
    %56 = arith.addf %55, %52 : vector<8x32xf32>
    %c0_28 = arith.constant 0 : index
    %c0_29 = arith.constant 0 : index
    %57 = vector.load %arg18[%c0_28, %c0_29] : memref<8x32xf32, #tpu.memory_space<vmem>>, vector<8x32xf32>
    tpu.vector_store %arg18[%c0_28, %c0_29], %56 {strides = array<i32>} : memref<8x32xf32, #tpu.memory_space<vmem>>, vector<8x32xf32>,
    %c0_30 = arith.constant 0 : index
    %c0_31 = arith.constant 0 : index
    %58 = vector.load %arg16[%c0_30, %c0_31] : memref<8x1xf32, #tpu.memory_space<vmem>>, vector<8x1xf32>
    tpu.vector_store %arg16[%c0_30, %c0_31], %36 {strides = array<i32>} : memref<8x1xf32, #tpu.memory_space<vmem>>, vector<8x1xf32>,
    %c0_i32_32 = arith.constant 0 : i32
    %59 = arith.cmpi eq, %arg1, %c0_i32_32 : i32
    %60 = arith.extui %59 : i1 to i32
    %c0_i32_33 = arith.constant 0 : i32
    %61 = arith.cmpi ne, %60, %c0_i32_33 : i32
    scf.if %61 {
      %c0_34 = arith.constant 0 : index
      %c0_35 = arith.constant 0 : index
      %62 = vector.load %arg17[%c0_34, %c0_35] : memref<8x1xf32, #tpu.memory_space<vmem>>, vector<8x1xf32>
      %63 = tpu.reciprocal %62 {approx = true} : vector<8x1xf32> -> vector<8x1xf32>
      %c0_36 = arith.constant 0 : index
      %c0_37 = arith.constant 0 : index
      %64 = vector.load %arg18[%c0_36, %c0_37] : memref<8x32xf32, #tpu.memory_space<vmem>>, vector<8x32xf32>
      %65 = vector.broadcast %63 : vector<8x1xf32> to vector<8x32xf32>
      %66 = arith.mulf %64, %65 : vector<8x32xf32>
      %c0_38 = arith.constant 0 : index
      %c0_39 = arith.constant 0 : index
      %67 = vector.load %arg11[%c0_38, %c0_39] : memref<8x32xf32, #tpu.memory_space<vmem>>, vector<8x32xf32>
      tpu.vector_store %arg11[%c0_38, %c0_39], %66 {strides = array<i32>} : memref<8x32xf32, #tpu.memory_space<vmem>>, vector<8x32xf32>,
      %c0_40 = arith.constant 0 : index
      %c0_41 = arith.constant 0 : index
      %68 = vector.load %arg15[%c0_40, %c0_41] : memref<8x128xf32, #tpu.memory_space<vmem>>, vector<8x128xf32>
      %c0_42 = arith.constant 0 : index
      %c0_43 = arith.constant 0 : index
      %69 = vector.load %arg16[%c0_42, %c0_43] : memref<8x1xf32, #tpu.memory_space<vmem>>, vector<8x1xf32>
      %70 = vector.broadcast %69 : vector<8x1xf32> to vector<8x128xf32>
      %71 = arith.subf %68, %70 : vector<8x128xf32>
      %72 = math.exp %71 : vector<8x128xf32>
      %73 = vector.broadcast %63 : vector<8x1xf32> to vector<8x128xf32>
      %74 = arith.mulf %72, %73 : vector<8x128xf32>
      %c0_44 = arith.constant 0 : index
      %c0_45 = arith.constant 0 : index
      %75 = vector.load %arg12[%c0_44, %c0_45] : memref<8x128xf32, #tpu.memory_space<vmem>>, vector<8x128xf32>
      tpu.vector_store %arg12[%c0_44, %c0_45], %74 {strides = array<i32>} : memref<8x128xf32, #tpu.memory_space<vmem>>, vector<8x128xf32>,
      %c0_46 = arith.constant 0 : index
      %c0_47 = arith.constant 0 : index
      %76 = vector.load %arg6[%c0_46, %c0_47] : memref<8x128xf32, #tpu.memory_space<vmem>>, vector<8x128xf32>
      %77 = arith.addf %76, %74 : vector<8x128xf32>
      %c0_48 = arith.constant 0 : index
      %c0_49 = arith.constant 0 : index
      %78 = vector.load %arg13[%c0_48, %c0_49] : memref<8x128xf32, #tpu.memory_space<vmem>>, vector<8x128xf32>
      tpu.vector_store %arg13[%c0_48, %c0_49], %77 {strides = array<i32>} : memref<8x128xf32, #tpu.memory_space<vmem>>, vector<8x128xf32>,
    } else {
    }
    return
  }
  func.func @transform_0(%arg0: i32, %arg1: i32) -> (i32, i32) {
    %c0_i32 = arith.constant 0 : i32
    %c0_i32_0 = arith.constant 0 : i32
    return %arg0, %c0_i32 : i32, i32
  }
  func.func @transform_1(%arg0: i32, %arg1: i32) -> (i32, i32, i32) {
    %c0_i32 = arith.constant 0 : i32
    %c0_i32_0 = arith.constant 0 : i32
    return %arg0, %arg1, %c0_i32 : i32, i32, i32
  }
  func.func @transform_2(%arg0: i32, %arg1: i32) -> (i32, i32, i32) {
    %c0_i32 = arith.constant 0 : i32
    %c0_i32_0 = arith.constant 0 : i32
    return %arg0, %arg1, %c0_i32 : i32, i32, i32
  }
  func.func @transform_3(%arg0: i32, %arg1: i32) -> (i32, i32) {
    %c0_i32 = arith.constant 0 : i32
    %c0_i32_0 = arith.constant 0 : i32
    return %arg0, %c0_i32 : i32, i32
  }
  func.func @transform_4(%arg0: i32, %arg1: i32) -> (i32, i32) {
    %c0_i32 = arith.constant 0 : i32
    %c0_i32_0 = arith.constant 0 : i32
    return %arg0, %c0_i32 : i32, i32
  }
  func.func @transform_5(%arg0: i32, %arg1: i32) -> (i32, i32) {
    %c0_i32 = arith.constant 0 : i32
    %c0_i32_0 = arith.constant 0 : i32
    %c0_i32_1 = arith.constant 0 : i32
    return %c0_i32, %c0_i32_0 : i32, i32
  }
  func.func @transform_6(%arg0: i32, %arg1: i32) -> (i32, i32) {
    %c0_i32 = arith.constant 0 : i32
    %c0_i32_0 = arith.constant 0 : i32
    %c0_i32_1 = arith.constant 0 : i32
    return %c0_i32, %c0_i32_0 : i32, i32
  }
  func.func @transform_7(%arg0: i32, %arg1: i32) -> (i32, i32) {
    %c0_i32 = arith.constant 0 : i32
    %c0_i32_0 = arith.constant 0 : i32
    %c0_i32_1 = arith.constant 0 : i32
    return %c0_i32, %c0_i32_0 : i32, i32
  }
  func.func @transform_8(%arg0: i32, %arg1: i32) -> (i32, i32) {
    %c0_i32 = arith.constant 0 : i32
    %c0_i32_0 = arith.constant 0 : i32
    %c0_i32_1 = arith.constant 0 : i32
    return %c0_i32, %c0_i32_0 : i32, i32
  }
  func.func @transform_9(%arg0: i32, %arg1: i32) -> (i32, i32) {
    %c0_i32 = arith.constant 0 : i32
    %c0_i32_0 = arith.constant 0 : i32
    return %arg0, %c0_i32 : i32, i32
  }
  func.func @transform_10(%arg0: i32, %arg1: i32) -> (i32, i32) {
    %c0_i32 = arith.constant 0 : i32
    %c0_i32_0 = arith.constant 0 : i32
    return %arg0, %c0_i32 : i32, i32
  }
  func.func @transform_11(%arg0: i32, %arg1: i32) -> (i32, i32) {
    %c0_i32 = arith.constant 0 : i32
    %c0_i32_0 = arith.constant 0 : i32
    return %arg0, %c0_i32 : i32, i32
  }
}

</mosaic_0001>

<bundles_post_ra>
// kernel: tpu_custom_call.1
= control target key start
LH: loop header
LB: loop body
LE: loop exit
PB: predicated region body
PF: predicated region fallthrough
CT: control target
= control target key end

     0   :  { %17 = vsyncpa [#allocation8], 0  ;;  %vm7511_vm0 = vcmask 261120   ;;  %v7496_v1 = vlaneseq  ;;  %v7495_v2 = vmov 0.0   ;;  %vm4316_vm1 = vmmov 0   ;;  %s7477_s0 = inlined_call_operand.vmem [shape: f32[8,32], index: 0, kind: input, shape index: {}]   ;;  %s7478_s1 = inlined_call_operand.vmem [shape: f32[8,128,32], index: 1, kind: input, shape index: {}]   ;;  %s7479_s2 = inlined_call_operand.vmem [shape: f32[8,128,32], index: 2, kind: input, shape index: {}]   ;;  %s7480_s3 = inlined_call_operand.vmem [shape: f32[8,128], index: 3, kind: input, shape index: {}]   ;;  %s7481_s4 = inlined_call_operand.vmem [shape: f32[8,128], index: 4, kind: input, shape index: {}]   ;;  %s7482_s5 = inlined_call_operand.vmem [shape: f32[32,32], index: 5, kind: input, shape index: {}]   ;;  %s7483_s6 = inlined_call_operand.vmem [shape: f32[1,32], index: 6, kind: input, shape index: {}]   ;;  %s7484_s7 = inlined_call_operand.vmem [shape: f32[1,32], index: 7, kind: input, shape index: {}]   ;;  %s7485_s8 = inlined_call_operand.vmem [shape: f32[1,32], index: 8, kind: input, shape index: {}]   ;;  %s7486_s9 = inlined_call_operand.hbm [shape: f32[8,32], index: 9, kind: output, shape index: {0}]   ;;  %s7487_s10 = inlined_call_operand.hbm [shape: f32[8,128], index: 10, kind: output, shape index: {1}]   ;;  %s7488_s11 = inlined_call_operand.hbm [shape: f32[8,128], index: 11, kind: output, shape index: {2}]  }
   0x1   :  { %v46_v0 = vld [vmem:[%s7482_s5 + $0x18] sm:$0xff]  ;;  %3961 = vmatprep.subr.mxu0 %v7495_v2  ;;  %132 = vst.msk [vmem:[#allocation6] sm:$0xff] %vm7511_vm0, %v7495_v2  ;;  %v45_v3 = vld [vmem:[%s7482_s5 + $0x10] sm:$0xff]  ;;  %3969 = vmatprep.mubr.msk.f32.mxu0 %vm4316_vm1, %v7495_v2 }
   0x2   :  { %3962 = vmatpush3.msra.mxu0 %v46_v0  ;;  %v4394_v4 = vshrl.u32 %v7496_v1, 7 }
   0x4   :  { %7513 = vst [vmem:[#allocation14_spill] sm:$0xff] %v4394_v4 }
   0x5   :  { %18 = vsyncpa [#allocation10], 0  ;;  %3963 = vmatprep.subr.mxu0 %v7495_v2  ;;  %v44_v5 = vld [vmem:[%s7482_s5 + $0x8] sm:$0xff]  ;;  %v4403_v6 = vld [vmem:[%s7481_s4] sm:$0xff]  ;;  %v4406_v7 = vsub.s32 0, %v4394_v4  ;;  %v7494_v11 = vsub.s32 1, %v4394_v4 }
   0x6   :  { %3964 = vmatpush3.msra.mxu0 %v45_v3  ;;  %v43_v9 = vld [vmem:[%s7482_s5] sm:$0xff]  ;;  %v7493_v13 = vsub.s32 2, %v4394_v4  ;;  %v7492_v15 = vsub.s32 3, %v4394_v4  ;;  %v7491_v21 = vsub.s32 4, %v4394_v4  ;;  %v7490_v39 = vsub.s32 5, %v4394_v4 }
   0x7   :  { %7514 = vst [vmem:[#allocation15_spill] sm:$0xff] %v4406_v7  ;;  %3965 = vmatprep.subr.mxu0 %v7495_v2  ;;  %v487_v8 = vrot.slane %v4403_v6, %v4406_v7  ;;  %v42_v10 = vld [vmem:[%s7477_s0] sm:$0xff]  ;;  %v554_v12 = vrot.slane %v4403_v6, %v7494_v11  ;;  %v7489_v57 = vsub.s32 6, %v4394_v4  ;;  %vm2073_vm2 = vcmask 130112  }
   0x8   :  { %3966 = vmatpush3.msra.mxu0 %v44_v5  ;;  %v621_v14 = vrot.slane %v4403_v6, %v7493_v13  ;;  %v688_v16 = vrot.slane %v4403_v6, %v7492_v15  ;;  %v755_v24 = vrot.slane %v4403_v6, %v7491_v21  ;;  %v822_v42 = vrot.slane %v4403_v6, %v7490_v39  ;;  %v3952_v63 = vld [vmem:[%s7483_s6] ss:$0 sm:$0xff]  ;;  %s4321_s6 = smov [#allocation11]  }
   0x9   :  { %3967 = vmatprep.subr.mxu0 %v7495_v2  ;;  %497 = vbcast.lane.b32.xlu1 %v487_v8, 272  ;;  %v889_v60 = vrot.slane %v4403_v6, %v7489_v57  ;;  %v7498_v2 = vsub.s32 7, %v4394_v4  ;;  %vm2080_vm3 = vcmask 195712   ;;  %vm2087_vm4 = vcmask 261312  }
   0xa   :  { %489 = vbcast.lane.b32.xlu0 %v487_v8, 256  ;;  %3968 = vmatpush3.msra.mxu0 %v43_v9  ;;  %vm2094_vm5 = vcmask 326912   ;;  %vm2101_vm6 = vcmask 392512   ;;  %vm2108_vm7 = vcmask 458112   ;;  %vm2115_vm8 = vcmask 523712  }
   0xb   :  { %3970 = vmatmul.mubr.msk.f32.vlgmr.msra.gmra.mxu0 %vm7511_vm0, %v42_v10  ;;  %v4317_v10 = vmov 1966171168   ;;  %vm2122_vm9 = vcmask 589312   ;;  %vm2129_vm10 = vcmask 654912   ;;  %vm2136_vm11 = vcmask 720512  }
   0xc   :  { %vm2143_vm12 = vcmask 786112   ;;  %vm2150_vm13 = vcmask 851712   ;;  %vm7504_vm14 = vcmask 917312   ;;  %vm2164_vm15 = vcmask 982912  }
   0xd   :  { %501 = vbcast.lane.b32.xlu1 %v487_v8, 280  ;;  %vm2171_vm1 = vcmask 1048512  }
   0xe   :  { %493 = vbcast.lane.b32.xlu0 %v487_v8, 264 }
  0x11   :  { %509 = vbcast.lane.b32.xlu1 %v487_v8, 296 }
  0x12   :  { %505 = vbcast.lane.b32.xlu0 %v487_v8, 288 }
  0x15   :  { %517 = vbcast.lane.b32.xlu1 %v487_v8, 312 }
  0x16   :  { %513 = vbcast.lane.b32.xlu0 %v487_v8, 304 }
  0x19   :  { %525 = vbcast.lane.b32.xlu1 %v487_v8, 328 }
  0x1a   :  { %521 = vbcast.lane.b32.xlu0 %v487_v8, 320 }
  0x1d   :  { %533 = vbcast.lane.b32.xlu1 %v487_v8, 344 }
  0x1e   :  { %529 = vbcast.lane.b32.xlu0 %v487_v8, 336 }
  0x21   :  { %541 = vbcast.lane.b32.xlu1 %v487_v8, 360 }
  0x22   :  { %537 = vbcast.lane.b32.xlu0 %v487_v8, 352 }
  0x25   :  { %549 = vbcast.lane.b32.xlu1 %v487_v8, 376 }
  0x26   :  { %545 = vbcast.lane.b32.xlu0 %v487_v8, 368 }
  0x29   :  { %560 = vbcast.lane.b32.xlu1 %v554_v12, 264 }
  0x2a   :  { %556 = vbcast.lane.b32.xlu0 %v554_v12, 256 }
  0x2d   :  { %568 = vbcast.lane.b32.xlu1 %v554_v12, 280 }
  0x2e   :  { %564 = vbcast.lane.b32.xlu0 %v554_v12, 272 }
  0x31   :  { %576 = vbcast.lane.b32.xlu1 %v554_v12, 296 }
  0x32   :  { %572 = vbcast.lane.b32.xlu0 %v554_v12, 288 }
  0x35   :  { %584 = vbcast.lane.b32.xlu1 %v554_v12, 312 }
  0x36   :  { %580 = vbcast.lane.b32.xlu0 %v554_v12, 304 }
  0x39   :  { %592 = vbcast.lane.b32.xlu1 %v554_v12, 328 }
  0x3a   :  { %588 = vbcast.lane.b32.xlu0 %v554_v12, 320 }
  0x3d   :  { %600 = vbcast.lane.b32.xlu1 %v554_v12, 344 }
  0x3e   :  { %596 = vbcast.lane.b32.xlu0 %v554_v12, 336 }
  0x41   :  { %608 = vbcast.lane.b32.xlu1 %v554_v12, 360 }
  0x42   :  { %604 = vbcast.lane.b32.xlu0 %v554_v12, 352 }
  0x45   :  { %616 = vbcast.lane.b32.xlu1 %v554_v12, 376 }
  0x46   :  { %612 = vbcast.lane.b32.xlu0 %v554_v12, 368  ;;  %v265_v12 = vunpack.c.l.s4 %v4317_v10 }
  0x49   :  { %627 = vbcast.lane.b32.xlu1 %v621_v14, 264 }
  0x4a   :  { %623 = vbcast.lane.b32.xlu0 %v621_v14, 256 }
  0x4d   :  { %635 = vbcast.lane.b32.xlu1 %v621_v14, 280 }
  0x4e   :  { %631 = vbcast.lane.b32.xlu0 %v621_v14, 272 }
  0x51   :  { %643 = vbcast.lane.b32.xlu1 %v621_v14, 296 }
  0x52   :  { %639 = vbcast.lane.b32.xlu0 %v621_v14, 288 }
  0x55   :  { %651 = vbcast.lane.b32.xlu1 %v621_v14, 312 }
  0x56   :  { %647 = vbcast.lane.b32.xlu0 %v621_v14, 304 }
  0x59   :  { %659 = vbcast.lane.b32.xlu1 %v621_v14, 328 }
  0x5a   :  { %655 = vbcast.lane.b32.xlu0 %v621_v14, 320 }
  0x5d   :  { %667 = vbcast.lane.b32.xlu1 %v621_v14, 344 }
  0x5e   :  { %663 = vbcast.lane.b32.xlu0 %v621_v14, 336 }
  0x61   :  { %675 = vbcast.lane.b32.xlu1 %v621_v14, 360 }
  0x62   :  { %671 = vbcast.lane.b32.xlu0 %v621_v14, 352 }
  0x65   :  { %683 = vbcast.lane.b32.xlu1 %v621_v14, 376 }
  0x66   :  { %679 = vbcast.lane.b32.xlu0 %v621_v14, 368 }
  0x69   :  { %694 = vbcast.lane.b32.xlu1 %v688_v16, 264 }
  0x6a   :  { %690 = vbcast.lane.b32.xlu0 %v688_v16, 256 }
  0x6d   :  { %702 = vbcast.lane.b32.xlu1 %v688_v16, 280 }
  0x6e   :  { %698 = vbcast.lane.b32.xlu0 %v688_v16, 272 }
  0x71   :  { %710 = vbcast.lane.b32.xlu1 %v688_v16, 296 }
  0x72   :  { %706 = vbcast.lane.b32.xlu0 %v688_v16, 288 }
  0x75   :  { %718 = vbcast.lane.b32.xlu1 %v688_v16, 312 }
  0x76   :  { %714 = vbcast.lane.b32.xlu0 %v688_v16, 304 }
  0x79   :  { %726 = vbcast.lane.b32.xlu1 %v688_v16, 328 }
  0x7a   :  { %722 = vbcast.lane.b32.xlu0 %v688_v16, 320 }
  0x7b   :  { %v4431_v17 = vpop.permute.xlu1 %497 }
  0x7c   :  { %v4433_v18 = vpop.permute.xlu0 %489 }
  0x7d   :  { %734 = vbcast.lane.b32.xlu1 %v688_v16, 344 }
  0x7e   :  { %730 = vbcast.lane.b32.xlu0 %v688_v16, 336 }
  0x7f   :  { %v4435_v19 = vpop.permute.xlu1 %501 }
  0x80   :  { %v4437_v20 = vpop.permute.xlu0 %493 }
  0x81   :  { %742 = vbcast.lane.b32.xlu1 %v688_v16, 360 }
  0x82   :  { %738 = vbcast.lane.b32.xlu0 %v688_v16, 352 }
  0x83   :  { %v4440_v22 = vpop.permute.xlu1 %509 }
  0x84   :  { %v4442_v23 = vpop.permute.xlu0 %505 }
  0x85   :  { %750 = vbcast.lane.b32.xlu1 %v688_v16, 376 }
  0x86   :  { %746 = vbcast.lane.b32.xlu0 %v688_v16, 368 }
  0x87   :  { %v4447_v25 = vpop.permute.xlu1 %517 }
  0x88   :  { %v4449_v26 = vpop.permute.xlu0 %513 }
  0x89   :  { %761 = vbcast.lane.b32.xlu1 %v755_v24, 264 }
  0x8a   :  { %757 = vbcast.lane.b32.xlu0 %v755_v24, 256 }
  0x8b   :  { %v4451_v27 = vpop.permute.xlu1 %525 }
  0x8c   :  { %v4453_v28 = vpop.permute.xlu0 %521 }
  0x8d   :  { %769 = vbcast.lane.b32.xlu1 %v755_v24, 280 }
  0x8e   :  { %765 = vbcast.lane.b32.xlu0 %v755_v24, 272 }
  0x8f   :  { %v4455_v29 = vpop.permute.xlu1 %533 }
  0x90   :  { %v4457_v30 = vpop.permute.xlu0 %529 }
  0x91   :  { %777 = vbcast.lane.b32.xlu1 %v755_v24, 296 }
  0x92   :  { %773 = vbcast.lane.b32.xlu0 %v755_v24, 288 }
  0x93   :  { %v4459_v31 = vpop.permute.xlu1 %541 }
  0x94   :  { %v4461_v32 = vpop.permute.xlu0 %537 }
  0x95   :  { %785 = vbcast.lane.b32.xlu1 %v755_v24, 312 }
  0x96   :  { %781 = vbcast.lane.b32.xlu0 %v755_v24, 304 }
  0x97   :  { %v4463_v33 = vpop.permute.xlu1 %549 }
  0x98   :  { %v4465_v34 = vpop.permute.xlu0 %545 }
  0x99   :  { %793 = vbcast.lane.b32.xlu1 %v755_v24, 328 }
  0x9a   :  { %789 = vbcast.lane.b32.xlu0 %v755_v24, 320 }
  0x9b   :  { %v4467_v35 = vpop.permute.xlu1 %560 }
  0x9c   :  { %v4469_v36 = vpop.permute.xlu0 %556 }
  0x9d   :  { %801 = vbcast.lane.b32.xlu1 %v755_v24, 344 }
  0x9e   :  { %797 = vbcast.lane.b32.xlu0 %v755_v24, 336 }
  0x9f   :  { %v4471_v37 = vpop.permute.xlu1 %568 }
  0xa0   :  { %v4473_v38 = vpop.permute.xlu0 %564 }
  0xa1   :  { %809 = vbcast.lane.b32.xlu1 %v755_v24, 360 }
  0xa2   :  { %805 = vbcast.lane.b32.xlu0 %v755_v24, 352 }
  0xa3   :  { %v4476_v40 = vpop.permute.xlu1 %576 }
  0xa4   :  { %v4478_v41 = vpop.permute.xlu0 %572 }
  0xa5   :  { %817 = vbcast.lane.b32.xlu1 %v755_v24, 376 }
  0xa6   :  { %813 = vbcast.lane.b32.xlu0 %v755_v24, 368  ;;  %v266_v24 = vunpack.c.0.s8 %v265_v12 }
  0xa7   :  { %v4483_v43 = vpop.permute.xlu1 %584 }
  0xa8   :  { %v4485_v44 = vpop.permute.xlu0 %580 }
  0xa9   :  { %828 = vbcast.lane.b32.xlu1 %v822_v42, 264 }
  0xaa   :  { %824 = vbcast.lane.b32.xlu0 %v822_v42, 256 }
  0xab   :  { %v4487_v45 = vpop.permute.xlu1 %592 }
  0xac   :  { %v4489_v46 = vpop.permute.xlu0 %588 }
  0xad   :  { %836 = vbcast.lane.b32.xlu1 %v822_v42, 280 }
  0xae   :  { %832 = vbcast.lane.b32.xlu0 %v822_v42, 272 }
  0xaf   :  { %v4491_v47 = vpop.permute.xlu1 %600 }
  0xb0   :  { %v4493_v48 = vpop.permute.xlu0 %596 }
  0xb1   :  { %844 = vbcast.lane.b32.xlu1 %v822_v42, 296 }
  0xb2   :  { %840 = vbcast.lane.b32.xlu0 %v822_v42, 288 }
  0xb3   :  { %v4495_v49 = vpop.permute.xlu1 %608 }
  0xb4   :  { %v4497_v50 = vpop.permute.xlu0 %604 }
  0xb5   :  { %852 = vbcast.lane.b32.xlu1 %v822_v42, 312 }
  0xb6   :  { %848 = vbcast.lane.b32.xlu0 %v822_v42, 304 }
  0xb7   :  { %v4499_v51 = vpop.permute.xlu1 %616 }
  0xb8   :  { %v4501_v52 = vpop.permute.xlu0 %612 }
  0xb9   :  { %860 = vbcast.lane.b32.xlu1 %v822_v42, 328 }
  0xba   :  { %856 = vbcast.lane.b32.xlu0 %v822_v42, 320 }
  0xbb   :  { %v4503_v53 = vpop.permute.xlu1 %627 }
  0xbc   :  { %v4505_v54 = vpop.permute.xlu0 %623 }
  0xbd   :  { %868 = vbcast.lane.b32.xlu1 %v822_v42, 344 }
  0xbe   :  { %864 = vbcast.lane.b32.xlu0 %v822_v42, 336 }
  0xbf   :  { %v4507_v55 = vpop.permute.xlu1 %635 }
  0xc0   :  { %v4509_v56 = vpop.permute.xlu0 %631 }
  0xc1   :  { %876 = vbcast.lane.b32.xlu1 %v822_v42, 360 }
  0xc2   :  { %872 = vbcast.lane.b32.xlu0 %v822_v42, 352 }
  0xc3   :  { %v4512_v58 = vpop.permute.xlu1 %643 }
  0xc4   :  { %v4514_v59 = vpop.permute.xlu0 %639 }
  0xc5   :  { %884 = vbcast.lane.b32.xlu1 %v822_v42, 376 }
  0xc6   :  { %880 = vbcast.lane.b32.xlu0 %v822_v42, 368 }
  0xc7   :  { %v4519_v61 = vpop.permute.xlu1 %651 }
  0xc8   :  { %v4521_v62 = vpop.permute.xlu0 %647 }
  0xc9   :  { %895 = vbcast.lane.b32.xlu1 %v889_v60, 264 }
  0xca   :  { %891 = vbcast.lane.b32.xlu0 %v889_v60, 256 }
  0xcb   :  { %v124_v0 = vpop.f32.mrf.mxu0  ;;  %v4526_v3 = vpop.permute.xlu1 %659 }
  0xcc   :  { %v125_v5 = vadd.f32 %v3952_v63, %v124_v0  ;;  %v4528_v8 = vpop.permute.xlu0 %655 }
  0xcd   :  { %903 = vbcast.lane.b32.xlu1 %v889_v60, 280  ;;  %v3971_v9 = vpop.f32.mrf.mxu0 }
  0xce   :  { %899 = vbcast.lane.b32.xlu0 %v889_v60, 272  ;;  %128 = vst.msk [vmem:[#allocation2] sm:$0xff] %vm7511_vm0, %v125_v5  ;;  %v4540_v9 = vsub.s32 %v266_v24, %v4394_v4 }
  0xcf   :  { %v4531_v14 = vpop.permute.xlu1 %667 }
  0xd0   :  { %v4533_v16 = vpop.permute.xlu0 %663 }
  0xd1   :  { %911 = vbcast.lane.b32.xlu1 %v889_v60, 296 }
  0xd2   :  { %907 = vbcast.lane.b32.xlu0 %v889_v60, 288 }
  0xd3   :  { %v4535_v42 = vpop.permute.xlu1 %675 }
  0xd4   :  { %7515 = vst [vmem:[#allocation16_spill] sm:$0xff] %v4535_v42  ;;  %v4537_v57 = vpop.permute.xlu0 %671 }
  0xd5   :  { %7516 = vst [vmem:[#allocation17_spill] sm:$0xff] %v4537_v57  ;;  %v261_v63 = vld [vmem:[#allocation2] sm:$0xff]  ;;  %919 = vbcast.lane.b32.xlu1 %v889_v60, 312 }
  0xd6   :  { %915 = vbcast.lane.b32.xlu0 %v889_v60, 304  ;;  %v263_v0 = vcombine.high %v261_v63, %v261_v63 }
  0xd7   :  { %v4542_v5 = vpop.permute.xlu1 %683 }
  0xd8   :  { %7517 = vst [vmem:[#allocation18_spill] sm:$0xff] %v4542_v5  ;;  %v277_v10 = vrot.slane %v263_v0, %v4540_v9  ;;  %v4545_v39 = vpop.permute.xlu0 %679 }
  0xd9   :  { %7518 = vst [vmem:[#allocation19_spill] sm:$0xff] %v4545_v39  ;;  %927 = vbcast.lane.b32.xlu1 %v889_v60, 328 }
  0xda   :  { %923 = vbcast.lane.b32.xlu0 %v889_v60, 320  ;;  %v279_v12 = vcombine.high %v277_v10, %v277_v10  ;;  %v4548_v21 = vrot.slane %v277_v10, %v4540_v9 }
  0xdb   :  { %v4550_v15 = vpop.permute.xlu1 %694 }
  0xdc   :  { %7519 = vst [vmem:[#allocation20_spill] sm:$0xff] %v4548_v21  ;;  %7520 = vst [vmem:[#allocation21_spill] sm:$0xff] %v4550_v15  ;;  %v4553_v13 = vrot.slane %v279_v12, %v4540_v9  ;;  %v4555_v11 = vpop.permute.xlu0 %690  ;;  %v956_v12 = vrot.slane %v4403_v6, %v7498_v2 }
  0xdd   :  { %7521 = vst [vmem:[#allocation22_spill] sm:$0xff] %v4555_v11  ;;  %935 = vbcast.lane.b32.xlu1 %v889_v60, 344 }
  0xde   :  { %931 = vbcast.lane.b32.xlu0 %v889_v60, 336 }
  0xdf   :  { %v4557_v24 = vpop.permute.xlu1 %702 }
  0xe0   :  { %7522 = vst [vmem:[#allocation23_spill] sm:$0xff] %v4557_v24  ;;  %v4559_v0 = vpop.permute.xlu0 %698 }
  0xe1   :  { %7523 = vst [vmem:[#allocation24_spill] sm:$0xff] %v4559_v0  ;;  %943 = vbcast.lane.b32.xlu1 %v889_v60, 360 }
  0xe2   :  { %939 = vbcast.lane.b32.xlu0 %v889_v60, 352 }
  0xe3   :  { %v4562_v1 = vpop.permute.xlu1 %710 }
  0xe4   :  { %7524 = vst [vmem:[#allocation25_spill] sm:$0xff] %v4562_v1  ;;  %v4564_v10 = vpop.permute.xlu0 %706 }
  0xe5   :  { %7525 = vst [vmem:[#allocation26_spill] sm:$0xff] %v4564_v10  ;;  %951 = vbcast.lane.b32.xlu1 %v889_v60, 376 }
  0xe6   :  { %947 = vbcast.lane.b32.xlu0 %v889_v60, 368 }
  0xe7   :  { %v4569_v21 = vpop.permute.xlu1 %718 }
  0xe8   :  { %7526 = vst [vmem:[#allocation27_spill] sm:$0xff] %v4569_v21  ;;  %v4571_v11 = vpop.permute.xlu0 %714  ;;  %v134_v21 = vld [vmem:[%s7479_s2 + $0x8] sm:$0xff] }
  0xe9   :  { %7527 = vst [vmem:[#allocation28_spill] sm:$0xff] %v4571_v11  ;;  %962 = vbcast.lane.b32.xlu1 %v956_v12, 264 }
  0xea   :  { %958 = vbcast.lane.b32.xlu0 %v956_v12, 256 }
  0xeb   :  { %v4573_v24 = vpop.permute.xlu1 %726 }
  0xec   :  { %7528 = vst [vmem:[#allocation29_spill] sm:$0xff] %v4573_v24  ;;  %v4575_v0 = vpop.permute.xlu0 %722 }
  0xed   :  { %7529 = vst [vmem:[#allocation30_spill] sm:$0xff] %v4575_v0  ;;  %970 = vbcast.lane.b32.xlu1 %v956_v12, 280 }
  0xee   :  { %966 = vbcast.lane.b32.xlu0 %v956_v12, 272 }
  0xef   :  { %v4577_v1 = vpop.permute.xlu1 %734 }
  0xf0   :  { %7530 = vst [vmem:[#allocation31_spill] sm:$0xff] %v4577_v1  ;;  %v4579_v10 = vpop.permute.xlu0 %730  ;;  %v4592_v1 = vrot.slane %v261_v63, %v4540_v9 }
  0xf1   :  { %7531 = vst [vmem:[#allocation32_spill] sm:$0xff] %v4579_v10  ;;  %978 = vbcast.lane.b32.xlu1 %v956_v12, 296 }
  0xf2   :  { %974 = vbcast.lane.b32.xlu0 %v956_v12, 288 }
  0xf3   :  { %v4581_v6 = vpop.permute.xlu1 %742 }
  0xf4   :  { %7532 = vst [vmem:[#allocation33_spill] sm:$0xff] %v4581_v6  ;;  %v4583_v60 = vpop.permute.xlu0 %738 }
  0xf5   :  { %7533 = vst [vmem:[#allocation34_spill] sm:$0xff] %v4583_v60  ;;  %986 = vbcast.lane.b32.xlu1 %v956_v12, 312  ;;  %v4600_v60 = vrot.slane %v4592_v1, %v4540_v9 }
  0xf6   :  { %982 = vbcast.lane.b32.xlu0 %v956_v12, 304 }
  0xf7   :  { %v4585_v2 = vpop.permute.xlu1 %750  ;;  %v4608_v63 = vrot.slane %v4600_v60, %v4406_v7 }
  0xf8   :  { %7534 = vst [vmem:[#allocation35_spill] sm:$0xff] %v4585_v2  ;;  %v4587_v4 = vpop.permute.xlu0 %746 }
  0xf9   :  { %7535 = vst [vmem:[#allocation36_spill] sm:$0xff] %v4587_v4  ;;  %994 = vbcast.lane.b32.xlu1 %v956_v12, 328  ;;  %v353_v39 = vadd.f32 %v4608_v63, %v134_v21 }
  0xfa   :  { %990 = vbcast.lane.b32.xlu0 %v956_v12, 320 }
  0xfb   :  { %v4589_v24 = vpop.permute.xlu1 %761 }
  0xfc   :  { %7536 = vst [vmem:[#allocation37_spill] sm:$0xff] %v4589_v24  ;;  %v4594_v10 = vpop.permute.xlu0 %757 }
  0xfd   :  { %7537 = vst [vmem:[#allocation38_spill] sm:$0xff] %v4594_v10  ;;  %1002 = vbcast.lane.b32.xlu1 %v956_v12, 344 }
  0xfe   :  { %998 = vbcast.lane.b32.xlu0 %v956_v12, 336 }
  0xff   :  { %v4596_v6 = vpop.permute.xlu1 %769 }
 0x100   :  { %7538 = vst [vmem:[#allocation39_spill] sm:$0xff] %v4596_v6  ;;  %v4602_v2 = vpop.permute.xlu0 %765  ;;  %v133_v6 = vld [vmem:[%s7479_s2] sm:$0xff] }
 0x101   :  { %7539 = vst [vmem:[#allocation40_spill] sm:$0xff] %v4602_v2  ;;  %1010 = vbcast.lane.b32.xlu1 %v956_v12, 360  ;;  %v4618_v2 = vld [vmem:[%s7485_s8] ss:$0 sm:$0xff]  ;;  %v352_v0 = vadd.f32 %v4608_v63, %v133_v6 }
 0x102   :  { %1006 = vbcast.lane.b32.xlu0 %v956_v12, 352  ;;  %v1029_v5 = vmul.f32 %v4618_v2, %v4431_v17 }
 0x103   :  { %v4604_v4 = vpop.permute.xlu1 %777 }
 0x104   :  { %7540 = vst [vmem:[#allocation41_spill] sm:$0xff] %v4604_v4  ;;  %v4610_v24 = vpop.permute.xlu0 %773 }
 0x105   :  { %7541 = vst [vmem:[#allocation42_spill] sm:$0xff] %v4610_v24  ;;  %1018 = vbcast.lane.b32.xlu1 %v956_v12, 376  ;;  %v135_v24 = vld [vmem:[%s7479_s2 + $0x10] sm:$0xff] }
 0x106   :  { %1014 = vbcast.lane.b32.xlu0 %v956_v12, 368  ;;  %v1027_v12 = vmul.f32 %v4618_v2, %v4433_v18  ;;  %v354_v15 = vadd.f32 %v4608_v63, %v135_v24  ;;  %v137_v18 = vld [vmem:[%s7479_s2 + $0x20] sm:$0xff] }
 0x107   :  { %v4620_v10 = vpop.permute.xlu1 %785  ;;  %v356_v17 = vadd.f32 %v4608_v63, %v137_v18  ;;  %v140_v18 = vld [vmem:[%s7479_s2 + $0x38] sm:$0xff] }
 0x108   :  { %7542 = vst [vmem:[#allocation43_spill] sm:$0xff] %v4620_v10  ;;  %v4622_v4 = vpop.permute.xlu0 %781  ;;  %v1155_v10 = vadd.f32 %v1027_v12, %v352_v0  ;;  %v1157_v42 = vadd.f32 %v1029_v5, %v354_v15  ;;  %v1030_v0 = vmul.f32 %v4618_v2, %v4435_v19  ;;  %v1031_v15 = vmul.f32 %v4618_v2, %v4442_v23  ;;  %v141_v23 = vld [vmem:[%s7479_s2 + $0x40] sm:$0xff] }
 0x109   :  { %7543 = vst [vmem:[#allocation44_spill] sm:$0xff] %v4622_v4  ;;  %v136_v4 = vld [vmem:[%s7479_s2 + $0x18] sm:$0xff] }
 0x10a   :  { %v355_v24 = vadd.f32 %v4608_v63, %v136_v4  ;;  %3983 = vtanh.f32 %v1155_v10  ;;  %v139_v4 = vld [vmem:[%s7479_s2 + $0x30] sm:$0xff] }
 0x10b   :  { %v4633_v11 = vpop.permute.xlu1 %793  ;;  %3985 = vtanh.f32 %v1157_v42  ;;  %v358_v10 = vadd.f32 %v4608_v63, %v139_v4  ;;  %v1033_v42 = vmul.f32 %v4618_v2, %v4449_v26  ;;  %v1034_v4 = vmul.f32 %v4618_v2, %v4447_v25  ;;  %v143_v26 = vld [vmem:[%s7479_s2 + $0x50] sm:$0xff] }
 0x10c   :  { %7544 = vst [vmem:[#allocation45_spill] sm:$0xff] %v4633_v11  ;;  %v4639_v6 = vpop.permute.xlu0 %789  ;;  %v1028_v11 = vmul.f32 %v4618_v2, %v4437_v20  ;;  %v1158_v20 = vadd.f32 %v1030_v0, %v355_v24  ;;  %v359_v0 = vadd.f32 %v4608_v63, %v140_v18  ;;  %v362_v18 = vadd.f32 %v4608_v63, %v143_v26 }
 0x10d   :  { %7545 = vst [vmem:[#allocation46_spill] sm:$0xff] %v4639_v6  ;;  %v138_v6 = vld [vmem:[%s7479_s2 + $0x28] sm:$0xff] }
 0x10e   :  { %v1156_v21 = vadd.f32 %v1028_v11, %v353_v39  ;;  %v357_v19 = vadd.f32 %v4608_v63, %v138_v6  ;;  %v1159_v39 = vadd.f32 %v1031_v15, %v356_v17  ;;  %v360_v17 = vadd.f32 %v4608_v63, %v141_v23  ;;  %v144_v23 = vld [vmem:[%s7479_s2 + $0x58] sm:$0xff] }
 0x10f   :  { %v4650_v57 = vpop.permute.xlu1 %801  ;;  %v278_v15 = vcombine.high %v4592_v1, %v4592_v1  ;;  %v1036_v1 = vmul.f32 %v4618_v2, %v4451_v27  ;;  %v363_v27 = vadd.f32 %v4608_v63, %v144_v23  ;;  %v1040_v23 = vmul.f32 %v4618_v2, %v4459_v31 }
 0x110   :  { %v4654_v12 = vpop.permute.xlu0 %797  ;;  %3987 = vtanh.f32 %v1156_v21  ;;  %v1161_v21 = vadd.f32 %v1033_v42, %v358_v10  ;;  %v4711_v42 = vld [vmem:[%s7484_s7] ss:$0 sm:$0xff] }
 0x111   :  { %7546 = vst [vmem:[#allocation47_spill] sm:$0xff] %v4654_v12  ;;  %v1032_v12 = vmul.f32 %v4618_v2, %v4440_v22  ;;  %3989 = vtanh.f32 %v1158_v20  ;;  %v142_v22 = vld [vmem:[%s7479_s2 + $0x48] sm:$0xff] }
 0x112   :  { %3991 = vtanh.f32 %v1159_v39  ;;  %v1162_v39 = vadd.f32 %v1034_v4, %v359_v0  ;;  %v361_v10 = vadd.f32 %v4608_v63, %v142_v22  ;;  %v1037_v0 = vmul.f32 %v4618_v2, %v4457_v30  ;;  %v146_v4 = vld [vmem:[%s7479_s2 + $0x68] sm:$0xff] }
 0x113   :  { %v4665_v5 = vpop.permute.xlu1 %809  ;;  %v1160_v24 = vadd.f32 %v1032_v12, %v357_v19  ;;  %v1035_v12 = vmul.f32 %v4618_v2, %v4453_v28 }
 0x114   :  { %v4668_v11 = vpop.permute.xlu0 %805  ;;  %v1164_v22 = vadd.f32 %v1036_v1, %v361_v10  ;;  %v1165_v30 = vadd.f32 %v1037_v0, %v362_v18  ;;  %v1038_v10 = vmul.f32 %v4618_v2, %v4455_v29  ;;  %v1039_v1 = vmul.f32 %v4618_v2, %v4461_v32 }
 0x115   :  { %3993 = vtanh.f32 %v1160_v24  ;;  %v1163_v25 = vadd.f32 %v1035_v12, %v360_v17  ;;  %v145_v24 = vld [vmem:[%s7479_s2 + $0x60] sm:$0xff]  ;;  %v365_v18 = vadd.f32 %v4608_v63, %v146_v4 }
 0x116   :  { %3995 = vtanh.f32 %v1161_v21  ;;  %v4719_v21 = vrot.slane %v278_v15, %v4540_v9  ;;  %v364_v9 = vadd.f32 %v4608_v63, %v145_v24  ;;  %v147_v15 = vld [vmem:[%s7479_s2 + $0x70] sm:$0xff] }
 0x117   :  { %v4681_v6 = vpop.permute.xlu1 %817  ;;  %v3984_v28 = vpop.eup %3983  ;;  %3997 = vtanh.f32 %v1162_v39  ;;  %v366_v29 = vadd.f32 %v4608_v63, %v147_v15 }
 0x118   :  { %v4697_v20 = vpop.permute.xlu0 %813  ;;  %v3986_v26 = vpop.eup %3985  ;;  %3999 = vtanh.f32 %v1163_v25  ;;  %v4742_v25 = vrot.slane %v4719_v21, %v4406_v7  ;;  %v1167_v32 = vadd.f32 %v1039_v1, %v364_v9 }
 0x119   :  { %7547 = vst [vmem:[#allocation48_spill] sm:$0xff] %v4697_v20  ;;  %v1420_v0 = vmul.f32 %v3986_v26, %v4711_v42  ;;  %4001 = vtanh.f32 %v1164_v22  ;;  %v148_v20 = vld [vmem:[%s7479_s2 + $0x78] sm:$0xff]  ;;  %v149_v22 = vld [vmem:[%s7479_s2 + $0x80] sm:$0xff]  ;;  %v1168_v26 = vadd.f32 %v1040_v23, %v365_v18  ;;  %v151_v18 = vld [vmem:[%s7479_s2 + $0x90] sm:$0xff] }
 0x11a   :  { %4003 = vtanh.f32 %v1165_v30  ;;  %v368_v23 = vadd.f32 %v4742_v25, %v149_v22 }
 0x11b   :  { %v4699_v19 = vpop.permute.xlu1 %828  ;;  %v1553_v9 = vsel %vm7511_vm0, %v1420_v0, 0.0 }
 0x11c   :  { %7548 = vst [vmem:[#allocation49_spill] sm:$0xff] %v4699_v19  ;;  %v4727_v12 = vpop.permute.xlu0 %824  ;;  %v1418_v19 = vmul.f32 %v3984_v28, %v4711_v42 }
 0x11d   :  { %7550 = vst [vmem:[#allocation51_spill] sm:$0xff] %v4727_v12  ;;  %v3988_v39 = vpop.eup %3987 }
 0x11e   :  { %v3990_v28 = vpop.eup %3989  ;;  %v1547_v31 = vsel %vm7511_vm0, %v1418_v19, 0.0  ;;  %v1419_v12 = vmul.f32 %v3988_v39, %v4711_v42  ;;  %v367_v39 = vadd.f32 %v4608_v63, %v148_v20  ;;  %v1042_v63 = vmul.f32 %v4618_v2, %v4463_v33 }
 0x11f   :  { %v4721_v17 = vpop.permute.xlu1 %836  ;;  %v3992_v4 = vpop.eup %3991  ;;  %v1421_v19 = vmul.f32 %v3990_v28, %v4711_v42  ;;  %v1044_v20 = vmul.f32 %v4618_v2, %v4467_v35  ;;  %v370_v33 = vadd.f32 %v4742_v25, %v151_v18 }
 0x120   :  { %7549 = vst [vmem:[#allocation50_spill] sm:$0xff] %v4721_v17  ;;  %v1166_v17 = vadd.f32 %v1038_v10, %v363_v27  ;;  %v4759_v27 = vpop.permute.xlu0 %832  ;;  %v1550_v1 = vsel %vm7511_vm0, %v1419_v12, 0.0  ;;  %v1043_v12 = vmul.f32 %v4618_v2, %v4469_v36 }
 0x121   :  { %v1556_v28 = vsel %vm7511_vm0, %v1421_v19, 0.0 }
 0x122   :  { %4005 = vtanh.f32 %v1166_v17  ;;  %v3994_v10 = vpop.eup %3993 }
 0x123   :  { %v4745_v24 = vpop.permute.xlu1 %844  ;;  %4007 = vtanh.f32 %v1167_v32  ;;  %v3996_v17 = vpop.eup %3995  ;;  %v1170_v32 = vadd.f32 %v1042_v63, %v367_v39  ;;  %v153_v39 = vld [vmem:[%s7479_s2 + $0xa0] sm:$0xff] }
 0x124   :  { %7551 = vst [vmem:[#allocation52_spill] sm:$0xff] %v4745_v24  ;;  %v1041_v24 = vmul.f32 %v4618_v2, %v4465_v34  ;;  %v150_v34 = vld [vmem:[%s7479_s2 + $0x88] sm:$0xff]  ;;  %4009 = vtanh.f32 %v1168_v26  ;;  %v3998_v35 = vpop.eup %3997  ;;  %v4790_v22 = vpop.permute.xlu0 %840  ;;  %v1424_v19 = vmul.f32 %v3996_v17, %v4711_v42  ;;  %v1045_v26 = vmul.f32 %v4618_v2, %v4473_v38 }
 0x125   :  { %1548 = vadd.xlane.f32.xlu0 %v1547_v31  ;;  %v1422_v31 = vmul.f32 %v3992_v4, %v4711_v42  ;;  %v152_v4 = vld [vmem:[%s7479_s2 + $0x98] sm:$0xff]  ;;  %v154_v17 = vld [vmem:[%s7479_s2 + $0xa8] sm:$0xff] }
 0x126   :  { %v1169_v15 = vadd.f32 %v1041_v24, %v366_v29  ;;  %v369_v24 = vadd.f32 %v4742_v25, %v150_v34  ;;  %v1423_v29 = vmul.f32 %v3994_v10, %v4711_v42  ;;  %v4000_v34 = vpop.eup %3999  ;;  %v1046_v10 = vmul.f32 %v4618_v2, %v4471_v37 }
 0x127   :  { %v4762_v30 = vpop.permute.xlu1 %852  ;;  %v1559_v36 = vsel %vm7511_vm0, %v1422_v31, 0.0  ;;  %v371_v31 = vadd.f32 %v4742_v25, %v152_v4  ;;  %v1173_v38 = vadd.f32 %v1045_v26, %v370_v33  ;;  %v4002_v63 = vpop.eup %4001  ;;  %v1426_v37 = vmul.f32 %v4000_v34, %v4711_v42 }
 0x128   :  { %4011 = vtanh.f32 %v1169_v15  ;;  %v1562_v15 = vsel %vm7511_vm0, %v1423_v29, 0.0  ;;  %v1047_v29 = vmul.f32 %v4618_v2, %v4478_v41  ;;  %v373_v4 = vadd.f32 %v4742_v25, %v154_v17  ;;  %v156_v41 = vld [vmem:[%s7479_s2 + $0xb8] sm:$0xff] }
 0x129   :  { %1554 = vadd.xlane.f32.xlu0 %v1553_v9  ;;  %1551 = vadd.xlane.f32.xlu1 %v1550_v1  ;;  %v1171_v9 = vadd.f32 %v1043_v12, %v368_v23  ;;  %v1172_v1 = vadd.f32 %v1044_v20, %v369_v24  ;;  %v1425_v23 = vmul.f32 %v3998_v35, %v4711_v42  ;;  %4013 = vtanh.f32 %v1170_v32  ;;  %v4004_v24 = vpop.eup %4003  ;;  %v4817_v32 = vpop.permute.xlu0 %848 }
 0x12a   :  { %v1565_v12 = vsel %vm7511_vm0, %v1424_v19, 0.0  ;;  %v372_v20 = vadd.f32 %v4742_v25, %v153_v39  ;;  %v1174_v33 = vadd.f32 %v1046_v10, %v371_v31  ;;  %v1048_v35 = vmul.f32 %v4618_v2, %v4476_v40 }
 0x12b   :  { %v4783_v0 = vpop.permute.xlu1 %860  ;;  %4015 = vtanh.f32 %v1171_v9  ;;  %v1427_v19 = vmul.f32 %v4002_v63, %v4711_v42  ;;  %v1568_v26 = vsel %vm7511_vm0, %v1425_v23, 0.0  ;;  %v1571_v39 = vsel %vm7511_vm0, %v1426_v37, 0.0 }
 0x12c   :  { %4017 = vtanh.f32 %v1172_v1  ;;  %v1428_v10 = vmul.f32 %v4004_v24, %v4711_v42  ;;  %v1175_v1 = vadd.f32 %v1047_v29, %v372_v20  ;;  %v1049_v31 = vmul.f32 %v4618_v2, %v4485_v44  ;;  %v158_v20 = vld [vmem:[%s7479_s2 + $0xc8] sm:$0xff] }
 0x12d   :  { %1557 = vadd.xlane.f32.xlu0 %v1556_v28  ;;  %1560 = vadd.xlane.f32.xlu1 %v1559_v36  ;;  %v155_v28 = vld [vmem:[%s7479_s2 + $0xb0] sm:$0xff]  ;;  %4019 = vtanh.f32 %v1173_v38  ;;  %v1176_v38 = vadd.f32 %v1048_v35, %v373_v4  ;;  %v375_v17 = vadd.f32 %v4742_v25, %v156_v41  ;;  %v1050_v23 = vmul.f32 %v4618_v2, %v4483_v43  ;;  %v4847_v24 = vpop.permute.xlu0 %856 }
 0x12e   :  { %v374_v9 = vadd.f32 %v4742_v25, %v155_v28  ;;  %4021 = vtanh.f32 %v1174_v33  ;;  %v1577_v29 = vsel %vm7511_vm0, %v1428_v10, 0.0  ;;  %v159_v4 = vld [vmem:[%s7479_s2 + $0xd0] sm:$0xff]  ;;  %v377_v41 = vadd.f32 %v4742_v25, %v158_v20 }
 0x12f   :  { %v4802_v18 = vpop.permute.xlu1 %868  ;;  %v4006_v34 = vpop.eup %4005  ;;  %4023 = vtanh.f32 %v1175_v1  ;;  %v378_v10 = vadd.f32 %v4742_v25, %v159_v4 }
 0x130   :  { %7552 = vst [vmem:[#allocation53_spill] sm:$0xff] %v4802_v18  ;;  %v4008_v40 = vpop.eup %4007  ;;  %v1429_v37 = vmul.f32 %v4006_v34, %v4711_v42  ;;  %v1177_v44 = vadd.f32 %v1049_v31, %v374_v9  ;;  %4025 = vtanh.f32 %v1176_v38  ;;  %v1178_v9 = vadd.f32 %v1050_v23, %v375_v17  ;;  %v160_v38 = vld [vmem:[%s7479_s2 + $0xd8] sm:$0xff]  ;;  %v161_v23 = vld [vmem:[%s7479_s2 + $0xe0] sm:$0xff] }
 0x131   :  { %1563 = vadd.xlane.f32.xlu0 %v1562_v15  ;;  %1566 = vadd.xlane.f32.xlu1 %v1565_v12  ;;  %v157_v15 = vld [vmem:[%s7479_s2 + $0xc0] sm:$0xff]  ;;  %v1574_v12 = vsel %vm7511_vm0, %v1427_v19, 0.0  ;;  %v4010_v28 = vpop.eup %4009  ;;  %v1430_v33 = vmul.f32 %v4008_v40, %v4711_v42  ;;  %v1051_v19 = vmul.f32 %v4618_v2, %v4489_v46  ;;  %v1052_v34 = vmul.f32 %v4618_v2, %v4487_v45 }
 0x132   :  { %v376_v43 = vadd.f32 %v4742_v25, %v157_v15  ;;  %4027 = vtanh.f32 %v1177_v44  ;;  %v1580_v40 = vsel %vm7511_vm0, %v1429_v37, 0.0  ;;  %v1053_v17 = vmul.f32 %v4618_v2, %v4493_v48  ;;  %v4877_v37 = vpop.permute.xlu0 %864  ;;  %v7594_v18 = vld [vmem:[#allocation43_spill] sm:$0xff] }
 0x133   :  { %v4822_v36 = vpop.permute.xlu1 %876  ;;  %v1583_v31 = vsel %vm7511_vm0, %v1430_v33, 0.0  ;;  %7555 = vst [vmem:[#allocation56_spill] sm:$0xff] %v4877_v37  ;;  %4029 = vtanh.f32 %v1178_v9  ;;  %v1180_v44 = vadd.f32 %v1052_v34, %v377_v41  ;;  %v162_v9 = vld [vmem:[%s7479_s2 + $0xe8] sm:$0xff]  ;;  %v1054_v41 = vmul.f32 %v4618_v2, %v4491_v47  ;;  %v163_v34 = vld [vmem:[%s7479_s2 + $0xf0] sm:$0xff] }
 0x134   :  { %7553 = vst [vmem:[#allocation54_spill] sm:$0xff] %v4822_v36  ;;  %v1179_v15 = vadd.f32 %v1051_v19, %v376_v43  ;;  %v1181_v33 = vadd.f32 %v1053_v17, %v378_v10  ;;  %v379_v43 = vadd.f32 %v4742_v25, %v160_v38  ;;  %v7585_v36 = vld [vmem:[#allocation33_spill] sm:$0xff] }
 0x135   :  { %1569 = vadd.xlane.f32.xlu0 %v1568_v26  ;;  %1572 = vadd.xlane.f32.xlu1 %v1571_v39  ;;  %v4012_v35 = vpop.eup %4011  ;;  %v1431_v39 = vmul.f32 %v4010_v28, %v4711_v42 }
 0x136   :  { %v4014_v1 = vpop.eup %4013  ;;  %v1432_v46 = vmul.f32 %v4012_v35, %v4711_v42  ;;  %4031 = vtanh.f32 %v1179_v15  ;;  %v381_v15 = vadd.f32 %v4742_v25, %v162_v9  ;;  %v4905_v38 = vpop.permute.xlu0 %872 }
 0x137   :  { %v4840_v63 = vpop.permute.xlu1 %884  ;;  %v1433_v48 = vmul.f32 %v4014_v1, %v4711_v42  ;;  %4033 = vtanh.f32 %v1180_v44  ;;  %7556 = vst [vmem:[#allocation57_spill] sm:$0xff] %v4905_v38 }
 0x138   :  { %7554 = vst [vmem:[#allocation55_spill] sm:$0xff] %v4840_v63  ;;  %v4016_v45 = vpop.eup %4015  ;;  %v1589_v35 = vsel %vm7511_vm0, %v1432_v46, 0.0  ;;  %4035 = vtanh.f32 %v1181_v33  ;;  %v1182_v46 = vadd.f32 %v1054_v41, %v379_v43 }
 0x139   :  { %1575 = vadd.xlane.f32.xlu0 %v1574_v12  ;;  %1578 = vadd.xlane.f32.xlu1 %v1577_v29  ;;  %v308_v12 = vcombine.high %v4600_v60, %v4600_v60  ;;  %v4018_v20 = vpop.eup %4017  ;;  %v1586_v29 = vsel %vm7511_vm0, %v1431_v39, 0.0  ;;  %v1434_v19 = vmul.f32 %v4016_v45, %v4711_v42  ;;  %v380_v60 = vadd.f32 %v4742_v25, %v161_v23 }
 0x13a   :  { %v4020_v4 = vpop.eup %4019  ;;  %v1055_v39 = vmul.f32 %v4618_v2, %v4497_v50  ;;  %v1435_v1 = vmul.f32 %v4018_v20, %v4711_v42  ;;  %v1592_v45 = vsel %vm7511_vm0, %v1433_v48, 0.0  ;;  %v382_v23 = vadd.f32 %v4742_v25, %v163_v34 }
 0x13b   :  { %v4860_v26 = vpop.permute.xlu1 %895  ;;  %v4898_v10 = vrot.slane %v308_v12, %v4406_v7  ;;  %v1436_v47 = vmul.f32 %v4020_v4, %v4711_v42  ;;  %v1595_v50 = vsel %vm7511_vm0, %v1434_v19, 0.0  ;;  %v164_v12 = vld [vmem:[%s7479_s2 + $0xf8] sm:$0xff]  ;;  %v1056_v20 = vmul.f32 %v4618_v2, %v4495_v49 }
 0x13c   :  { %v1183_v17 = vadd.f32 %v1055_v39, %v380_v60  ;;  %v1057_v48 = vmul.f32 %v4618_v2, %v4501_v52  ;;  %v1598_v33 = vsel %vm7511_vm0, %v1435_v1, 0.0  ;;  %4037 = vtanh.f32 %v1182_v46  ;;  %v166_v39 = vld [vmem:[%s7479_s2 + $0x108] sm:$0xff] }
 0x13d   :  { %1581 = vadd.xlane.f32.xlu0 %v1580_v40  ;;  %1584 = vadd.xlane.f32.xlu1 %v1583_v31  ;;  %v4022_v40 = vpop.eup %4021  ;;  %v1601_v19 = vsel %vm7511_vm0, %v1436_v47, 0.0  ;;  %v1184_v49 = vadd.f32 %v1056_v20, %v381_v15  ;;  %v383_v60 = vadd.f32 %v4742_v25, %v164_v12  ;;  %v1058_v1 = vmul.f32 %v4618_v2, %v4499_v51  ;;  %v167_v25 = vld [vmem:[%s7479_s2 + $0x110] sm:$0xff]  ;;  %v4938_v47 = vpop.permute.xlu0 %880  ;;  %v168_v20 = vld [vmem:[%s7479_s2 + $0x118] sm:$0xff] }
 0x13e   :  { %v4024_v44 = vpop.eup %4023  ;;  %v1437_v43 = vmul.f32 %v4022_v40, %v4711_v42  ;;  %4039 = vtanh.f32 %v1183_v17  ;;  %v1185_v34 = vadd.f32 %v1057_v48, %v382_v23  ;;  %v1059_v40 = vmul.f32 %v4618_v2, %v4505_v54  ;;  %7557 = vst [vmem:[#allocation58_spill] sm:$0xff] %v4938_v47 }
 0x13f   :  { %v4879_v28 = vpop.permute.xlu1 %903  ;;  %v4026_v4 = vpop.eup %4025  ;;  %v1438_v41 = vmul.f32 %v4024_v44, %v4711_v42  ;;  %4041 = vtanh.f32 %v1184_v49  ;;  %v1186_v17 = vadd.f32 %v1058_v1, %v383_v60  ;;  %v385_v23 = vadd.f32 %v4898_v10, %v166_v39 }
 0x140   :  { %v4028_v9 = vpop.eup %4027  ;;  %v1604_v46 = vsel %vm7511_vm0, %v1437_v43, 0.0  ;;  %v1439_v15 = vmul.f32 %v4026_v4, %v4711_v42  ;;  %4043 = vtanh.f32 %v1185_v34  ;;  %v386_v54 = vadd.f32 %v4898_v10, %v167_v25  ;;  %v170_v25 = vld [vmem:[%s7479_s2 + $0x128] sm:$0xff] }
 0x141   :  { %1587 = vadd.xlane.f32.xlu0 %v1586_v29  ;;  %1590 = vadd.xlane.f32.xlu1 %v1589_v35  ;;  %v165_v29 = vld [vmem:[%s7479_s2 + $0x100] sm:$0xff]  ;;  %v1440_v51 = vmul.f32 %v4028_v9, %v4711_v42  ;;  %v1607_v12 = vsel %vm7511_vm0, %v1438_v41, 0.0  ;;  %v1060_v48 = vmul.f32 %v4618_v2, %v4503_v53  ;;  %v1061_v43 = vmul.f32 %v4618_v2, %v4509_v56 }
 0x142   :  { %v384_v52 = vadd.f32 %v4898_v10, %v165_v29  ;;  %v1610_v4 = vsel %vm7511_vm0, %v1439_v15, 0.0  ;;  %4045 = vtanh.f32 %v1186_v17  ;;  %v387_v41 = vadd.f32 %v4898_v10, %v168_v20  ;;  %v173_v17 = vld [vmem:[%s7479_s2 + $0x140] sm:$0xff] }
 0x143   :  { %v4901_v31 = vpop.permute.xlu1 %911  ;;  %v1613_v9 = vsel %vm7511_vm0, %v1440_v51, 0.0  ;;  %v1188_v53 = vadd.f32 %v1060_v48, %v385_v23  ;;  %v1189_v56 = vadd.f32 %v1061_v43, %v386_v54  ;;  %v1063_v15 = vmul.f32 %v4618_v2, %v4514_v59  ;;  %v172_v43 = vld [vmem:[%s7479_s2 + $0x138] sm:$0xff] }
 0x144   :  { %v1187_v44 = vadd.f32 %v1059_v40, %v384_v52  ;;  %v4964_v52 = vpop.permute.xlu0 %891  ;;  %v1062_v40 = vmul.f32 %v4618_v2, %v4507_v55 }
 0x145   :  { %1593 = vadd.xlane.f32.xlu0 %v1592_v45  ;;  %1596 = vadd.xlane.f32.xlu1 %v1595_v50  ;;  %v4030_v45 = vpop.eup %4029 }
 0x146   :  { %v4032_v29 = vpop.eup %4031  ;;  %4047 = vtanh.f32 %v1187_v44  ;;  %v389_v44 = vadd.f32 %v4898_v10, %v170_v25 }
 0x147   :  { %v4922_v35 = vpop.permute.xlu1 %919  ;;  %v4034_v49 = vpop.eup %4033  ;;  %v1442_v39 = vmul.f32 %v4032_v29, %v4711_v42  ;;  %4049 = vtanh.f32 %v1188_v53  ;;  %v174_v53 = vld [vmem:[%s7479_s2 + $0x148] sm:$0xff] }
 0x148   :  { %v4036_v34 = vpop.eup %4035  ;;  %v1443_v51 = vmul.f32 %v4034_v49, %v4711_v42  ;;  %4051 = vtanh.f32 %v1189_v56  ;;  %v4997_v49 = vpop.permute.xlu0 %899 }
 0x149   :  { %1599 = vadd.xlane.f32.xlu0 %v1598_v33  ;;  %1602 = vadd.xlane.f32.xlu1 %v1601_v19  ;;  %v169_v33 = vld [vmem:[%s7479_s2 + $0x120] sm:$0xff]  ;;  %v1441_v19 = vmul.f32 %v4030_v45, %v4711_v42  ;;  %v1444_v55 = vmul.f32 %v4036_v34, %v4711_v42  ;;  %v4038_v54 = vpop.eup %4037  ;;  %v1619_v20 = vsel %vm7511_vm0, %v1442_v39, 0.0 }
 0x14a   :  { %v388_v1 = vadd.f32 %v4898_v10, %v169_v33  ;;  %v1064_v33 = vmul.f32 %v4618_v2, %v4512_v58  ;;  %v175_v58 = vld [vmem:[%s7479_s2 + $0x150] sm:$0xff] }
 0x14b   :  { %v4942_v50 = vpop.permute.xlu1 %927  ;;  %v1616_v45 = vsel %vm7511_vm0, %v1441_v19, 0.0  ;;  %v4040_v48 = vpop.eup %4039  ;;  %v392_v19 = vadd.f32 %v4898_v10, %v173_v17  ;;  %v1625_v34 = vsel %vm7511_vm0, %v1444_v55, 0.0  ;;  %v394_v17 = vadd.f32 %v4898_v10, %v175_v58 }
 0x14c   :  { %7558 = vst [vmem:[#allocation59_spill] sm:$0xff] %v4942_v50  ;;  %v1191_v59 = vadd.f32 %v1063_v15, %v388_v1  ;;  %v1192_v39 = vadd.f32 %v1064_v33, %v389_v44  ;;  %v4042_v56 = vpop.eup %4041  ;;  %v1446_v1 = vmul.f32 %v4040_v48, %v4711_v42  ;;  %v1067_v15 = vmul.f32 %v4618_v2, %v4528_v8  ;;  %v177_v44 = vld [vmem:[%s7479_s2 + $0x160] sm:$0xff]  ;;  %v7591_v50 = vld [vmem:[#allocation40_spill] sm:$0xff] }
 0x14d   :  { %1605 = vadd.xlane.f32.xlu0 %v1604_v46  ;;  %1608 = vadd.xlane.f32.xlu1 %v1607_v12  ;;  %v171_v46 = vld [vmem:[%s7479_s2 + $0x130] sm:$0xff]  ;;  %v1190_v12 = vadd.f32 %v1062_v40, %v387_v41  ;;  %v391_v40 = vadd.f32 %v4898_v10, %v172_v43  ;;  %v311_v58 = vcombine.high %v4553_v13, %v4553_v13 }
 0x14e   :  { %v390_v29 = vadd.f32 %v4898_v10, %v171_v46  ;;  %v4044_v46 = vpop.eup %4043  ;;  %v1195_v55 = vadd.f32 %v1067_v15, %v392_v19  ;;  %v1070_v19 = vmul.f32 %v4618_v2, %v4531_v14  ;;  %v178_v14 = vld [vmem:[%s7479_s2 + $0x168] sm:$0xff] }
 0x14f   :  { %v4960_v60 = vpop.permute.xlu1 %935  ;;  %4053 = vtanh.f32 %v1190_v12  ;;  %v176_v12 = vld [vmem:[%s7479_s2 + $0x158] sm:$0xff]  ;;  %v1448_v48 = vmul.f32 %v4044_v46, %v4711_v42 }
 0x150   :  { %7559 = vst [vmem:[#allocation60_spill] sm:$0xff] %v4960_v60  ;;  %4055 = vtanh.f32 %v1191_v59  ;;  %v5028_v59 = vpop.permute.xlu0 %907 }
 0x151   :  { %1611 = vadd.xlane.f32.xlu0 %v1610_v4  ;;  %1614 = vadd.xlane.f32.xlu1 %v1613_v9  ;;  %v1065_v4 = vmul.f32 %v4618_v2, %v4521_v62  ;;  %v1622_v9 = vsel %vm7511_vm0, %v1443_v51, 0.0  ;;  %v1445_v62 = vmul.f32 %v4038_v54, %v4711_v42  ;;  %v393_v51 = vadd.f32 %v4898_v10, %v174_v53 }
 0x152   :  { %4057 = vtanh.f32 %v1192_v39  ;;  %v310_v53 = vcombine.high %v4719_v21, %v4719_v21  ;;  %v179_v21 = vld [vmem:[%s7479_s2 + $0x170] sm:$0xff] }
 0x153   :  { %v4983_v23 = vpop.permute.xlu1 %943  ;;  %v1193_v25 = vadd.f32 %v1065_v4, %v390_v29  ;;  %v1628_v8 = vsel %vm7511_vm0, %v1445_v62, 0.0  ;;  %v1631_v29 = vsel %vm7511_vm0, %v1446_v1, 0.0  ;;  %v1068_v4 = vmul.f32 %v4618_v2, %v4526_v3 }
 0x154   :  { %7560 = vst [vmem:[#allocation61_spill] sm:$0xff] %v4983_v23  ;;  %v396_v62 = vadd.f32 %v4898_v10, %v177_v44  ;;  %v5064_v44 = vrot.slane %v311_v58, %v4406_v7 }
 0x155   :  { %1617 = vadd.xlane.f32.xlu0 %v1616_v45  ;;  %1620 = vadd.xlane.f32.xlu1 %v1619_v20  ;;  %v1066_v45 = vmul.f32 %v4618_v2, %v4519_v61  ;;  %v1447_v20 = vmul.f32 %v4042_v56, %v4711_v42  ;;  %v4046_v61 = vpop.eup %4045  ;;  %4059 = vtanh.f32 %v1193_v25  ;;  %v1196_v39 = vadd.f32 %v1068_v4, %v393_v51 }
 0x156   :  { %v4048_v43 = vpop.eup %4047  ;;  %4061 = vtanh.f32 %v1195_v55  ;;  %v1637_v25 = vsel %vm7511_vm0, %v1448_v48, 0.0  ;;  %v180_v48 = vld [vmem:[%s7479_s2 + $0x178] sm:$0xff] }
 0x157   :  { %v5006_v41 = vpop.permute.xlu1 %951  ;;  %v1194_v33 = vadd.f32 %v1066_v45, %v391_v40  ;;  %v1634_v56 = vsel %vm7511_vm0, %v1447_v20, 0.0  ;;  %v4050_v1 = vpop.eup %4049  ;;  %v1449_v40 = vmul.f32 %v4046_v61, %v4711_v42  ;;  %v1450_v46 = vmul.f32 %v4048_v43, %v4711_v42  ;;  %v7562_v45 = vld [vmem:[#allocation16_spill] sm:$0xff]  ;;  %v181_v43 = vld [vmem:[%s7479_s2 + $0x180] sm:$0xff] }
 0x158   :  { %7561 = vst [vmem:[#allocation62_spill] sm:$0xff] %v5006_v41  ;;  %v4052_v15 = vpop.eup %4051  ;;  %v1072_v51 = vmul.f32 %v4618_v2, %v7562_v45  ;;  %v397_v20 = vadd.f32 %v4898_v10, %v178_v14  ;;  %v5067_v61 = vpop.permute.xlu0 %915  ;;  %v7564_v14 = vld [vmem:[#allocation18_spill] sm:$0xff] }
 0x159   :  { %1623 = vadd.xlane.f32.xlu0 %v1622_v9  ;;  %1626 = vadd.xlane.f32.xlu1 %v1625_v34  ;;  %v1069_v9 = vmul.f32 %v4618_v2, %v4533_v16  ;;  %v395_v34 = vadd.f32 %v4898_v10, %v176_v12  ;;  %4063 = vtanh.f32 %v1194_v33  ;;  %v5061_v12 = vrot.slane %v310_v53, %v4406_v7 }
 0x15a   :  { %4065 = vtanh.f32 %v1196_v39  ;;  %v398_v33 = vadd.f32 %v4898_v10, %v179_v21  ;;  %v1640_v53 = vsel %vm7511_vm0, %v1449_v40, 0.0  ;;  %v1643_v58 = vsel %vm7511_vm0, %v1450_v46, 0.0  ;;  %v7565_v21 = vld [vmem:[#allocation19_spill] sm:$0xff] }
 0x15b   :  { %v5024_v54 = vpop.permute.xlu1 %962  ;;  %v1197_v3 = vadd.f32 %v1069_v9, %v394_v17  ;;  %v7563_v17 = vld [vmem:[#allocation17_spill] sm:$0xff]  ;;  %v400_v40 = vadd.f32 %v5061_v12, %v181_v43 }
 0x15c   :  { %v1071_v55 = vmul.f32 %v4618_v2, %v7563_v17  ;;  %v4054_v9 = vpop.eup %4053  ;;  %v7567_v43 = vld [vmem:[#allocation21_spill] sm:$0xff] }
 0x15d   :  { %1629 = vadd.xlane.f32.xlu0 %v1628_v8  ;;  %1632 = vadd.xlane.f32.xlu1 %v1631_v29  ;;  %v1198_v8 = vadd.f32 %v1070_v19, %v395_v34  ;;  %v1451_v19 = vmul.f32 %v4050_v1, %v4711_v42  ;;  %4067 = vtanh.f32 %v1197_v3  ;;  %v252_v34 = vld [vmem:[%s7479_s2 + $0x3b8] sm:$0xff]  ;;  %v4056_v39 = vpop.eup %4055  ;;  %v1200_v3 = vadd.f32 %v1072_v51, %v397_v20  ;;  %v183_v51 = vld [vmem:[%s7479_s2 + $0x190] sm:$0xff] }
 0x15e   :  { %v1199_v29 = vadd.f32 %v1071_v55, %v396_v62  ;;  %v1452_v62 = vmul.f32 %v4052_v15, %v4711_v42  ;;  %v399_v1 = vadd.f32 %v4898_v10, %v180_v48  ;;  %v182_v15 = vld [vmem:[%s7479_s2 + $0x188] sm:$0xff]  ;;  %v471_v17 = vadd.f32 %v5064_v44, %v252_v34 }
 0x15f   :  { %v5047_v16 = vpop.permute.xlu1 %970  ;;  %4069 = vtanh.f32 %v1198_v8  ;;  %v1646_v55 = vsel %vm7511_vm0, %v1451_v19, 0.0  ;;  %v5099_v8 = vpop.permute.xlu0 %923  ;;  %v1454_v48 = vmul.f32 %v4056_v39, %v4711_v42  ;;  %v7568_v19 = vld [vmem:[#allocation22_spill] sm:$0xff]  ;;  %v402_v39 = vadd.f32 %v5061_v12, %v183_v51  ;;  %v7571_v51 = vld [vmem:[#allocation23_spill] sm:$0xff] }
 0x160   :  { %4071 = vtanh.f32 %v1199_v29  ;;  %7566 = vst [vmem:[#allocation16_spill] sm:$0xff] %v5099_v8  ;;  %v1649_v20 = vsel %vm7511_vm0, %v1452_v62, 0.0  ;;  %v1453_v29 = vmul.f32 %v4054_v9, %v4711_v42  ;;  %v184_v9 = vld [vmem:[%s7479_s2 + $0x198] sm:$0xff] }
 0x161   :  { %1635 = vadd.xlane.f32.xlu0 %v1634_v56  ;;  %1638 = vadd.xlane.f32.xlu1 %v1637_v25  ;;  %v1074_v56 = vmul.f32 %v4618_v2, %v7564_v14  ;;  %v1073_v25 = vmul.f32 %v4618_v2, %v7565_v21  ;;  %v4058_v14 = vpop.eup %4057  ;;  %4073 = vtanh.f32 %v1200_v3  ;;  %v401_v21 = vadd.f32 %v5061_v12, %v182_v15 }
 0x162   :  { %v1652_v3 = vsel %vm7511_vm0, %v1453_v29, 0.0 }
 0x163   :  { %v5076_v4 = vpop.permute.xlu1 %978  ;;  %v1201_v46 = vadd.f32 %v1073_v25, %v398_v33  ;;  %v4060_v33 = vpop.eup %4059  ;;  %v1202_v34 = vadd.f32 %v1074_v56, %v399_v1  ;;  %v185_v56 = vld [vmem:[%s7479_s2 + $0x1a0] sm:$0xff]  ;;  %v1655_v1 = vsel %vm7511_vm0, %v1454_v48, 0.0 }
 0x164   :  { %v404_v48 = vadd.f32 %v5061_v12, %v185_v56 }
 0x165   :  { %1641 = vadd.xlane.f32.xlu0 %v1640_v53  ;;  %1644 = vadd.xlane.f32.xlu1 %v1643_v58  ;;  %v1076_v53 = vmul.f32 %v4618_v2, %v7567_v43  ;;  %v1075_v58 = vmul.f32 %v4618_v2, %v7568_v19  ;;  %4075 = vtanh.f32 %v1201_v46  ;;  %v4062_v19 = vpop.eup %4061  ;;  %v1456_v46 = vmul.f32 %v4060_v33, %v4711_v42  ;;  %v7573_v33 = vld [vmem:[#allocation26_spill] sm:$0xff] }
 0x166   :  { %v4064_v15 = vpop.eup %4063  ;;  %4077 = vtanh.f32 %v1202_v34 }
 0x167   :  { %v987_v45 = vpop.permute.xlu1 %986  ;;  %v1203_v62 = vadd.f32 %v1075_v58, %v400_v40  ;;  %v1455_v40 = vmul.f32 %v4058_v14, %v4711_v42  ;;  %v186_v14 = vld [vmem:[%s7479_s2 + $0x1a8] sm:$0xff]  ;;  %v1079_v58 = vmul.f32 %v4618_v2, %v7573_v33  ;;  %v4066_v34 = vpop.eup %4065 }
 0x168   :  { %v1146_v10 = vmul.f32 %v4618_v2, %v987_v45  ;;  %v7570_v45 = vld [vmem:[#allocation24_spill] sm:$0xff]  ;;  %v405_v56 = vadd.f32 %v5061_v12, %v186_v14  ;;  %v1459_v14 = vmul.f32 %v4066_v34, %v4711_v42 }
 0x169   :  { %1647 = vadd.xlane.f32.xlu0 %v1646_v55  ;;  %1650 = vadd.xlane.f32.xlu1 %v1649_v20  ;;  %v1077_v43 = vmul.f32 %v4618_v2, %v7570_v45  ;;  %v403_v55 = vadd.f32 %v5061_v12, %v184_v9  ;;  %v5128_v20 = vpop.permute.xlu0 %931  ;;  %4079 = vtanh.f32 %v1203_v62  ;;  %v1661_v9 = vsel %vm7511_vm0, %v1456_v46, 0.0 }
 0x16a   :  { %v5110_v25 = vadd.f32 %v1146_v10, %v471_v17  ;;  %v1204_v17 = vadd.f32 %v1076_v53, %v401_v21  ;;  %v1078_v10 = vmul.f32 %v4618_v2, %v7571_v51  ;;  %7572 = vst [vmem:[#allocation18_spill] sm:$0xff] %v5128_v20  ;;  %v187_v53 = vld [vmem:[%s7479_s2 + $0x1b0] sm:$0xff]  ;;  %v1658_v21 = vsel %vm7511_vm0, %v1455_v40, 0.0  ;;  %v4068_v45 = vpop.eup %4067  ;;  %v188_v40 = vld [vmem:[%s7479_s2 + $0x1b8] sm:$0xff] }
 0x16b   :  { %v1205_v29 = vadd.f32 %v1077_v43, %v402_v39  ;;  %v1457_v62 = vmul.f32 %v4064_v15, %v4711_v42  ;;  %v1458_v39 = vmul.f32 %v4062_v19, %v4711_v42  ;;  %v1207_v33 = vadd.f32 %v1079_v58, %v404_v48  ;;  %v7575_v19 = vld [vmem:[#allocation28_spill] sm:$0xff]  ;;  %v7589_v20 = vld [vmem:[#allocation38_spill] sm:$0xff] }
 0x16c   :  { %7569 = vst [vmem:[#allocation17_spill] sm:$0xff] %v5110_v25  ;;  %4081 = vtanh.f32 %v1204_v17  ;;  %v1206_v43 = vadd.f32 %v1078_v10, %v403_v55  ;;  %v4070_v51 = vpop.eup %4069  ;;  %v406_v46 = vadd.f32 %v5061_v12, %v187_v53  ;;  %v1081_v15 = vmul.f32 %v4618_v2, %v7575_v19  ;;  %v189_v17 = vld [vmem:[%s7479_s2 + $0x1c0] sm:$0xff] }
 0x16d   :  { %1653 = vadd.xlane.f32.xlu0 %v1652_v3  ;;  %1656 = vadd.xlane.f32.xlu1 %v1655_v1  ;;  %v7574_v3 = vld [vmem:[#allocation25_spill] sm:$0xff]  ;;  %4083 = vtanh.f32 %v1205_v29  ;;  %v5155_v55 = vpop.permute.xlu0 %939  ;;  %v1664_v10 = vsel %vm7511_vm0, %v1457_v62, 0.0  ;;  %v1667_v29 = vsel %vm7511_vm0, %v1458_v39, 0.0  ;;  %v1460_v48 = vmul.f32 %v4068_v45, %v4711_v42  ;;  %v190_v62 = vld [vmem:[%s7479_s2 + $0x1c8] sm:$0xff]  ;;  %v7578_v39 = vld [vmem:[#allocation30_spill] sm:$0xff] }
 0x16e   :  { %v1080_v1 = vmul.f32 %v4618_v2, %v7574_v3  ;;  %7576 = vst [vmem:[#allocation19_spill] sm:$0xff] %v5155_v55  ;;  %4085 = vtanh.f32 %v1206_v43  ;;  %v407_v53 = vadd.f32 %v5061_v12, %v188_v40  ;;  %v1209_v41 = vadd.f32 %v1081_v15, %v406_v46  ;;  %v191_v43 = vld [vmem:[%s7479_s2 + $0x1d0] sm:$0xff]  ;;  %v7579_v46 = vld [vmem:[#allocation20_spill] sm:$0xff] }
 0x16f   :  { %4087 = vtanh.f32 %v1207_v33  ;;  %v408_v34 = vadd.f32 %v5061_v12, %v189_v17  ;;  %v1083_v45 = vmul.f32 %v4618_v2, %v7578_v39  ;;  %v1461_v33 = vmul.f32 %v4070_v51, %v4711_v42  ;;  %v7580_v51 = vld [vmem:[#allocation29_spill] sm:$0xff] }
 0x170   :  { %v1208_v58 = vadd.f32 %v1080_v1, %v405_v56  ;;  %v1670_v56 = vsel %vm7511_vm0, %v1459_v14, 0.0  ;;  %v1673_v1 = vsel %vm7511_vm0, %v1460_v48, 0.0  ;;  %v309_v15 = vcombine.high %v7579_v46, %v7579_v46  ;;  %v5187_v14 = vld [vmem:[%s7485_s8] ss:$0 sm:$0xff]  ;;  %v192_v48 = vld [vmem:[%s7479_s2 + $0x1d8] sm:$0xff] }
 0x171   :  { %1659 = vadd.xlane.f32.xlu0 %v1658_v21  ;;  %1662 = vadd.xlane.f32.xlu1 %v1661_v9  ;;  %v4072_v21 = vpop.eup %4071  ;;  %v7577_v9 = vld [vmem:[#allocation27_spill] sm:$0xff]  ;;  %v5181_v17 = vrot.slane %v7579_v46, %v4406_v7  ;;  %v1088_v60 = vmul.f32 %v5187_v14, %v7585_v36  ;;  %v1093_v37 = vmul.f32 %v5187_v14, %v7591_v50 }
 0x172   :  { %v1082_v3 = vmul.f32 %v4618_v2, %v7577_v9  ;;  %v4074_v19 = vpop.eup %4073  ;;  %v1462_v40 = vmul.f32 %v4072_v21, %v4711_v42  ;;  %4089 = vtanh.f32 %v1208_v58  ;;  %v1084_v21 = vmul.f32 %v5187_v14, %v7580_v51  ;;  %v5194_v9 = vpop.permute.xlu0 %947  ;;  %v193_v46 = vld [vmem:[%s7479_s2 + $0x1e0] sm:$0xff] }
 0x173   :  { %7581 = vst [vmem:[#allocation21_spill] sm:$0xff] %v5194_v9  ;;  %4091 = vtanh.f32 %v1209_v41  ;;  %v1211_v58 = vadd.f32 %v1083_v45, %v408_v34  ;;  %v1676_v51 = vsel %vm7511_vm0, %v1461_v33, 0.0  ;;  %v1463_v41 = vmul.f32 %v4074_v19, %v4711_v42  ;;  %v7583_v33 = vld [vmem:[#allocation31_spill] sm:$0xff] }
 0x174   :  { %v1210_v2 = vadd.f32 %v1082_v3, %v407_v53  ;;  %v410_v53 = vadd.f32 %v5061_v12, %v191_v43  ;;  %v7582_v3 = vld [vmem:[#allocation32_spill] sm:$0xff]  ;;  %v1679_v9 = vsel %vm7511_vm0, %v1462_v40, 0.0  ;;  %v5211_v45 = vrot.slane %v4553_v13, %v4406_v7  ;;  %v195_v13 = vld [vmem:[%s7479_s2 + $0x1f0] sm:$0xff]  ;;  %v201_v36 = vld [vmem:[%s7479_s2 + $0x220] sm:$0xff] }
 0x175   :  { %1665 = vadd.xlane.f32.xlu0 %v1664_v10  ;;  %1668 = vadd.xlane.f32.xlu1 %v1667_v29  ;;  %v4076_v10 = vpop.eup %4075  ;;  %v409_v29 = vadd.f32 %v5061_v12, %v190_v62  ;;  %v1085_v62 = vmul.f32 %v5187_v14, %v7582_v3  ;;  %v5214_v43 = vrot.slane %v309_v15, %v4406_v7  ;;  %v198_v15 = vld [vmem:[%s7479_s2 + $0x208] sm:$0xff]  ;;  %v1682_v23 = vsel %vm7511_vm0, %v1463_v41, 0.0 }
 0x176   :  { %v4078_v39 = vpop.eup %4077  ;;  %v1464_v34 = vmul.f32 %v4076_v10, %v4711_v42  ;;  %v411_v3 = vadd.f32 %v5061_v12, %v192_v48  ;;  %4093 = vtanh.f32 %v1210_v2  ;;  %v1086_v40 = vmul.f32 %v5187_v14, %v7583_v33  ;;  %v196_v10 = vld [vmem:[%s7479_s2 + $0x1f8] sm:$0xff]  ;;  %v5238_v7 = vpop.permute.xlu0 %958 }
 0x177   :  { %v1212_v63 = vadd.f32 %v1084_v21, %v409_v29  ;;  %4095 = vtanh.f32 %v1211_v58  ;;  %v1213_v2 = vadd.f32 %v1085_v62, %v410_v53  ;;  %v412_v29 = vadd.f32 %v5061_v12, %v193_v46  ;;  %v7584_v21 = vld [vmem:[#allocation34_spill] sm:$0xff] }
 0x178   :  { %v200_v33 = vld [vmem:[%s7479_s2 + $0x218] sm:$0xff]  ;;  %v1685_v58 = vsel %vm7511_vm0, %v1464_v34, 0.0  ;;  %v1465_v53 = vmul.f32 %v4078_v39, %v4711_v42  ;;  %v415_v46 = vadd.f32 %v5061_v12, %v196_v10  ;;  %v417_v47 = vadd.f32 %v5181_v17, %v198_v15  ;;  %v199_v39 = vld [vmem:[%s7479_s2 + $0x210] sm:$0xff]  ;;  %v5270_v15 = vld [vmem:[%s7484_s7] ss:$0 sm:$0xff] }
 0x179   :  { %1671 = vadd.xlane.f32.xlu0 %v1670_v56  ;;  %1674 = vadd.xlane.f32.xlu1 %v1673_v1  ;;  %v194_v56 = vld [vmem:[%s7479_s2 + $0x1e8] sm:$0xff]  ;;  %v4080_v1 = vpop.eup %4079  ;;  %4097 = vtanh.f32 %v1212_v63  ;;  %v1214_v55 = vadd.f32 %v1086_v40, %v411_v3  ;;  %v419_v34 = vadd.f32 %v5181_v17, %v200_v33  ;;  %v204_v40 = vld [vmem:[%s7479_s2 + $0x238] sm:$0xff]  ;;  %v418_v33 = vadd.f32 %v5181_v17, %v199_v39 }
 0x17a   :  { %v413_v19 = vadd.f32 %v5061_v12, %v194_v56  ;;  %v4082_v48 = vpop.eup %4081  ;;  %v197_v56 = vld [vmem:[%s7479_s2 + $0x200] sm:$0xff]  ;;  %v1466_v62 = vmul.f32 %v4080_v1, %v4711_v42  ;;  %v202_v42 = vld [vmem:[%s7479_s2 + $0x228] sm:$0xff]  ;;  %4099 = vtanh.f32 %v1213_v2  ;;  %v1688_v10 = vsel %vm7511_vm0, %v1465_v53, 0.0 }
 0x17b   :  { %v416_v41 = vadd.f32 %v5181_v17, %v197_v56  ;;  %v1467_v2 = vmul.f32 %v5270_v15, %v4082_v48  ;;  %4101 = vtanh.f32 %v1214_v55  ;;  %v420_v38 = vadd.f32 %v5181_v17, %v201_v36  ;;  %v203_v48 = vld [vmem:[%s7479_s2 + $0x230] sm:$0xff]  ;;  %v205_v36 = vld [vmem:[%s7479_s2 + $0x240] sm:$0xff] }
 0x17c   :  { %v1216_v53 = vadd.f32 %v1088_v60, %v413_v19  ;;  %v423_v55 = vadd.f32 %v5181_v17, %v204_v40  ;;  %v206_v60 = vld [vmem:[%s7479_s2 + $0x248] sm:$0xff] }
 0x17d   :  { %1677 = vadd.xlane.f32.xlu0 %v1676_v51  ;;  %1680 = vadd.xlane.f32.xlu1 %v1679_v9  ;;  %v1087_v9 = vmul.f32 %v5187_v14, %v7584_v21  ;;  %v4084_v51 = vpop.eup %4083  ;;  %v414_v21 = vadd.f32 %v5061_v12, %v195_v13  ;;  %v1691_v13 = vsel %vm7511_vm0, %v1466_v62, 0.0  ;;  %v7588_v62 = vld [vmem:[#allocation37_spill] sm:$0xff] }
 0x17e   :  { %v4086_v12 = vpop.eup %4085 }
 0x17f   :  { %v1215_v1 = vadd.f32 %v1087_v9, %v412_v29  ;;  %v4088_v3 = vpop.eup %4087  ;;  %v1468_v29 = vmul.f32 %v5270_v15, %v4084_v51  ;;  %v7587_v9 = vld [vmem:[#allocation35_spill] sm:$0xff]  ;;  %v5284_v51 = vpop.permute.xlu0 %966 }
 0x180   :  { %v1090_v56 = vmul.f32 %v5187_v14, %v7587_v9  ;;  %v4090_v9 = vpop.eup %4089 }
 0x181   :  { %1683 = vadd.xlane.f32.xlu0 %v1682_v23  ;;  %1686 = vadd.xlane.f32.xlu1 %v1685_v58  ;;  %v7586_v23 = vld [vmem:[#allocation36_spill] sm:$0xff]  ;;  %v421_v58 = vadd.f32 %v5181_v17, %v202_v42  ;;  %4103 = vtanh.f32 %v1215_v1  ;;  %v1091_v42 = vmul.f32 %v5187_v14, %v7589_v20  ;;  %v4092_v19 = vpop.eup %4091  ;;  %v1470_v1 = vmul.f32 %v5270_v15, %v4088_v3 }
 0x182   :  { %v1089_v63 = vmul.f32 %v5187_v14, %v7586_v23  ;;  %v1092_v23 = vmul.f32 %v5187_v14, %v7588_v62  ;;  %v1218_v20 = vadd.f32 %v1090_v56, %v415_v46  ;;  %v422_v62 = vadd.f32 %v5181_v17, %v203_v48 }
 0x183   :  { %4105 = vtanh.f32 %v1216_v53  ;;  %v4094_v46 = vpop.eup %4093  ;;  %v1219_v3 = vadd.f32 %v1091_v42, %v416_v41  ;;  %v5313_v48 = vadd.f32 %v5181_v17, %v205_v36  ;;  %v210_v53 = vld [vmem:[%s7479_s2 + $0x268] sm:$0xff]  ;;  %v1703_v41 = vsel %vm7511_vm0, %v1470_v1, 0.0 }
 0x184   :  { %v1217_v39 = vadd.f32 %v1089_v63, %v414_v21  ;;  %v1469_v21 = vmul.f32 %v5270_v15, %v4086_v12  ;;  %v7590_v63 = vld [vmem:[#allocation39_spill] sm:$0xff]  ;;  %v1220_v25 = vadd.f32 %v1092_v23, %v417_v47  ;;  %v208_v12 = vld [vmem:[%s7479_s2 + $0x258] sm:$0xff]  ;;  %v207_v47 = vld [vmem:[%s7479_s2 + $0x250] sm:$0xff]  ;;  %v4096_v50 = vpop.eup %4095  ;;  %v5321_v23 = vpop.permute.xlu0 %974  ;;  %v1471_v42 = vmul.f32 %v5270_v15, %v4090_v9 }
 0x185   :  { %1689 = vadd.xlane.f32.xlu0 %v1688_v10  ;;  %1692 = vadd.xlane.f32.xlu1 %v1691_v13  ;;  %v1694_v10 = vsel %vm7511_vm0, %v1467_v2, 0.0  ;;  %v1697_v13 = vsel %vm7511_vm0, %v1468_v29, 0.0  ;;  %v1094_v40 = vmul.f32 %v5187_v14, %v7590_v63  ;;  %v5305_v2 = vadd.f32 %v5181_v17, %v206_v60  ;;  %v7592_v29 = vld [vmem:[#allocation41_spill] sm:$0xff]  ;;  %v209_v9 = vld [vmem:[%s7479_s2 + $0x260] sm:$0xff] }
 0x186   :  { %4107 = vtanh.f32 %v1217_v39  ;;  %v1096_v56 = vmul.f32 %v5187_v14, %v7592_v29  ;;  %v1700_v39 = vsel %vm7511_vm0, %v1469_v21, 0.0  ;;  %v1472_v60 = vmul.f32 %v5270_v15, %v4092_v19 }
 0x187   :  { %4109 = vtanh.f32 %v1218_v20  ;;  %v1222_v36 = vadd.f32 %v1094_v40, %v419_v34  ;;  %v427_v63 = vadd.f32 %v5181_v17, %v208_v12  ;;  %v1221_v29 = vadd.f32 %v1093_v37, %v418_v33  ;;  %v4098_v34 = vpop.eup %4097  ;;  %v7595_v20 = vld [vmem:[#allocation44_spill] sm:$0xff] }
 0x188   :  { %4111 = vtanh.f32 %v1220_v25  ;;  %v1098_v21 = vmul.f32 %v5187_v14, %v7594_v18  ;;  %v5333_v1 = vadd.f32 %v5181_v17, %v207_v47  ;;  %v1224_v19 = vadd.f32 %v1096_v56, %v421_v58  ;;  %v212_v18 = vld [vmem:[%s7479_s2 + $0x278] sm:$0xff]  ;;  %v4100_v37 = vpop.eup %4099  ;;  %v211_v25 = vld [vmem:[%s7479_s2 + $0x270] sm:$0xff] }
 0x189   :  { %1695 = vadd.xlane.f32.xlu0 %v1694_v10  ;;  %1698 = vadd.xlane.f32.xlu1 %v1697_v13  ;;  %v7593_v10 = vld [vmem:[#allocation42_spill] sm:$0xff]  ;;  %4113 = vtanh.f32 %v1219_v3  ;;  %v1097_v40 = vmul.f32 %v5187_v14, %v7595_v20  ;;  %v5341_v12 = vadd.f32 %v5181_v17, %v210_v53  ;;  %v1706_v33 = vsel %vm7511_vm0, %v1471_v42, 0.0  ;;  %v7596_v53 = vld [vmem:[#allocation45_spill] sm:$0xff] }
 0x18a   :  { %v1095_v13 = vmul.f32 %v5187_v14, %v7593_v10  ;;  %v1709_v3 = vsel %vm7511_vm0, %v1472_v60, 0.0  ;;  %v1473_v58 = vmul.f32 %v5270_v15, %v4094_v46  ;;  %v1474_v56 = vmul.f32 %v5270_v15, %v4096_v50  ;;  %v7597_v20 = vld [vmem:[#allocation46_spill] sm:$0xff]  ;;  %v214_v46 = vld [vmem:[%s7479_s2 + $0x288] sm:$0xff]  ;;  %v4102_v50 = vpop.eup %4101 }
 0x18b   :  { %4115 = vtanh.f32 %v1222_v36  ;;  %v1226_v10 = vadd.f32 %v1098_v21, %v423_v55  ;;  %v1099_v42 = vmul.f32 %v5187_v14, %v7597_v20  ;;  %v5359_v60 = vadd.f32 %v5181_v17, %v212_v18 }
 0x18c   :  { %v1223_v47 = vadd.f32 %v1095_v13, %v420_v38  ;;  %4117 = vtanh.f32 %v1221_v29  ;;  %v5364_v38 = vpop.permute.xlu0 %982  ;;  %v1225_v36 = vadd.f32 %v1097_v40, %v422_v62  ;;  %v1102_v13 = vmul.f32 %v5187_v14, %v4650_v57  ;;  %v213_v29 = vld [vmem:[%s7479_s2 + $0x280] sm:$0xff] }
 0x18d   :  { %1701 = vadd.xlane.f32.xlu0 %v1700_v39  ;;  %1704 = vadd.xlane.f32.xlu1 %v1703_v41  ;;  %v1100_v39 = vmul.f32 %v5187_v14, %v7596_v53  ;;  %v428_v41 = vadd.f32 %v5181_v17, %v209_v9  ;;  %4119 = vtanh.f32 %v1224_v19  ;;  %v5369_v55 = vadd.f32 %v5181_v17, %v211_v25  ;;  %v216_v9 = vld [vmem:[%s7479_s2 + $0x298] sm:$0xff]  ;;  %v7598_v40 = vld [vmem:[#allocation47_spill] sm:$0xff] }
 0x18e   :  { %v4104_v21 = vpop.eup %4103  ;;  %v1712_v18 = vsel %vm7511_vm0, %v1473_v58, 0.0  ;;  %v1715_v19 = vsel %vm7511_vm0, %v1474_v56, 0.0  ;;  %v1475_v62 = vmul.f32 %v5270_v15, %v4098_v34  ;;  %v1476_v57 = vmul.f32 %v5270_v15, %v4100_v37 }
 0x18f   :  { %4121 = vtanh.f32 %v1223_v47  ;;  %v1228_v17 = vadd.f32 %v1100_v39, %v5305_v2  ;;  %v1101_v25 = vmul.f32 %v5187_v14, %v7598_v40  ;;  %v1104_v58 = vmul.f32 %v5187_v14, %v4665_v5  ;;  %v215_v2 = vld [vmem:[%s7479_s2 + $0x290] sm:$0xff]  ;;  %v218_v5 = vld [vmem:[%s7479_s2 + $0x2a8] sm:$0xff]  ;;  %v217_v39 = vld [vmem:[%s7479_s2 + $0x2a0] sm:$0xff] }
 0x190   :  { %4123 = vtanh.f32 %v1226_v10  ;;  %v5389_v34 = vadd.f32 %v5211_v45, %v213_v29  ;;  %v4106_v37 = vpop.eup %4105  ;;  %v1230_v56 = vadd.f32 %v1102_v13, %v427_v63  ;;  %v1103_v47 = vmul.f32 %v5187_v14, %v4668_v11  ;;  %v5405_v10 = vpop.permute.xlu0 %990 }
 0x191   :  { %1707 = vadd.xlane.f32.xlu0 %v1706_v33  ;;  %1710 = vadd.xlane.f32.xlu1 %v1709_v3  ;;  %v433_v33 = vadd.f32 %v5211_v45, %v214_v46  ;;  %v1227_v3 = vadd.f32 %v1099_v42, %v5313_v48  ;;  %4125 = vtanh.f32 %v1225_v36  ;;  %v5397_v53 = vadd.f32 %v5211_v45, %v216_v9 }
 0x192   :  { %7599 = vst [vmem:[#allocation22_spill] sm:$0xff] %v5405_v10  ;;  %v1718_v20 = vsel %vm7511_vm0, %v1475_v62, 0.0  ;;  %v1721_v63 = vsel %vm7511_vm0, %v1476_v57, 0.0  ;;  %v1477_v11 = vmul.f32 %v5270_v15, %v4102_v50  ;;  %v1478_v42 = vmul.f32 %v5270_v15, %v4104_v21  ;;  %v7601_v62 = vld [vmem:[#allocation49_spill] sm:$0xff] }
 0x193   :  { %v4108_v48 = vpop.eup %4107  ;;  %4127 = vtanh.f32 %v1228_v17  ;;  %v1229_v46 = vadd.f32 %v1101_v25, %v5333_v1  ;;  %v1106_v36 = vmul.f32 %v5187_v14, %v4681_v6  ;;  %v434_v13 = vadd.f32 %v5211_v45, %v215_v2  ;;  %v220_v1 = vld [vmem:[%s7479_s2 + $0x2b8] sm:$0xff]  ;;  %v222_v25 = vld [vmem:[%s7479_s2 + $0x2c8] sm:$0xff] }
 0x194   :  { %v4110_v29 = vpop.eup %4109  ;;  %4129 = vtanh.f32 %v1227_v3  ;;  %v1232_v9 = vadd.f32 %v1104_v58, %v5341_v12  ;;  %v5419_v50 = vadd.f32 %v5211_v45, %v218_v5  ;;  %v1231_v6 = vadd.f32 %v1103_v47, %v428_v41  ;;  %v219_v12 = vld [vmem:[%s7479_s2 + $0x2b0] sm:$0xff]  ;;  %v5437_v3 = vpop.permute.xlu1 %994  ;;  %v7603_v5 = vld [vmem:[#allocation51_spill] sm:$0xff] }
 0x195   :  { %1713 = vadd.xlane.f32.xlu0 %v1712_v18  ;;  %1716 = vadd.xlane.f32.xlu1 %v1715_v19  ;;  %v7600_v18 = vld [vmem:[#allocation48_spill] sm:$0xff]  ;;  %v5424_v21 = vpop.eup %4111  ;;  %4131 = vtanh.f32 %v1230_v56  ;;  %v1108_v57 = vmul.f32 %v5187_v14, %v7601_v62  ;;  %v5429_v17 = vadd.f32 %v5211_v45, %v217_v39  ;;  %7602 = vst [vmem:[#allocation24_spill] sm:$0xff] %v5437_v3  ;;  %v1724_v58 = vsel %vm7511_vm0, %v1477_v11, 0.0  ;;  %v232_v62 = vld [vmem:[%s7479_s2 + $0x318] sm:$0xff] }
 0x196   :  { %v1105_v19 = vmul.f32 %v5187_v14, %v7600_v18  ;;  %v4114_v40 = vpop.eup %4113  ;;  %v1727_v41 = vsel %vm7511_vm0, %v1478_v42, 0.0  ;;  %v1479_v2 = vmul.f32 %v5270_v15, %v4106_v37  ;;  %v1480_v56 = vmul.f32 %v5270_v15, %v4108_v48  ;;  %v7604_v42 = vld [vmem:[#allocation50_spill] sm:$0xff] }
 0x197   :  { %4133 = vtanh.f32 %v1229_v46  ;;  %v1234_v47 = vadd.f32 %v1106_v36, %v5359_v60  ;;  %v1107_v39 = vmul.f32 %v5187_v14, %v7603_v5  ;;  %v1110_v37 = vmul.f32 %v5187_v14, %v7604_v42  ;;  %v230_v60 = vld [vmem:[%s7479_s2 + $0x308] sm:$0xff]  ;;  %v5460_v46 = vpop.permute.xlu0 %998 }
 0x198   :  { %4135 = vtanh.f32 %v1232_v9  ;;  %v1233_v11 = vadd.f32 %v1105_v19, %v5369_v55  ;;  %v5455_v48 = vadd.f32 %v5211_v45, %v219_v12  ;;  %7605 = vst [vmem:[#allocation23_spill] sm:$0xff] %v5460_v46  ;;  %v1236_v18 = vadd.f32 %v1108_v57, %v433_v33  ;;  %v229_v19 = vld [vmem:[%s7479_s2 + $0x300] sm:$0xff] }
 0x199   :  { %1719 = vadd.xlane.f32.xlu0 %v1718_v20  ;;  %1722 = vadd.xlane.f32.xlu1 %v1721_v63  ;;  %v5447_v20 = vadd.f32 %v5211_v45, %v220_v1  ;;  %v5449_v63 = vpop.eup %4115  ;;  %4137 = vtanh.f32 %v1231_v6  ;;  %v1109_v9 = vmul.f32 %v5187_v14, %v4759_v27  ;;  %v5465_v55 = vadd.f32 %v5211_v45, %v222_v25  ;;  %v7607_v25 = vld [vmem:[#allocation52_spill] sm:$0xff] }
 0x19a   :  { %v4118_v36 = vpop.eup %4117  ;;  %v1730_v12 = vsel %vm7511_vm0, %v1479_v2, 0.0  ;;  %v1733_v33 = vsel %vm7511_vm0, %v1480_v56, 0.0  ;;  %v1481_v6 = vmul.f32 %v5270_v15, %v4110_v29  ;;  %v1482_v27 = vmul.f32 %v5270_v15, %v4114_v40  ;;  %v5490_v40 = vpop.permute.xlu1 %1002 }
 0x19b   :  { %7606 = vst [vmem:[#allocation26_spill] sm:$0xff] %v5465_v55  ;;  %v5470_v1 = vpop.eup %4119  ;;  %4139 = vtanh.f32 %v1234_v47  ;;  %v1235_v57 = vadd.f32 %v1107_v39, %v5389_v34  ;;  %v1238_v2 = vadd.f32 %v1110_v37, %v5397_v53  ;;  %v1111_v56 = vmul.f32 %v5187_v14, %v4790_v22  ;;  %v231_v34 = vld [vmem:[%s7479_s2 + $0x310] sm:$0xff]  ;;  %7608 = vst [vmem:[#allocation25_spill] sm:$0xff] %v5490_v40  ;;  %v234_v22 = vld [vmem:[%s7479_s2 + $0x328] sm:$0xff] }
 0x19c   :  { %v4122_v5 = vpop.eup %4121  ;;  %4141 = vtanh.f32 %v1233_v11  ;;  %v448_v29 = vadd.f32 %v5214_v43, %v229_v19  ;;  %v1237_v39 = vadd.f32 %v1109_v9, %v434_v13  ;;  %v1124_v11 = vmul.f32 %v5187_v14, %v4860_v26  ;;  %v233_v37 = vld [vmem:[%s7479_s2 + $0x320] sm:$0xff] }
 0x19d   :  { %1725 = vadd.xlane.f32.xlu0 %v1724_v58  ;;  %1728 = vadd.xlane.f32.xlu1 %v1727_v41  ;;  %v1112_v58 = vmul.f32 %v5187_v14, %v7607_v25  ;;  %v449_v41 = vadd.f32 %v5214_v43, %v230_v60  ;;  %v5492_v47 = vpop.eup %4123  ;;  %4143 = vtanh.f32 %v1236_v18  ;;  %v451_v53 = vadd.f32 %v5214_v43, %v232_v62  ;;  %v235_v60 = vld [vmem:[%s7479_s2 + $0x330] sm:$0xff]  ;;  %v5506_v18 = vpop.permute.xlu0 %1006 }
 0x19e   :  { %v4126_v42 = vpop.eup %4125  ;;  %7609 = vst [vmem:[#allocation28_spill] sm:$0xff] %v5506_v18  ;;  %v1736_v13 = vsel %vm7511_vm0, %v1481_v6, 0.0  ;;  %v1739_v26 = vsel %vm7511_vm0, %v1482_v27, 0.0  ;;  %v1483_v9 = vmul.f32 %v5270_v15, %v5424_v21  ;;  %v1484_v19 = vmul.f32 %v5270_v15, %v4118_v36 }
 0x19f   :  { %4145 = vtanh.f32 %v1235_v57  ;;  %v1240_v62 = vadd.f32 %v1112_v58, %v5419_v50  ;;  %v1239_v6 = vadd.f32 %v1111_v56, %v5429_v17  ;;  %v1126_v21 = vmul.f32 %v5187_v14, %v4879_v28  ;;  %v246_v17 = vld [vmem:[%s7479_s2 + $0x388] sm:$0xff] }
 0x1a0   :  { %v5517_v25 = vpop.eup %4127  ;;  %4147 = vtanh.f32 %v1238_v2  ;;  %v5523_v36 = vadd.f32 %v5214_v43, %v234_v22  ;;  %v1252_v50 = vadd.f32 %v1124_v11, %v449_v41  ;;  %v5529_v57 = vadd.f32 %v5214_v43, %v235_v60  ;;  %v5536_v2 = vpop.permute.xlu1 %1010 }
 0x1a1   :  { %1731 = vadd.xlane.f32.xlu0 %v1730_v12  ;;  %1734 = vadd.xlane.f32.xlu1 %v1733_v33  ;;  %v1123_v12 = vmul.f32 %v5187_v14, %v4964_v52  ;;  %v450_v33 = vadd.f32 %v5214_v43, %v231_v34  ;;  %v4130_v27 = vpop.eup %4129  ;;  %4149 = vtanh.f32 %v1237_v39  ;;  %v5526_v52 = vadd.f32 %v5214_v43, %v233_v37 }
 0x1a2   :  { %v5531_v58 = vpop.eup %4131  ;;  %7610 = vst [vmem:[#allocation27_spill] sm:$0xff] %v5536_v2  ;;  %v1742_v28 = vsel %vm7511_vm0, %v1483_v9, 0.0  ;;  %v1745_v56 = vsel %vm7511_vm0, %v1484_v19, 0.0  ;;  %v1485_v41 = vmul.f32 %v5270_v15, %v5449_v63  ;;  %v1486_v34 = vmul.f32 %v5270_v15, %v4122_v5 }
 0x1a3   :  { %4151 = vtanh.f32 %v1240_v62  ;;  %v1251_v39 = vadd.f32 %v1123_v12, %v448_v29  ;;  %v1125_v11 = vmul.f32 %v5187_v14, %v4997_v49  ;;  %v7611_v22 = vlaneseq  ;;  %v245_v49 = vld [vmem:[%s7479_s2 + $0x380] sm:$0xff]  ;;  %v248_v29 = vld [vmem:[%s7479_s2 + $0x398] sm:$0xff] }
 0x1a4   :  { %v5548_v60 = vpop.eup %4133  ;;  %4153 = vtanh.f32 %v1239_v6  ;;  %v5556_v63 = vmul.f32 %v5187_v14, %v4817_v32  ;;  %v1254_v5 = vadd.f32 %v1126_v21, %v451_v53  ;;  %v247_v32 = vld [vmem:[%s7479_s2 + $0x390] sm:$0xff]  ;;  %v1487_v53 = vmul.f32 %v5270_v15, %v5470_v1 }
 0x1a5   :  { %1737 = vadd.xlane.f32.xlu0 %v1736_v13  ;;  %1740 = vadd.xlane.f32.xlu1 %v1739_v26  ;;  %v5546_v37 = vand.u32 127, %v7611_v22  ;;  %v5552_v13 = vmul.f32 %v5187_v14, %v4762_v30  ;;  %v5564_v26 = vpop.permute.xlu0 %1014  ;;  %v5566_v9 = vpop.eup %4135  ;;  %4155 = vtanh.f32 %v1252_v50  ;;  %v465_v30 = vadd.f32 %v5064_v44, %v246_v17 }
 0x1a6   :  { %7612 = vst [vmem:[#allocation30_spill] sm:$0xff] %v5564_v26  ;;  %v5575_v62 = vpop.eup %4137  ;;  %v1748_v12 = vsel %vm7511_vm0, %v1485_v41, 0.0  ;;  %v1751_v6 = vsel %vm7511_vm0, %v1486_v34, 0.0  ;;  %v1488_v50 = vmul.f32 %v5270_v15, %v4126_v42  ;;  %4157 = vtanh.f32 %v1251_v39  ;;  %v5592_v34 = vpop.permute.xlu1 %1018 }
 0x1a7   :  { %v2068_v19 = vadd.s32 4294967288, %v5546_v37  ;;  %v2075_v21 = vadd.s32 4294967280, %v5546_v37  ;;  %v1253_v17 = vadd.f32 %v1125_v11, %v450_v33  ;;  %4159 = vtanh.f32 %v1254_v5  ;;  %7613 = vst [vmem:[#allocation20_spill] sm:$0xff] %v5592_v34 }
 0x1a8   :  { %v5587_v1 = vpop.eup %4139  ;;  %v5590_v41 = vadd.f32 %v5064_v44, %v247_v32  ;;  %v1489_v42 = vmul.f32 %v5270_v15, %v5492_v47  ;;  %v2082_v33 = vadd.s32 4294967272, %v5546_v37  ;;  %v5601_v11 = vmul.f32 %v5187_v14, %v4901_v31 }
 0x1a9   :  { %1743 = vadd.xlane.f32.xlu0 %v1742_v28  ;;  %1746 = vadd.xlane.f32.xlu1 %v1745_v56  ;;  %v5582_v28 = vadd.f32 %v5064_v44, %v245_v49  ;;  %v5585_v56 = vadd.f32 %v5064_v44, %v248_v29  ;;  %v5597_v39 = vpop.eup %4141  ;;  %v7614_v49 = vld [vmem:[#allocation14_spill] sm:$0xff]  ;;  %v2089_v32 = vadd.s32 4294967264, %v5546_v37  ;;  %v1754_v47 = vsel %vm7511_vm0, %v1487_v53, 0.0 }
 0x1aa   :  { %v5605_v5 = vsub.s32 %v5546_v37, %v7614_v49  ;;  %v5608_v29 = vsub.s32 %v2068_v19, %v7614_v49  ;;  %v1757_v34 = vsel %vm7511_vm0, %v1488_v50, 0.0  ;;  %v1490_v31 = vmul.f32 %v5270_v15, %v4130_v27 }
 0x1ab   :  { %4161 = vtanh.f32 %v1253_v17  ;;  %v5621_v26 = vmul.f32 %v5187_v14, %v5028_v59  ;;  %v1140_v19 = vmul.f32 %v5187_v14, %v5024_v54  ;;  %v1760_v18 = vsel %vm7511_vm0, %v1489_v42, 0.0 }
 0x1ac   :  { %v5629_v27 = vsub.s32 %v2082_v33, %v7614_v49  ;;  %v2096_v50 = vadd.s32 4294967256, %v5546_v37  ;;  %v1763_v33 = vsel %vm7511_vm0, %v1490_v31, 0.0  ;;  %v1491_v46 = vmul.f32 %v5270_v15, %v5517_v25 }
 0x1ad   :  { %1749 = vadd.xlane.f32.xlu0 %v1748_v12  ;;  %1752 = vadd.xlane.f32.xlu1 %v1751_v6  ;;  %v5611_v12 = vpop.eup %4143  ;;  %v5615_v6 = vsub.s32 %v2075_v21, %v7614_v49  ;;  %v1492_v3 = vmul.f32 %v5270_v15, %v5548_v60  ;;  %v2110_v60 = vadd.s32 4294967240, %v5546_v37 }
 0x1ae   :  { %v1549_v22 = vpop.xlane.xlu0 %1548  ;;  %v5625_v2 = vpop.eup %4145  ;;  %v5655_v25 = vsub.s32 %v2096_v50, %v7614_v49 }
 0x1af   :  { %v5632_v59 = vpop.eup %4147  ;;  %v2067_v17 = vrot.slane %v1549_v22, %v5605_v5  ;;  %v1268_v22 = vadd.f32 %v1140_v19, %v465_v30  ;;  %v1769_v50 = vsel %vm7511_vm0, %v1492_v3, 0.0 }
 0x1b0   :  { %v5640_v40 = vpop.eup %4149 }
 0x1b1   :  { %1755 = vadd.xlane.f32.xlu0 %v1754_v47  ;;  %1758 = vadd.xlane.f32.xlu1 %v1757_v34  ;;  %v5637_v34 = vsub.s32 %v2089_v32, %v7614_v49  ;;  %v2103_v47 = vadd.s32 4294967248, %v5546_v37  ;;  %v5651_v10 = vpop.eup %4151  ;;  %4163 = vtanh.f32 %v1268_v22 }
 0x1b2   :  { %v1555_v53 = vpop.xlane.xlu0 %1554  ;;  %v1552_v21 = vpop.xlane.xlu1 %1551 }
 0x1b3   :  { %v2072_v54 = vrot.slane %v1552_v21, %v5608_v29  ;;  %v2079_v42 = vrot.slane %v1555_v53, %v5615_v6  ;;  %v1139_v21 = vmul.f32 %v5187_v14, %v5238_v7  ;;  %v5658_v30 = vpop.eup %4153  ;;  %v5663_v19 = vsub.s32 %v2103_v47, %v7614_v49 }
 0x1b5   :  { %v2074_v32 = vsel %vm2073_vm2, %v2072_v54, %v2067_v17  ;;  %1761 = vadd.xlane.f32.xlu0 %v1760_v18  ;;  %1764 = vadd.xlane.f32.xlu1 %v1763_v33  ;;  %v2117_v17 = vadd.s32 4294967232, %v5546_v37  ;;  %v5666_v54 = vpop.eup %4155  ;;  %v1493_v33 = vmul.f32 %v5270_v15, %v5531_v58  ;;  %v5680_v58 = vsub.s32 %v2110_v60, %v7614_v49 }
 0x1b6   :  { %v2081_v53 = vsel %vm2080_vm3, %v2079_v42, %v2074_v32  ;;  %v1558_v31 = vpop.xlane.xlu0 %1557  ;;  %v1561_v8 = vpop.xlane.xlu1 %1560  ;;  %v1766_v42 = vsel %vm7511_vm0, %v1491_v46, 0.0  ;;  %v1494_v32 = vmul.f32 %v5270_v15, %v5575_v62  ;;  %v2124_v62 = vadd.s32 4294967224, %v5546_v37 }
 0x1b7   :  { %v2086_v7 = vrot.slane %v1558_v31, %v5629_v27  ;;  %v2093_v18 = vrot.slane %v1561_v8, %v5637_v34  ;;  %v1267_v8 = vadd.f32 %v1139_v21, %v5582_v28  ;;  %v5676_v31 = vpop.eup %4157  ;;  %v1495_v60 = vmul.f32 %v5270_v15, %v5566_v9 }
 0x1b8   :  { %v5683_v22 = vpop.eup %4159  ;;  %v5704_v9 = vsub.s32 %v2124_v62, %v7614_v49  ;;  %v1498_v62 = vmul.f32 %v5270_v15, %v5625_v2  ;;  %v2152_v2 = vadd.s32 4294967192, %v5546_v37 }
 0x1b9   :  { %v2088_v47 = vsel %vm2087_vm4, %v2086_v7, %v2081_v53  ;;  %1767 = vadd.xlane.f32.xlu0 %v1766_v42  ;;  %1770 = vadd.xlane.f32.xlu1 %v1769_v50  ;;  %v5688_v53 = vsub.s32 %v2117_v17, %v7614_v49  ;;  %v2131_v7 = vadd.s32 4294967216, %v5546_v37  ;;  %v1775_v42 = vsel %vm7511_vm0, %v1494_v32, 0.0  ;;  %v5700_v17 = vpop.eup %4161 }
 0x1ba   :  { %v2095_v46 = vsel %vm2094_vm5, %v2093_v18, %v2088_v47  ;;  %v1564_v55 = vpop.xlane.xlu0 %1563  ;;  %v1567_v3 = vpop.xlane.xlu1 %1566  ;;  %v1772_v18 = vsel %vm7511_vm0, %v1493_v33, 0.0  ;;  %v1496_v50 = vmul.f32 %v5270_v15, %v5597_v39  ;;  %4165 = vtanh.f32 %v1267_v8 }
 0x1bb   :  { %v2100_v28 = vrot.slane %v1564_v55, %v5655_v25  ;;  %v2107_v21 = vrot.slane %v1567_v3, %v5663_v19  ;;  %7615 = vst [vmem:[#allocation29_spill] sm:$0xff] %v5688_v53  ;;  %v1141_v55 = vmul.f32 %v5187_v14, %v5284_v51  ;;  %v2138_v39 = vadd.s32 4294967208, %v5546_v37 }
 0x1bd   :  { %v2102_v47 = vsel %vm2101_vm6, %v2100_v28, %v2095_v46  ;;  %1773 = vadd.xlane.f32.xlu0 %v1772_v18  ;;  %1776 = vadd.xlane.f32.xlu1 %v1775_v42  ;;  %v5710_v46 = vsub.s32 %v2131_v7, %v7614_v49  ;;  %v2145_v28 = vadd.s32 4294967200, %v5546_v37  ;;  %v1778_v18 = vsel %vm7511_vm0, %v1495_v60, 0.0 }
 0x1be   :  { %v2109_v33 = vsel %vm2108_vm7, %v2107_v21, %v2102_v47  ;;  %v1570_v32 = vpop.xlane.xlu0 %1569  ;;  %v1573_v3 = vpop.xlane.xlu1 %1572  ;;  %v1781_v21 = vsel %vm7511_vm0, %v1496_v50, 0.0  ;;  %v1497_v42 = vmul.f32 %v5270_v15, %v5587_v1  ;;  %v1142_v47 = vmul.f32 %v5187_v14, %v5047_v16 }
 0x1bf   :  { %v2114_v8 = vrot.slane %v1570_v32, %v5680_v58  ;;  %v2121_v51 = vrot.slane %v1573_v3, %v5688_v53  ;;  %v1269_v32 = vadd.f32 %v1141_v55, %v5590_v41  ;;  %v5725_v1 = vsub.s32 %v2138_v39, %v7614_v49 }
 0x1c0   :  { %v5731_v41 = vsub.s32 %v2145_v28, %v7614_v49  ;;  %v2159_v55 = vadd.s32 4294967184, %v5546_v37  ;;  %v1500_v39 = vmul.f32 %v5270_v15, %v5640_v40 }
 0x1c1   :  { %v2116_v7 = vsel %vm2115_vm8, %v2114_v8, %v2109_v33  ;;  %1779 = vadd.xlane.f32.xlu0 %v1778_v18  ;;  %1782 = vadd.xlane.f32.xlu1 %v1781_v21  ;;  %v1784_v33 = vsel %vm7511_vm0, %v1497_v42, 0.0  ;;  %v1787_v8 = vsel %vm7511_vm0, %v1498_v62, 0.0  ;;  %v1255_v18 = vadd.f32 %v5621_v26, %v5526_v52 }
 0x1c2   :  { %v2123_v60 = vsel %vm2122_vm9, %v2121_v51, %v2116_v7  ;;  %v1576_v3 = vpop.xlane.xlu0 %1575  ;;  %v1579_v50 = vpop.xlane.xlu1 %1578  ;;  %v1499_v51 = vmul.f32 %v5270_v15, %v5611_v12  ;;  %v1270_v21 = vadd.f32 %v1142_v47, %v5585_v56  ;;  %4167 = vtanh.f32 %v1269_v32 }
 0x1c3   :  { %v2128_v53 = vrot.slane %v1576_v3, %v5704_v9  ;;  %v2135_v16 = vrot.slane %v1579_v50, %v5710_v46  ;;  %v4164_v7 = vpop.eup %4163  ;;  %v5746_v3 = vsub.s32 %v2152_v2, %v7614_v49  ;;  %v5751_v26 = vsub.s32 %v2159_v55, %v7614_v49 }
 0x1c4   :  { %v2166_v56 = vadd.s32 4294967176, %v5546_v37  ;;  %v1793_v47 = vsel %vm7511_vm0, %v1500_v39, 0.0  ;;  %v1501_v32 = vmul.f32 %v5270_v15, %v5632_v59  ;;  %v1241_v50 = vadd.f32 %v5556_v63, %v5455_v48  ;;  %v249_v59 = vld [vmem:[%s7479_s2 + $0x3a0] sm:$0xff] }
 0x1c5   :  { %v2130_v28 = vsel %vm2129_vm10, %v2128_v53, %v2123_v60  ;;  %1785 = vadd.xlane.f32.xlu0 %v1784_v33  ;;  %1788 = vadd.xlane.f32.xlu1 %v1787_v8  ;;  %7616 = vst [vmem:[#allocation32_spill] sm:$0xff] %v5751_v26  ;;  %v1790_v53 = vsel %vm7511_vm0, %v1499_v51, 0.0  ;;  %v1514_v60 = vmul.f32 %v5270_v15, %v5676_v31  ;;  %4169 = vtanh.f32 %v1255_v18  ;;  %v250_v8 = vld [vmem:[%s7479_s2 + $0x3a8] sm:$0xff] }
 0x1c6   :  { %v2137_v42 = vsel %vm2136_vm11, %v2135_v16, %v2130_v28  ;;  %v1582_v62 = vpop.xlane.xlu0 %1581  ;;  %v1585_v12 = vpop.xlane.xlu1 %1584  ;;  %v1256_v2 = vadd.f32 %v5601_v11, %v5523_v36  ;;  %4171 = vtanh.f32 %v1270_v21  ;;  %v1143_v31 = vmul.f32 %v5187_v14, %v5321_v23 }
 0x1c7   :  { %v2142_v40 = vrot.slane %v1582_v62, %v5725_v1  ;;  %v2149_v52 = vrot.slane %v1585_v12, %v5731_v41  ;;  %v4166_v37 = vpop.eup %4165  ;;  %v5774_v33 = vsub.s32 %v2166_v56, %v7614_v49  ;;  %v1796_v51 = vsel %vm7511_vm0, %v1501_v32, 0.0  ;;  %v221_v62 = vld [vmem:[%s7479_s2 + $0x2c0] sm:$0xff] }
 0x1c8   :  { %v1835_v23 = vsel %vm7511_vm0, %v1514_v60, 0.0  ;;  %v1515_v39 = vmul.f32 %v5270_v15, %v5666_v54  ;;  %v1516_v18 = vmul.f32 %v5270_v15, %v5700_v17  ;;  %v1242_v21 = vadd.f32 %v5552_v13, %v5447_v20  ;;  %v236_v54 = vld [vmem:[%s7479_s2 + $0x338] sm:$0xff] }
 0x1c9   :  { %v2144_v16 = vsel %vm2143_vm12, %v2142_v40, %v2137_v42  ;;  %1791 = vadd.xlane.f32.xlu0 %v1790_v53  ;;  %1794 = vadd.xlane.f32.xlu1 %v1793_v47  ;;  %7617 = vst [vmem:[#allocation31_spill] sm:$0xff] %v5774_v33  ;;  %4173 = vtanh.f32 %v1241_v50  ;;  %v468_v28 = vadd.f32 %v5064_v44, %v249_v59 }
 0x1ca   :  { %v2151_v55 = vsel %vm2150_vm13, %v2149_v52, %v2144_v16  ;;  %v1588_v48 = vpop.xlane.xlu0 %1587  ;;  %v1591_v63 = vpop.xlane.xlu1 %1590  ;;  %v1129_v17 = vmul.f32 %v5187_v14, %v5067_v61  ;;  %v1144_v20 = vmul.f32 %v5187_v14, %v5076_v4  ;;  %4175 = vtanh.f32 %v1256_v2 }
 0x1cb   :  { %v2156_v36 = vrot.slane %v1588_v48, %v5746_v3  ;;  %v2163_v11 = vrot.slane %v1591_v63, %v5751_v26  ;;  %v469_v52 = vadd.f32 %v5064_v44, %v250_v8  ;;  %v1271_v56 = vadd.f32 %v1143_v31, %v468_v28 }
 0x1cc   :  { %v1838_v47 = vsel %vm7511_vm0, %v1515_v39, 0.0  ;;  %v1841_v32 = vsel %vm7511_vm0, %v1516_v18, 0.0  ;;  %v1530_v61 = vmul.f32 %v5270_v15, %v4166_v37  ;;  %v1531_v60 = vmul.f32 %v5270_v15, %v4164_v7  ;;  %v224_v37 = vld [vmem:[%s7479_s2 + $0x2d8] sm:$0xff]  ;;  %v5819_v7 = vld [vmem:[%s7485_s8] ss:$0 sm:$0xff] }
 0x1cd   :  { %v2158_v42 = vsel %vm7504_vm14, %v2156_v36, %v2151_v55  ;;  %1797 = vadd.xlane.f32.xlu0 %v1796_v51  ;;  %1836 = vadd.xlane.f32.xlu1 %v1835_v23  ;;  %4177 = vtanh.f32 %v1242_v21  ;;  %v440_v4 = vadd.f32 %v5211_v45, %v221_v62  ;;  %v455_v50 = vadd.f32 %v5214_v43, %v236_v54 }
 0x1ce   :  { %v2165_v13 = vsel %vm2164_vm15, %v2163_v11, %v2158_v42  ;;  %v1594_v12 = vpop.xlane.xlu0 %1593  ;;  %v1597_v40 = vpop.xlane.xlu1 %1596  ;;  %v1115_v59 = vmul.f32 %v5187_v14, %v4847_v24  ;;  %v1130_v31 = vmul.f32 %v5819_v7, %v4922_v35  ;;  %v1257_v55 = vadd.f32 %v1129_v17, %v5529_v57  ;;  %v237_v17 = vld [vmem:[%s7479_s2 + $0x340] sm:$0xff] }
 0x1cf   :  { %v2170_v53 = vrot.slane %v1594_v12, %v5774_v33  ;;  %v4168_v16 = vpop.eup %4167  ;;  %v1272_v48 = vadd.f32 %v1144_v20, %v469_v52  ;;  %4179 = vtanh.f32 %v1271_v56  ;;  %v2176_v24 = vrot.slane %v1597_v40, %v5605_v5 }
 0x1d0   :  { %v1883_v8 = vsel %vm7511_vm0, %v1530_v61, 0.0  ;;  %v1886_v51 = vsel %vm7511_vm0, %v1531_v60, 0.0  ;;  %v1502_v23 = vmul.f32 %v5270_v15, %v5658_v30  ;;  %v1517_v35 = vmul.f32 %v5270_v15, %v5683_v22  ;;  %v251_v30 = vld [vmem:[%s7479_s2 + $0x3b0] sm:$0xff] }
 0x1d1   :  { %v5809_v2 = vsel %vm2171_vm1, %v2170_v53, %v2165_v13  ;;  %1839 = vadd.xlane.f32.xlu0 %v1838_v47  ;;  %1842 = vadd.xlane.f32.xlu1 %v1841_v32  ;;  %v1116_v57 = vmul.f32 %v5819_v7, %v4783_v0  ;;  %v5836_v39 = vadd.f32 %v5211_v45, %v224_v37  ;;  %4181 = vtanh.f32 %v1257_v55  ;;  %v7618_v47 = vld [vmem:[#allocation26_spill] sm:$0xff] }
 0x1d2   :  { %v1600_v63 = vpop.xlane.xlu0 %1599  ;;  %v1603_v36 = vpop.xlane.xlu1 %1602  ;;  %v1243_v28 = vadd.f32 %v1115_v59, %v440_v4  ;;  %v1258_v42 = vadd.f32 %v1130_v31, %v455_v50  ;;  %4183 = vtanh.f32 %v1272_v48  ;;  %v1145_v20 = vmul.f32 %v5819_v7, %v5364_v38  ;;  %v223_v4 = vld [vmem:[%s7479_s2 + $0x2d0] sm:$0xff] }
 0x1d3   :  { %v2180_v14 = vrot.slane %v1600_v63, %v5608_v29  ;;  %v2185_v11 = vrot.slane %v1603_v36, %v5615_v6  ;;  %v4170_v21 = vpop.eup %4169  ;;  %v1799_v40 = vsel %vm7511_vm0, %v1502_v23, 0.0  ;;  %v1844_v52 = vsel %vm7511_vm0, %v1517_v35, 0.0  ;;  %v7620_v23 = vld [vmem:[#allocation53_spill] sm:$0xff] }
 0x1d4   :  { %v4172_v0 = vpop.eup %4171  ;;  %v1532_v56 = vmul.f32 %v5270_v15, %v4168_v16  ;;  %v1503_v53 = vmul.f32 %v5270_v15, %v5651_v10  ;;  %v1244_v32 = vadd.f32 %v1116_v57, %v7618_v47  ;;  %v470_v61 = vadd.f32 %v5064_v44, %v251_v30  ;;  %v7619_v16 = vld [vmem:[#allocation16_spill] sm:$0xff]  ;;  %v5894_v47 = vld [vmem:[%s7484_s7] ss:$0 sm:$0xff] }
 0x1d5   :  { %v2181_v18 = vsel %vm2073_vm2, %v2180_v14, %v2176_v24  ;;  %1884 = vadd.xlane.f32.xlu0 %v1883_v8  ;;  %1887 = vadd.xlane.f32.xlu1 %v1886_v51  ;;  %4185 = vtanh.f32 %v1243_v28  ;;  %v456_v50 = vadd.f32 %v5214_v43, %v237_v17  ;;  %v1131_v59 = vmul.f32 %v5819_v7, %v7619_v16  ;;  %v238_v24 = vld [vmem:[%s7479_s2 + $0x348] sm:$0xff] }
 0x1d6   :  { %v2186_v22 = vsel %vm2080_vm3, %v2185_v11, %v2181_v18  ;;  %v1606_v62 = vpop.xlane.xlu0 %1605  ;;  %v1609_v54 = vpop.xlane.xlu1 %1608  ;;  %4187 = vtanh.f32 %v1258_v42  ;;  %v1273_v55 = vadd.f32 %v1145_v20, %v470_v61  ;;  %v1889_v14 = vsel %vm7511_vm0, %v1532_v56, 0.0  ;;  %v7621_v42 = vld [vmem:[#allocation56_spill] sm:$0xff] }
 0x1d7   :  { %v2190_v13 = vrot.slane %v1606_v62, %v5629_v27  ;;  %v2195_v12 = vrot.slane %v1609_v54, %v5637_v34  ;;  %v4174_v38 = vpop.eup %4173  ;;  %v1802_v11 = vsel %vm7511_vm0, %v1503_v53, 0.0  ;;  %v1518_v8 = vmul.f32 %v5270_v15, %v4170_v21 }
 0x1d8   :  { %v4176_v36 = vpop.eup %4175  ;;  %v1533_v51 = vmul.f32 %v5270_v15, %v4172_v0  ;;  %4189 = vtanh.f32 %v1244_v32  ;;  %v1118_v35 = vmul.f32 %v5819_v7, %v7620_v23  ;;  %v442_v57 = vadd.f32 %v5211_v45, %v223_v4  ;;  %v239_v15 = vld [vmem:[%s7479_s2 + $0x350] sm:$0xff] }
 0x1d9   :  { %v2191_v60 = vsel %vm2087_vm4, %v2190_v13, %v2186_v22  ;;  %1800 = vadd.xlane.f32.xlu0 %v1799_v40  ;;  %1845 = vadd.xlane.f32.xlu1 %v1844_v52  ;;  %v1117_v30 = vmul.f32 %v5819_v7, %v7621_v42  ;;  %v7622_v22 = vld [vmem:[#allocation59_spill] sm:$0xff]  ;;  %v1259_v21 = vadd.f32 %v1131_v59, %v456_v50  ;;  %4191 = vtanh.f32 %v1273_v55 }
 0x1da   :  { %v2196_v10 = vsel %vm2094_vm5, %v2195_v12, %v2191_v60  ;;  %v1612_v37 = vpop.xlane.xlu0 %1611  ;;  %v1615_v31 = vpop.xlane.xlu1 %1614  ;;  %v1132_v62 = vmul.f32 %v5819_v7, %v7622_v22  ;;  %v457_v20 = vadd.f32 %v5214_v43, %v238_v24  ;;  %v7623_v12 = vld [vmem:[#allocation29_spill] sm:$0xff]  ;;  %v1847_v56 = vsel %vm7511_vm0, %v1518_v8, 0.0  ;;  %v225_v22 = vld [vmem:[%s7479_s2 + $0x2e0] sm:$0xff] }
 0x1db   :  { %v2200_v48 = vrot.slane %v1612_v37, %v5655_v25  ;;  %v2205_v63 = vrot.slane %v1615_v31, %v5663_v19  ;;  %v4178_v28 = vpop.eup %4177  ;;  %v1892_v53 = vsel %vm7511_vm0, %v1533_v51, 0.0  ;;  %v1504_v32 = vmul.f32 %v5894_v47, %v4174_v38 }
 0x1dc   :  { %v4180_v52 = vpop.eup %4179  ;;  %v1519_v61 = vmul.f32 %v5894_v47, %v4176_v36  ;;  %v1246_v60 = vadd.f32 %v1118_v35, %v5836_v39  ;;  %v458_v4 = vadd.f32 %v5214_v43, %v239_v15  ;;  %v1245_v16 = vadd.f32 %v1117_v30, %v442_v57  ;;  %v254_v39 = vld [vmem:[%s7479_s2 + $0x3c8] sm:$0xff]  ;;  %v7626_v57 = vld [vmem:[#allocation18_spill] sm:$0xff] }
 0x1dd   :  { %v2201_v18 = vsel %vm2101_vm6, %v2200_v48, %v2196_v10  ;;  %1890 = vadd.xlane.f32.xlu0 %v1889_v14  ;;  %1803 = vadd.xlane.f32.xlu1 %v1802_v11  ;;  %v1260_v59 = vadd.f32 %v1132_v62, %v457_v20  ;;  %4193 = vtanh.f32 %v1259_v21  ;;  %v253_v10 = vld [vmem:[%s7479_s2 + $0x3c0] sm:$0xff]  ;;  %v7624_v48 = vld [vmem:[#allocation17_spill] sm:$0xff]  ;;  %v1805_v8 = vsel %vm7511_vm0, %v1504_v32, 0.0  ;;  %v7627_v21 = vld [vmem:[#allocation24_spill] sm:$0xff] }
 0x1de   :  { %v2206_v54 = vsel %vm2108_vm7, %v2205_v63, %v2201_v18  ;;  %v1618_v0 = vpop.xlane.xlu0 %1617  ;;  %v1621_v17 = vpop.xlane.xlu1 %1620  ;;  %4195 = vtanh.f32 %v7624_v48  ;;  %v7625_v63 = vld [vmem:[#allocation22_spill] sm:$0xff]  ;;  %v1850_v51 = vsel %vm7511_vm0, %v1519_v61, 0.0  ;;  %v1534_v23 = vmul.f32 %v5894_v47, %v4180_v52 }
 0x1df   :  { %v2210_v13 = vrot.slane %v1618_v0, %v5680_v58  ;;  %v2215_v40 = vrot.slane %v1621_v17, %v7623_v12  ;;  %v4182_v55 = vpop.eup %4181  ;;  %v1147_v36 = vmul.f32 %v5819_v7, %v7625_v63  ;;  %v1505_v35 = vmul.f32 %v5894_v47, %v4178_v28 }
 0x1e0   :  { %v4184_v11 = vpop.eup %4183  ;;  %v1133_v18 = vmul.f32 %v5819_v7, %v7626_v57  ;;  %v472_v42 = vadd.f32 %v5064_v44, %v253_v10  ;;  %4197 = vtanh.f32 %v1245_v16  ;;  %v473_v62 = vadd.f32 %v5064_v44, %v254_v39  ;;  %v7629_v39 = vld [vmem:[#allocation60_spill] sm:$0xff] }
 0x1e1   :  { %v2211_v50 = vsel %vm2115_vm8, %v2210_v13, %v2206_v54  ;;  %1848 = vadd.xlane.f32.xlu0 %v1847_v56  ;;  %1893 = vadd.xlane.f32.xlu1 %v1892_v53  ;;  %v1148_v15 = vmul.f32 %v5819_v7, %v7627_v21  ;;  %4199 = vtanh.f32 %v1260_v59  ;;  %v240_v56 = vld [vmem:[%s7479_s2 + $0x358] sm:$0xff]  ;;  %v1895_v53 = vsel %vm7511_vm0, %v1534_v23, 0.0 }
 0x1e2   :  { %v2216_v37 = vsel %vm2122_vm9, %v2215_v40, %v2211_v50  ;;  %v1624_v38 = vpop.xlane.xlu0 %1623  ;;  %v1627_v31 = vpop.xlane.xlu1 %1626  ;;  %v1275_v20 = vadd.f32 %v1147_v36, %v472_v42  ;;  %v1808_v32 = vsel %vm7511_vm0, %v1505_v35, 0.0  ;;  %v1520_v61 = vmul.f32 %v5894_v47, %v4182_v55 }
 0x1e3   :  { %v2220_v24 = vrot.slane %v1624_v38, %v5704_v9  ;;  %v2225_v14 = vrot.slane %v1627_v31, %v5710_v46  ;;  %v4186_v17 = vpop.eup %4185  ;;  %v1535_v50 = vmul.f32 %v5894_v47, %v4184_v11  ;;  %4201 = vtanh.f32 %v1246_v60  ;;  %v226_v38 = vld [vmem:[%s7479_s2 + $0x2e8] sm:$0xff]  ;;  %v7628_v31 = vld [vmem:[#allocation57_spill] sm:$0xff] }
 0x1e4   :  { %v4188_v52 = vpop.eup %4187  ;;  %v444_v16 = vadd.f32 %v5211_v45, %v225_v22  ;;  %v1261_v59 = vadd.f32 %v1133_v18, %v458_v4  ;;  %v1119_v48 = vmul.f32 %v5819_v7, %v7628_v31  ;;  %v1134_v55 = vmul.f32 %v5819_v7, %v7629_v39 }
 0x1e5   :  { %v2221_v30 = vsel %vm2129_vm10, %v2220_v24, %v2216_v37  ;;  %1806 = vadd.xlane.f32.xlu0 %v1805_v8  ;;  %1851 = vadd.xlane.f32.xlu1 %v1850_v51  ;;  %v4190_v37 = vpop.eup %4189  ;;  %v1276_v63 = vadd.f32 %v1148_v15, %v473_v62  ;;  %v459_v24 = vadd.f32 %v5214_v43, %v240_v56  ;;  %4203 = vtanh.f32 %v1275_v20  ;;  %v255_v15 = vld [vmem:[%s7479_s2 + $0x3d0] sm:$0xff]  ;;  %v241_v56 = vld [vmem:[%s7479_s2 + $0x360] sm:$0xff] }
 0x1e6   :  { %v2226_v28 = vsel %vm2136_vm11, %v2225_v14, %v2221_v30  ;;  %v1630_v54 = vpop.xlane.xlu0 %1629  ;;  %v1633_v0 = vpop.xlane.xlu1 %1632  ;;  %v1506_v11 = vmul.f32 %v5894_v47, %v4186_v17  ;;  %v1853_v23 = vsel %vm7511_vm0, %v1520_v61, 0.0  ;;  %v1898_v35 = vsel %vm7511_vm0, %v1535_v50, 0.0  ;;  %v7630_v30 = vld [vmem:[#allocation54_spill] sm:$0xff]  ;;  %v7631_v17 = vld [vmem:[#allocation23_spill] sm:$0xff] }
 0x1e7   :  { %v2230_v13 = vrot.slane %v1630_v54, %v5725_v1  ;;  %v2235_v40 = vrot.slane %v1633_v0, %v5731_v41  ;;  %v4192_v8 = vpop.eup %4191  ;;  %v1521_v57 = vmul.f32 %v5894_v47, %v4188_v52  ;;  %v445_v18 = vadd.f32 %v5211_v45, %v226_v38  ;;  %v7632_v38 = vld [vmem:[#allocation19_spill] sm:$0xff] }
 0x1e8   :  { %4205 = vtanh.f32 %v1261_v59  ;;  %v1120_v22 = vmul.f32 %v5819_v7, %v7630_v30  ;;  %v1247_v62 = vadd.f32 %v1119_v48, %v444_v16  ;;  %v1262_v21 = vadd.f32 %v1134_v55, %v459_v24  ;;  %v256_v48 = vld [vmem:[%s7479_s2 + $0x3d8] sm:$0xff]  ;;  %v242_v30 = vld [vmem:[%s7479_s2 + $0x368] sm:$0xff] }
 0x1e9   :  { %v2231_v10 = vsel %vm2143_vm12, %v2230_v13, %v2226_v28  ;;  %1896 = vadd.xlane.f32.xlu0 %v1895_v53  ;;  %1809 = vadd.xlane.f32.xlu1 %v1808_v32  ;;  %4207 = vtanh.f32 %v1276_v63  ;;  %v1149_v20 = vmul.f32 %v5819_v7, %v7631_v17  ;;  %v1811_v32 = vsel %vm7511_vm0, %v1506_v11, 0.0  ;;  %v227_v11 = vld [vmem:[%s7479_s2 + $0x2f0] sm:$0xff] }
 0x1ea   :  { %v2236_v60 = vsel %vm2150_vm13, %v2235_v40, %v2231_v10  ;;  %v1636_v36 = vpop.xlane.xlu0 %1635  ;;  %v1639_v4 = vpop.xlane.xlu1 %1638  ;;  %v1536_v40 = vmul.f32 %v5894_v47, %v4192_v8  ;;  %v1856_v61 = vsel %vm7511_vm0, %v1521_v57, 0.0  ;;  %v1507_v50 = vmul.f32 %v5894_v47, %v4190_v37 }
 0x1eb   :  { %v2240_v14 = vrot.slane %v1636_v36, %v5746_v3  ;;  %v2245_v51 = vrot.slane %v1639_v4, %v5751_v26  ;;  %v4194_v0 = vpop.eup %4193  ;;  %v474_v16 = vadd.f32 %v5064_v44, %v255_v15  ;;  %v1248_v10 = vadd.f32 %v1120_v22, %v445_v18  ;;  %v7634_v36 = vld [vmem:[#allocation25_spill] sm:$0xff]  ;;  %v7635_v18 = vld [vmem:[#allocation58_spill] sm:$0xff] }
 0x1ec   :  { %v4196_v52 = vpop.eup %4195  ;;  %4209 = vtanh.f32 %v1247_v62  ;;  %v1135_v31 = vmul.f32 %v5819_v7, %v7632_v38  ;;  %v1150_v4 = vmul.f32 %v5819_v7, %v7634_v36  ;;  %v1814_v8 = vsel %vm7511_vm0, %v1507_v50, 0.0  ;;  %v7637_v50 = vld [vmem:[#allocation55_spill] sm:$0xff]  ;;  %v7638_v36 = vld [vmem:[#allocation28_spill] sm:$0xff] }
 0x1ed   :  { %v2241_v42 = vsel %vm7504_vm14, %v2240_v14, %v2236_v60  ;;  %1854 = vadd.xlane.f32.xlu0 %v1853_v23  ;;  %1899 = vadd.xlane.f32.xlu1 %v1898_v35  ;;  %vm7505_vm14 = vcmask 1041409   ;;  %v4198_v63 = vpop.eup %4197  ;;  %4211 = vtanh.f32 %v1262_v21  ;;  %v460_v60 = vadd.f32 %v5214_v43, %v241_v56 }
 0x1ee   :  { %v1642_v28 = vpop.xlane.xlu0 %1641  ;;  %v5961_v54 = vpop.xlane.xlu1 %1644  ;;  %v2246_v53 = vsel %vm2164_vm15, %v2245_v51, %v2241_v42  ;;  %v1277_v24 = vadd.f32 %v1149_v20, %v474_v16  ;;  %v1522_v51 = vmul.f32 %v5894_v47, %v4194_v0  ;;  %v1537_v23 = vmul.f32 %v5894_v47, %v4196_v52 }
 0x1ef   :  { %v2250_v13 = vrot.slane %v1642_v28, %v5774_v33  ;;  %v4200_v14 = vpop.eup %4199  ;;  %v475_v35 = vadd.f32 %v5064_v44, %v256_v48  ;;  %4213 = vtanh.f32 %v1248_v10  ;;  %v1121_v42 = vmul.f32 %v5819_v7, %v7635_v18  ;;  %v7636_v28 = vld [vmem:[#allocation61_spill] sm:$0xff]  ;;  %v257_v10 = vld [vmem:[%s7479_s2 + $0x3e0] sm:$0xff]  ;;  %v258_v18 = vld [vmem:[%s7479_s2 + $0x3e8] sm:$0xff] }
 0x1f0   :  { %v4202_v57 = vpop.eup %4201  ;;  %v1263_v22 = vadd.f32 %v1135_v31, %v460_v60  ;;  %v446_v15 = vadd.f32 %v5211_v45, %v227_v11  ;;  %v1136_v0 = vmul.f32 %v5819_v7, %v7636_v28  ;;  %4215 = vtanh.f32 %v1277_v24  ;;  %v243_v24 = vld [vmem:[%s7479_s2 + $0x370] sm:$0xff] }
 0x1f1   :  { %v2251_v59 = vsel %vm2171_vm1, %v2250_v13, %v2246_v53  ;;  %1812 = vadd.xlane.f32.xlu0 %v1811_v32  ;;  %1857 = vadd.xlane.f32.xlu1 %v1856_v61  ;;  %v1278_v17 = vadd.f32 %v1150_v4, %v475_v35  ;;  %v228_v13 = vld [vmem:[%s7479_s2 + $0x2f8] sm:$0xff]  ;;  %v1904_v52 = vsel %vm7511_vm0, %v1537_v23, 0.0  ;;  %v1508_v56 = vmul.f32 %v5894_v47, %v4198_v63  ;;  %v7639_v23 = vld [vmem:[#allocation21_spill] sm:$0xff] }
 0x1f2   :  { %v5983_v39 = vsel %vm7505_vm14, %v2251_v59, %v5809_v2  ;;  %v5985_v37 = vpop.xlane.xlu0 %1647  ;;  %v5987_v55 = vpop.xlane.xlu1 %1650  ;;  %v1901_v2 = vsel %vm7511_vm0, %v1536_v40, 0.0  ;;  %v1859_v40 = vsel %vm7511_vm0, %v1522_v51, 0.0  ;;  %v1523_v53 = vmul.f32 %v5894_v47, %v4200_v14 }
 0x1f3   :  { %7633 = vst [vmem:[#allocation34_spill] sm:$0xff] %v5983_v39  ;;  %v4204_v20 = vpop.eup %4203  ;;  %v461_v32 = vadd.f32 %v5214_v43, %v242_v30  ;;  %v1122_v16 = vmul.f32 %v5819_v7, %v7637_v50  ;;  %v1249_v59 = vadd.f32 %v1121_v42, %v446_v15  ;;  %4217 = vtanh.f32 %v1263_v22  ;;  %v7640_v15 = vld [vmem:[#allocation27_spill] sm:$0xff] }
 0x1f4   :  { %v447_v63 = vadd.f32 %v5211_v45, %v228_v13  ;;  %4219 = vtanh.f32 %v1278_v17  ;;  %v1151_v4 = vmul.f32 %v5819_v7, %v7638_v36  ;;  %v1817_v14 = vsel %vm7511_vm0, %v1508_v56, 0.0  ;;  %v7642_v36 = vld [vmem:[#allocation30_spill] sm:$0xff] }
 0x1f5   :  { %1902 = vadd.xlane.f32.xlu0 %v1901_v2  ;;  %1815 = vadd.xlane.f32.xlu1 %v1814_v8  ;;  %v4206_v61 = vpop.eup %4205  ;;  %v1264_v60 = vadd.f32 %v1136_v0, %v461_v32  ;;  %v1862_v11 = vsel %vm7511_vm0, %v1523_v53, 0.0  ;;  %v1538_v2 = vmul.f32 %v5894_v47, %v4204_v20  ;;  %v1509_v8 = vmul.f32 %v5894_v47, %v4202_v57  ;;  %v244_v20 = vld [vmem:[%s7479_s2 + $0x378] sm:$0xff] }
 0x1f6   :  { %v6005_v62 = vpop.xlane.xlu0 %1653  ;;  %v6007_v21 = vpop.xlane.xlu1 %1656  ;;  %v476_v51 = vadd.f32 %v5064_v44, %v257_v10  ;;  %v1250_v45 = vadd.f32 %v1122_v16, %v447_v63  ;;  %4221 = vtanh.f32 %v1249_v59  ;;  %v1137_v35 = vmul.f32 %v5819_v7, %v7639_v23  ;;  %v7641_v32 = vld [vmem:[#allocation62_spill] sm:$0xff]  ;;  %v259_v59 = vld [vmem:[%s7479_s2 + $0x3f0] sm:$0xff] }
 0x1f7   :  { %v4208_v48 = vpop.eup %4207  ;;  %4223 = vtanh.f32 %v1264_v60  ;;  %v462_v57 = vadd.f32 %v5214_v43, %v243_v24  ;;  %v1152_v28 = vmul.f32 %v5819_v7, %v7640_v15  ;;  %v1907_v13 = vsel %vm7511_vm0, %v1538_v2, 0.0 }
 0x1f8   :  { %v1279_v0 = vadd.f32 %v1151_v4, %v476_v51  ;;  %v1539_v56 = vmul.f32 %v5894_v47, %v4208_v48  ;;  %v477_v53 = vadd.f32 %v5064_v44, %v258_v18  ;;  %4225 = vtanh.f32 %v1250_v45 }
 0x1f9   :  { %1860 = vadd.xlane.f32.xlu0 %v1859_v40  ;;  %1905 = vadd.xlane.f32.xlu1 %v1904_v52  ;;  %v4210_v22 = vpop.eup %4209  ;;  %v1820_v40 = vsel %vm7511_vm0, %v1509_v8, 0.0  ;;  %v1524_v52 = vmul.f32 %v5894_v47, %v4206_v61  ;;  %v1138_v50 = vmul.f32 %v5819_v7, %v7641_v32  ;;  %v1265_v16 = vadd.f32 %v1137_v35, %v462_v57  ;;  %v7643_v57 = vld [vmem:[#allocation20_spill] sm:$0xff] }
 0x1fa   :  { %v6025_v38 = vpop.xlane.xlu0 %1659  ;;  %v6027_v31 = vpop.xlane.xlu1 %1662  ;;  %v463_v48 = vadd.f32 %v5214_v43, %v244_v20  ;;  %v1280_v60 = vadd.f32 %v1152_v28, %v477_v53  ;;  %4227 = vtanh.f32 %v1279_v0  ;;  %v1153_v4 = vmul.f32 %v5819_v7, %v7642_v36  ;;  %v260_v43 = vld [vmem:[%s7479_s2 + $0x3f8] sm:$0xff] }
 0x1fb   :  { %v4212_v17 = vpop.eup %4211  ;;  %v1510_v2 = vmul.f32 %v5894_v47, %v4210_v22  ;;  %v478_v51 = vadd.f32 %v5064_v44, %v259_v59  ;;  %4229 = vtanh.f32 %v1265_v16  ;;  %v1154_v22 = vmul.f32 %v5819_v7, %v7643_v57 }
 0x1fc   :  { %v4214_v61 = vpop.eup %4213  ;;  %v1525_v8 = vmul.f32 %v5894_v47, %v4212_v17  ;;  %v1266_v45 = vadd.f32 %v1138_v50, %v463_v48  ;;  %4231 = vtanh.f32 %v1280_v60  ;;  %vm7512_vm14 = vcmask 7168  }
 0x1fd   :  { %1818 = vadd.xlane.f32.xlu0 %v1817_v14  ;;  %1863 = vadd.xlane.f32.xlu1 %v1862_v11  ;;  %v4216_v24 = vpop.eup %4215  ;;  %v1865_v14 = vsel %vm7511_vm0, %v1524_v52, 0.0  ;;  %v1910_v11 = vsel %vm7511_vm0, %v1539_v56, 0.0  ;;  %v1281_v15 = vadd.f32 %v1153_v4, %v478_v51  ;;  %v1823_v0 = vsel %vm7511_vm0, %v1510_v2, 0.0 }
 0x1fe   :  { %v6045_v42 = vpop.xlane.xlu0 %1665  ;;  %v6047_v30 = vpop.xlane.xlu1 %1668  ;;  %v1868_v17 = vsel %vm7511_vm0, %v1525_v8, 0.0  ;;  %v1540_v20 = vmul.f32 %v5894_v47, %v4216_v24  ;;  %4233 = vtanh.f32 %v1266_v45 }
 0x1ff   :  { %4235 = vtanh.f32 %v1281_v15 }
 0x200   :  { %v4218_v18 = vpop.eup %4217  ;;  %v1913_v50 = vsel %vm7511_vm0, %v1540_v20, 0.0 }
 0x201   :  { %1908 = vadd.xlane.f32.xlu0 %v1907_v13  ;;  %1821 = vadd.xlane.f32.xlu1 %v1820_v40  ;;  %v4220_v28 = vpop.eup %4219  ;;  %v1511_v13 = vmul.f32 %v5894_v47, %v4214_v61  ;;  %v479_v40 = vadd.f32 %v5064_v44, %v260_v43  ;;  %v1526_v59 = vmul.f32 %v5894_v47, %v4218_v18 }
 0x202   :  { %v6065_v10 = vpop.xlane.xlu0 %1671  ;;  %v6067_v63 = vpop.xlane.xlu1 %1674  ;;  %v1541_v61 = vmul.f32 %v5894_v47, %v4220_v28 }
 0x203   :  { %v4222_v7 = vpop.eup %4221  ;;  %v1282_v53 = vadd.f32 %v1154_v22, %v479_v40  ;;  %v1826_v16 = vsel %vm7511_vm0, %v1511_v13, 0.0  ;;  %v1871_v4 = vsel %vm7511_vm0, %v1526_v59, 0.0 }
 0x204   :  { %v4224_v32 = vpop.eup %4223  ;;  %v1916_v24 = vsel %vm7511_vm0, %v1541_v61, 0.0 }
 0x205   :  { %1866 = vadd.xlane.f32.xlu0 %v1865_v14  ;;  %1911 = vadd.xlane.f32.xlu1 %v1910_v11  ;;  %v4226_v60 = vpop.eup %4225  ;;  %4237 = vtanh.f32 %v1282_v53  ;;  %v1512_v14 = vmul.f32 %v5894_v47, %v4222_v7  ;;  %v1527_v11 = vmul.f32 %v5894_v47, %v4224_v32 }
 0x206   :  { %v6080_v23 = vpop.xlane.xlu0 %1677  ;;  %v6082_v35 = vpop.xlane.xlu1 %1680  ;;  %v1513_v22 = vmul.f32 %v5894_v47, %v4226_v60 }
 0x207   :  { %v4228_v36 = vpop.eup %4227  ;;  %v1829_v43 = vsel %vm7511_vm0, %v1512_v14, 0.0  ;;  %v1874_v18 = vsel %vm7511_vm0, %v1527_v11, 0.0 }
 0x208   :  { %v4230_v51 = vpop.eup %4229  ;;  %v1542_v57 = vmul.f32 %v5894_v47, %v4228_v36  ;;  %v1832_v13 = vsel %vm7511_vm0, %v1513_v22, 0.0 }
 0x209   :  { %1824 = vadd.xlane.f32.xlu0 %v1823_v0  ;;  %1869 = vadd.xlane.f32.xlu1 %v1868_v17  ;;  %v4232_v45 = vpop.eup %4231  ;;  %v1528_v40 = vmul.f32 %v5894_v47, %v4230_v51 }
 0x20a   :  { %v6091_v52 = vpop.xlane.xlu0 %1683  ;;  %v6093_v56 = vpop.xlane.xlu1 %1686  ;;  %v1919_v20 = vsel %vm7511_vm0, %v1542_v57, 0.0  ;;  %v1543_v7 = vmul.f32 %v5894_v47, %v4232_v45 }
 0x20b   :  { %7644 = vst [vmem:[#allocation33_spill] sm:$0xff] %v6093_v56  ;;  %v4234_v0 = vpop.eup %4233 }
 0x20c   :  { %v4236_v17 = vpop.eup %4235  ;;  %v1922_v59 = vsel %vm7511_vm0, %v1543_v7, 0.0  ;;  %v1529_v61 = vmul.f32 %v5894_v47, %v4234_v0  ;;  %v7648_v7 = vmov 0.0  }
 0x20d   :  { %1914 = vadd.xlane.f32.xlu0 %v1913_v50  ;;  %1827 = vadd.xlane.f32.xlu1 %v1826_v16  ;;  %v1877_v16 = vsel %vm7511_vm0, %v1528_v40, 0.0  ;;  %v1544_v60 = vmul.f32 %v5894_v47, %v4236_v17  ;;  %v4318_v40 = vmov -1e+30   ;;  %131 = vst.msk [vmem:[#allocation5] sm:$0xff] %vm7512_vm14, %v7648_v7 }
 0x20e   :  { %v6099_v44 = vpop.xlane.xlu0 %1689  ;;  %v6101_v48 = vpop.xlane.xlu1 %1692  ;;  %130 = vst.msk [vmem:[#allocation4] sm:$0xff] %vm7512_vm14, %v4318_v40 }
 0x20f   :  { %7645 = vst [vmem:[#allocation36_spill] sm:$0xff] %v6099_v44  ;;  %v1925_v14 = vsel %vm7511_vm0, %v1544_v60, 0.0 }
 0x211   :  { %1872 = vadd.xlane.f32.xlu0 %v1871_v4  ;;  %1917 = vadd.xlane.f32.xlu1 %v1916_v24  ;;  %v1880_v24 = vsel %vm7511_vm0, %v1529_v61, 0.0 }
 0x212   :  { %v6107_v2 = vpop.xlane.xlu0 %1695  ;;  %v6109_v8 = vpop.xlane.xlu1 %1698 }
 0x213   :  { %v4238_v50 = vpop.eup %4237 }
 0x214   :  { %v1545_v11 = vmul.f32 %v5894_v47, %v4238_v50 }
 0x215   :  { %1830 = vadd.xlane.f32.xlu0 %v1829_v43  ;;  %1875 = vadd.xlane.f32.xlu1 %v1874_v18 }
 0x216   :  { %v6115_v15 = vpop.xlane.xlu0 %1701  ;;  %v6117_v28 = vpop.xlane.xlu1 %1704  ;;  %v1928_v43 = vsel %vm7511_vm0, %v1545_v11, 0.0  ;;  %vm7676_vm0 = vcmask 917312  }
 0x217   :  { %vm7680_vm14 = vmmov %vm7676_vm0 }
 0x219   :  { %1920 = vadd.xlane.f32.xlu0 %v1919_v20  ;;  %1833 = vadd.xlane.f32.xlu1 %v1832_v13 }
 0x21a   :  { %v6123_v53 = vpop.xlane.xlu0 %1707  ;;  %v6125_v32 = vpop.xlane.xlu1 %1710 }
 0x21d   :  { %1878 = vadd.xlane.f32.xlu0 %v1877_v16  ;;  %1923 = vadd.xlane.f32.xlu1 %v1922_v59 }
 0x21e   :  { %v6131_v36 = vpop.xlane.xlu0 %1713  ;;  %v6133_v4 = vpop.xlane.xlu1 %1716 }
 0x221   :  { %1881 = vadd.xlane.f32.xlu0 %v1880_v24  ;;  %1926 = vadd.xlane.f32.xlu1 %v1925_v14 }
 0x222   :  { %v6138_v51 = vpop.xlane.xlu0 %1719  ;;  %v6140_v45 = vpop.xlane.xlu1 %1722 }
 0x225   :  { %1929 = vadd.xlane.f32.xlu0 %v1928_v43 }
 0x226   :  { %v6143_v18 = vpop.xlane.xlu0 %1725  ;;  %v6145_v57 = vpop.xlane.xlu1 %1728 }
 0x22a   :  { %v6147_v22 = vpop.xlane.xlu0 %1731  ;;  %v6149_v0 = vpop.xlane.xlu1 %1734 }
 0x22b   :  { %7646 = vst [vmem:[#allocation35_spill] sm:$0xff] %v6149_v0 }
 0x22e   :  { %v6151_v17 = vpop.xlane.xlu0 %1737  ;;  %v6153_v47 = vpop.xlane.xlu1 %1740 }
 0x22f   :  { %7647 = vst [vmem:[#allocation37_spill] sm:$0xff] %v6151_v17 }
 0x232   :  { %v6155_v20 = vpop.xlane.xlu0 %1743  ;;  %v6157_v13 = vpop.xlane.xlu1 %1746 }
 0x236   :  { %v6162_v50 = vpop.xlane.xlu0 %1749  ;;  %v6164_v16 = vpop.xlane.xlu1 %1752 }
 0x23a   :  { %v6166_v59 = vpop.xlane.xlu0 %1755  ;;  %v6168_v61 = vpop.xlane.xlu1 %1758 }
 0x23e   :  { %v6170_v60 = vpop.xlane.xlu0 %1761  ;;  %v6172_v24 = vpop.xlane.xlu1 %1764 }
 0x242   :  { %v6174_v14 = vpop.xlane.xlu0 %1767  ;;  %v6176_v11 = vpop.xlane.xlu1 %1770 }
 0x246   :  { %v6178_v43 = vpop.xlane.xlu0 %1773  ;;  %v6180_v40 = vpop.xlane.xlu1 %1776 }
 0x247   :  { %7649 = vst [vmem:[#allocation38_spill] sm:$0xff] %v6178_v43  ;;  %7650 = vst [vmem:[#allocation39_spill] sm:$0xff] %v6180_v40 }
 0x24a   :  { %v6182_v7 = vpop.xlane.xlu0 %1779  ;;  %v6184_v49 = vpop.xlane.xlu1 %1782 }
 0x24b   :  { %7651 = vst [vmem:[#allocation40_spill] sm:$0xff] %v6182_v7  ;;  %7652 = vst [vmem:[#allocation41_spill] sm:$0xff] %v6184_v49 }
 0x24e   :  { %v6186_v39 = vpop.xlane.xlu0 %1785  ;;  %v6188_v17 = vpop.xlane.xlu1 %1788 }
 0x24f   :  { %7653 = vst [vmem:[#allocation42_spill] sm:$0xff] %v6186_v39  ;;  %7654 = vst [vmem:[#allocation43_spill] sm:$0xff] %v6188_v17 }
 0x252   :  { %v6190_v0 = vpop.xlane.xlu0 %1791  ;;  %v6192_v44 = vpop.xlane.xlu1 %1794 }
 0x253   :  { %7655 = vst [vmem:[#allocation44_spill] sm:$0xff] %v6190_v0  ;;  %7656 = vst [vmem:[#allocation45_spill] sm:$0xff] %v6192_v44 }
 0x256   :  { %v6194_v33 = vpop.xlane.xlu0 %1797  ;;  %v6196_v56 = vpop.xlane.xlu1 %1836 }
 0x257   :  { %7657 = vst [vmem:[#allocation46_spill] sm:$0xff] %v6194_v33  ;;  %7658 = vst [vmem:[#allocation47_spill] sm:$0xff] %v6196_v56 }
 0x25a   :  { %v6198_v26 = vpop.xlane.xlu0 %1839  ;;  %v6200_v43 = vpop.xlane.xlu1 %1842 }
 0x25b   :  { %7659 = vst [vmem:[#allocation48_spill] sm:$0xff] %v6198_v26  ;;  %7660 = vst [vmem:[#allocation49_spill] sm:$0xff] %v6200_v43 }
 0x25e   :  { %v6202_v40 = vpop.xlane.xlu0 %1884  ;;  %v6204_v7 = vpop.xlane.xlu1 %1887 }
 0x25f   :  { %7661 = vst [vmem:[#allocation51_spill] sm:$0xff] %v6202_v40 }
 0x262   :  { %v6206_v49 = vpop.xlane.xlu0 %1800  ;;  %v6208_v39 = vpop.xlane.xlu1 %1845 }
 0x263   :  { %7662 = vst [vmem:[#allocation50_spill] sm:$0xff] %v6206_v49  ;;  %v2259_v49 = vrot.slane %v5985_v37, %v5608_v29  ;;  %v2334_v37 = vrot.slane %v6101_v48, %v5605_v5  ;;  %v2274_v48 = vrot.slane %v6007_v21, %v5637_v34 }
 0x266   :  { %v6210_v17 = vpop.xlane.xlu0 %1890  ;;  %v6212_v0 = vpop.xlane.xlu1 %1803 }
 0x267   :  { %7663 = vst [vmem:[#allocation52_spill] sm:$0xff] %v6210_v17  ;;  %7664 = vst [vmem:[#allocation26_spill] sm:$0xff] %v6212_v0  ;;  %v2255_v17 = vrot.slane %v5961_v54, %v5605_v5  ;;  %v2338_v0 = vrot.slane %v6107_v2, %v5608_v29  ;;  %v2343_v54 = vrot.slane %v6109_v8, %v5615_v6 }
 0x268   :  { %v2279_v8 = vrot.slane %v6025_v38, %v5655_v25 }
 0x269   :  { %v2339_v2 = vsel %vm2073_vm2, %v2338_v0, %v2334_v37 }
 0x26a   :  { %v6214_v44 = vpop.xlane.xlu0 %1848  ;;  %v6216_v33 = vpop.xlane.xlu1 %1893  ;;  %v2344_v0 = vsel %vm2080_vm3, %v2343_v54, %v2339_v2  ;;  %v2363_v54 = vrot.slane %v6125_v32, %v5663_v19 }
 0x26b   :  { %7665 = vst [vmem:[#allocation16_spill] sm:$0xff] %v6214_v44  ;;  %7666 = vst [vmem:[#allocation53_spill] sm:$0xff] %v6216_v33 }
 0x26e   :  { %v6218_v56 = vpop.xlane.xlu0 %1806  ;;  %v6220_v26 = vpop.xlane.xlu1 %1851 }
 0x26f   :  { %7667 = vst [vmem:[#allocation56_spill] sm:$0xff] %v6218_v56  ;;  %7668 = vst [vmem:[#allocation59_spill] sm:$0xff] %v6220_v26  ;;  %v2264_v26 = vrot.slane %v5987_v55, %v5615_v6  ;;  %v2417_v55 = vrot.slane %v6155_v20, %v5608_v29  ;;  %v2358_v20 = vrot.slane %v6123_v53, %v5655_v25 }
 0x270   :  { %v2289_v53 = vrot.slane %v6045_v42, %v5680_v58 }
 0x272   :  { %v6222_v43 = vpop.xlane.xlu0 %1896  ;;  %v6224_v40 = vpop.xlane.xlu1 %1809 }
 0x273   :  { %7669 = vst [vmem:[#allocation29_spill] sm:$0xff] %v6222_v43  ;;  %7670 = vst [vmem:[#allocation17_spill] sm:$0xff] %v6224_v40  ;;  %v2260_v43 = vsel %vm2073_vm2, %v2259_v49, %v2255_v17  ;;  %v2269_v40 = vrot.slane %v6005_v62, %v5629_v27  ;;  %v2413_v17 = vrot.slane %v6153_v47, %v5605_v5 }
 0x274   :  { %v2265_v49 = vsel %vm2080_vm3, %v2264_v26, %v2260_v43  ;;  %v2422_v43 = vrot.slane %v6157_v13, %v5615_v6 }
 0x275   :  { %v2270_v62 = vsel %vm2087_vm4, %v2269_v40, %v2265_v49  ;;  %v2418_v38 = vsel %vm2073_vm2, %v2417_v55, %v2413_v17 }
 0x276   :  { %v6232_v44 = vpop.xlane.xlu0 %1854  ;;  %v6234_v33 = vpop.xlane.xlu1 %1899  ;;  %v2275_v37 = vsel %vm2094_vm5, %v2274_v48, %v2270_v62  ;;  %v2423_v49 = vsel %vm2080_vm3, %v2422_v43, %v2418_v38  ;;  %v2437_v48 = vrot.slane %v6166_v59, %v5655_v25  ;;  %v2378_v59 = vrot.slane %v6138_v51, %v5704_v9 }
 0x277   :  { %7671 = vst [vmem:[#allocation22_spill] sm:$0xff] %v6232_v44  ;;  %7672 = vst [vmem:[#allocation18_spill] sm:$0xff] %v6234_v33  ;;  %v2348_v44 = vrot.slane %v6115_v15, %v5629_v27  ;;  %v2353_v15 = vrot.slane %v6117_v28, %v5637_v34  ;;  %v2427_v28 = vrot.slane %v6162_v50, %v5629_v27 }
 0x278   :  { %v2280_v47 = vsel %vm2101_vm6, %v2279_v8, %v2275_v37  ;;  %v2368_v50 = vrot.slane %v6131_v36, %v5680_v58  ;;  %v2294_v8 = vrot.slane %v6047_v30, %v7623_v12  ;;  %v2442_v30 = vrot.slane %v6168_v61, %v5663_v19 }
 0x279   :  { %v2349_v26 = vsel %vm2087_vm4, %v2348_v44, %v2344_v0  ;;  %v2284_v44 = vrot.slane %v6027_v31, %v5663_v19  ;;  %v2432_v31 = vrot.slane %v6164_v16, %v5637_v34  ;;  %v2428_v42 = vsel %vm2087_vm4, %v2427_v28, %v2423_v49 }
 0x27a   :  { %v6248_v33 = vpop.xlane.xlu0 %1812  ;;  %v6250_v56 = vpop.xlane.xlu1 %1857  ;;  %v2354_v13 = vsel %vm2094_vm5, %v2353_v15, %v2349_v26  ;;  %v2299_v0 = vrot.slane %v6065_v10, %v5704_v9  ;;  %v2373_v15 = vrot.slane %v6133_v4, %v7623_v12  ;;  %v2447_v38 = vrot.slane %v6170_v60, %v5680_v58 }
 0x27b   :  { %v2359_v2 = vsel %vm2101_vm6, %v2358_v20, %v2354_v13  ;;  %v2285_v32 = vsel %vm2108_vm7, %v2284_v44, %v2280_v47  ;;  %v2433_v26 = vsel %vm2094_vm5, %v2432_v31, %v2428_v42  ;;  %v2304_v28 = vrot.slane %v6067_v63, %v5710_v46 }
 0x27c   :  { %v2290_v36 = vsel %vm2115_vm8, %v2289_v53, %v2285_v32  ;;  %v2364_v16 = vsel %vm2108_vm7, %v2363_v54, %v2359_v2  ;;  %v2438_v10 = vsel %vm2101_vm6, %v2437_v48, %v2433_v26  ;;  %v2309_v37 = vrot.slane %v6080_v23, %v5725_v1  ;;  %v7678_v26 = vld [vmem:[#allocation36_spill] sm:$0xff] }
 0x27d   :  { %v2369_v17 = vsel %vm2115_vm8, %v2368_v50, %v2364_v16  ;;  %v2295_v4 = vsel %vm2122_vm9, %v2294_v8, %v2290_v36  ;;  %v2383_v44 = vrot.slane %v6140_v45, %v5710_v46  ;;  %v2388_v60 = vrot.slane %v6143_v18, %v5725_v1  ;;  %v7673_v36 = vld [vmem:[#allocation38_spill] sm:$0xff]  ;;  %v7674_v16 = vld [vmem:[#allocation32_spill] sm:$0xff] }
 0x27e   :  { %v6270_v21 = vpop.xlane.xlu0 %1902  ;;  %v6272_v40 = vpop.xlane.xlu1 %1815  ;;  %v2300_v51 = vsel %vm2129_vm10, %v2299_v0, %v2295_v4  ;;  %v2374_v61 = vsel %vm2122_vm9, %v2373_v15, %v2369_v17  ;;  %v2443_v53 = vsel %vm2108_vm7, %v2442_v30, %v2438_v10  ;;  %v2452_v63 = vrot.slane %v6172_v24, %v7623_v12  ;;  %v7675_v15 = vld [vmem:[#allocation33_spill] sm:$0xff]  ;;  %v7679_v10 = vld [vmem:[#allocation35_spill] sm:$0xff] }
 0x27f   :  { %v2379_v47 = vsel %vm2129_vm10, %v2378_v59, %v2374_v61  ;;  %v2448_v23 = vsel %vm2115_vm8, %v2447_v38, %v2443_v53  ;;  %v2457_v2 = vrot.slane %v6174_v14, %v5704_v9  ;;  %v2305_v45 = vsel %vm2136_vm11, %v2304_v28, %v2300_v51  ;;  %v7677_v59 = vld [vmem:[#allocation31_spill] sm:$0xff] }
 0x280   :  { %v2314_v50 = vrot.slane %v6082_v35, %v5731_v41  ;;  %v2310_v18 = vsel %vm2143_vm12, %v2309_v37, %v2305_v45  ;;  %v2319_v49 = vrot.slane %v6091_v52, %v5746_v3  ;;  %v2384_v24 = vsel %vm2136_vm11, %v2383_v44, %v2379_v47  ;;  %v7681_v51 = vld [vmem:[#allocation39_spill] sm:$0xff]  ;;  %v7684_v45 = vld [vmem:[#allocation48_spill] sm:$0xff] }
 0x281   :  { %v2393_v31 = vrot.slane %v6145_v57, %v5731_v41  ;;  %v2389_v42 = vsel %vm2143_vm12, %v2388_v60, %v2384_v24  ;;  %v2398_v14 = vrot.slane %v6147_v22, %v5746_v3  ;;  %v2453_v48 = vsel %vm2122_vm9, %v2452_v63, %v2448_v23  ;;  %v7682_v60 = vld [vmem:[#allocation40_spill] sm:$0xff]  ;;  %v7685_v24 = vld [vmem:[#allocation37_spill] sm:$0xff] }
 0x282   :  { %v6292_v55 = vpop.xlane.xlu0 %1860  ;;  %v6294_v62 = vpop.xlane.xlu1 %1905  ;;  %v2462_v35 = vrot.slane %v6176_v11, %v5710_v46  ;;  %v2458_v52 = vsel %vm2129_vm10, %v2457_v2, %v2453_v48  ;;  %v2467_v0 = vrot.slane %v7673_v36, %v5725_v1  ;;  %v2315_v57 = vsel %vm2150_vm13, %v2314_v50, %v2310_v18  ;;  %v7683_v23 = vld [vmem:[#allocation44_spill] sm:$0xff] }
 0x283   :  { %v2324_v17 = vrot.slane %v7675_v15, %v7674_v16  ;;  %v2320_v22 = vsel %vm7676_vm0, %v2319_v49, %v2315_v57  ;;  %v2329_v30 = vrot.slane %v7678_v26, %v7677_v59  ;;  %v2394_v11 = vsel %vm2150_vm13, %v2393_v31, %v2389_v42  ;;  %v7688_v15 = vld [vmem:[#allocation41_spill] sm:$0xff] }
 0x284   :  { %v2403_v38 = vrot.slane %v7679_v10, %v7674_v16  ;;  %v2399_v4 = vsel %vm7680_vm14, %v2398_v14, %v2394_v11  ;;  %v2463_v28 = vsel %vm2136_vm11, %v2462_v35, %v2458_v52  ;;  %v2472_v37 = vrot.slane %v7681_v51, %v5731_v41  ;;  %v7686_v14 = vld [vmem:[#allocation43_spill] sm:$0xff]  ;;  %v7692_v51 = vld [vmem:[#allocation49_spill] sm:$0xff] }
 0x285   :  { %v2468_v47 = vsel %vm2143_vm12, %v2467_v0, %v2463_v28  ;;  %v2477_v53 = vrot.slane %v7682_v60, %v5746_v3  ;;  %v2325_v63 = vsel %vm2164_vm15, %v2324_v17, %v2320_v22  ;;  %v2496_v2 = vrot.slane %v7683_v23, %v5608_v29  ;;  %v7687_v35 = vld [vmem:[#allocation47_spill] sm:$0xff]  ;;  %v7689_v22 = vld [vmem:[#allocation42_spill] sm:$0xff] }
 0x286   :  { %v6314_v20 = vpop.xlane.xlu0 %1818  ;;  %v6316_v43 = vpop.xlane.xlu1 %1863  ;;  %v2575_v50 = vrot.slane %v7684_v45, %v5608_v29  ;;  %vm2728_vm0 = vcmask 1042434   ;;  %v2330_v18 = vsel %vm2171_vm1, %v2329_v30, %v2325_v63  ;;  %v2404_v49 = vsel %vm2164_vm15, %v2403_v38, %v2399_v4  ;;  %v7690_v30 = vld [vmem:[#allocation45_spill] sm:$0xff]  ;;  %v7691_v38 = vld [vmem:[#allocation46_spill] sm:$0xff] }
 0x287   :  { %v2408_v31 = vrot.slane %v7685_v24, %v7677_v59  ;;  %v2473_v42 = vsel %vm2150_vm13, %v2472_v37, %v2468_v47  ;;  %v2492_v48 = vrot.slane %v7686_v14, %v5605_v5  ;;  %v2571_v52 = vrot.slane %v7687_v35, %v5605_v5  ;;  %v7693_v47 = vld [vmem:[#allocation51_spill] sm:$0xff]  ;;  %v7694_v63 = vld [vmem:[#allocation50_spill] sm:$0xff] }
 0x288   :  { %v2478_v57 = vsel %vm7680_vm14, %v2477_v53, %v2473_v42  ;;  %v2482_v17 = vrot.slane %v7688_v15, %v7674_v16  ;;  %v2487_v26 = vrot.slane %v7689_v22, %v7677_v59  ;;  %v2501_v11 = vrot.slane %v7690_v30, %v5615_v6  ;;  %v7695_v45 = vld [vmem:[#allocation34_spill] sm:$0xff]  ;;  %v7696_v42 = vld [vmem:[#allocation52_spill] sm:$0xff]  ;;  %v7699_v15 = vld [vmem:[#allocation53_spill] sm:$0xff] }
 0x289   :  { %v2497_v10 = vsel %vm2073_vm2, %v2496_v2, %v2492_v48  ;;  %v2506_v4 = vrot.slane %v7691_v38, %v5629_v27  ;;  %v2576_v28 = vsel %vm2073_vm2, %v2575_v50, %v2571_v52  ;;  %v2580_v37 = vrot.slane %v7692_v51, %v5615_v6 }
 0x28a   :  { %v6336_v13 = vpop.xlane.xlu0 %1908  ;;  %v6338_v54 = vpop.xlane.xlu1 %1821  ;;  %v2650_v60 = vrot.slane %v7693_v47, %v5605_v5  ;;  %v2654_v53 = vrot.slane %v6204_v7, %v5608_v29  ;;  %v2511_v23 = vrot.slane %v7694_v63, %v5637_v34  ;;  %v2585_v2 = vrot.slane %v6208_v39, %v5629_v27  ;;  %v7697_v39 = vld [vmem:[#allocation26_spill] sm:$0xff] }
 0x28b   :  { %v6426_v24 = vsel %vm2728_vm0, %v2330_v18, %v7695_v45  ;;  %v6429_v50 = vsel %vm2171_vm1, %v2408_v31, %v2404_v49  ;;  %v2659_v14 = vrot.slane %v7696_v42, %v5615_v6  ;;  %v2483_v29 = vsel %vm2164_vm15, %v2482_v17, %v2478_v57  ;;  %v7698_v18 = vld [vmem:[#allocation16_spill] sm:$0xff]  ;;  %v7705_v45 = vld [vmem:[#allocation18_spill] sm:$0xff] }
 0x28c   :  { %v2502_v7 = vsel %vm2080_vm3, %v2501_v11, %v2497_v10  ;;  %v2516_v35 = vrot.slane %v7697_v39, %v5655_v25  ;;  %v2590_v52 = vrot.slane %v7698_v18, %v5637_v34  ;;  %v6444_v49 = vsel %vm2171_vm1, %v2487_v26, %v2483_v29  ;;  %v7700_v11 = vld [vmem:[#allocation56_spill] sm:$0xff]  ;;  %v7701_v26 = vld [vmem:[#allocation59_spill] sm:$0xff] }
 0x28d   :  { %v2507_v31 = vsel %vm2087_vm4, %v2506_v4, %v2502_v7  ;;  %v2581_v6 = vsel %vm2080_vm3, %v2580_v37, %v2576_v28  ;;  %v2664_v22 = vrot.slane %v7699_v15, %v5629_v27  ;;  %v2655_v57 = vsel %vm2073_vm2, %v2654_v53, %v2650_v60  ;;  %v7702_v4 = vld [vmem:[#allocation29_spill] sm:$0xff] }
 0x28e   :  { %v6358_v32 = vpop.xlane.xlu0 %1866  ;;  %v6360_v8 = vpop.xlane.xlu1 %1911  ;;  %v2512_v17 = vsel %vm2094_vm5, %v2511_v23, %v2507_v31  ;;  %v2586_v30 = vsel %vm2087_vm4, %v2585_v2, %v2581_v6  ;;  %v2521_v10 = vrot.slane %v7700_v11, %v5663_v19  ;;  %v2660_v38 = vsel %vm2080_vm3, %v2659_v14, %v2655_v57  ;;  %v7703_v37 = vld [vmem:[#allocation17_spill] sm:$0xff]  ;;  %v7704_v23 = vld [vmem:[#allocation22_spill] sm:$0xff] }
 0x28f   :  { %v2595_v51 = vrot.slane %v7701_v26, %v5655_v25  ;;  %v2669_v28 = vrot.slane %v7702_v4, %v5637_v34  ;;  %v2526_v27 = vrot.slane %v7703_v37, %v5680_v58  ;;  %v2517_v53 = vsel %vm2101_vm6, %v2516_v35, %v2512_v17 }
 0x290   :  { %v2591_v63 = vsel %vm2094_vm5, %v2590_v52, %v2586_v30  ;;  %v2600_v2 = vrot.slane %v7704_v23, %v5663_v19  ;;  %v2674_v42 = vrot.slane %v7705_v45, %v5655_v25  ;;  %v2665_v14 = vsel %vm2087_vm4, %v2664_v22, %v2660_v38  ;;  %vm7706_vm4 = vmmov %vm7680_vm14 }
 0x291   :  { %v2531_v34 = vrot.slane %v6248_v33, %v7623_v12  ;;  %v2605_v29 = vrot.slane %v6250_v56, %v5680_v58  ;;  %v2679_v7 = vrot.slane %v6270_v21, %v5663_v19  ;;  %v2522_v39 = vsel %vm2108_vm7, %v2521_v10, %v2517_v53 }
 0x292   :  { %v6378_v61 = vpop.xlane.xlu0 %1824  ;;  %v6380_v44 = vpop.xlane.xlu1 %1869  ;;  %v2536_v35 = vrot.slane %v6272_v40, %v5704_v9  ;;  %v2610_v18 = vrot.slane %v6292_v55, %v7623_v12  ;;  %v2684_v25 = vrot.slane %v6294_v62, %v5680_v58  ;;  %v2596_v52 = vsel %vm2101_vm6, %v2595_v51, %v2591_v63 }
 0x293   :  { %v2670_v33 = vsel %vm2094_vm5, %v2669_v28, %v2665_v14  ;;  %v2527_v56 = vsel %vm2115_vm8, %v2526_v27, %v2522_v39  ;;  %v2541_v19 = vrot.slane %v6314_v20, %v5710_v46  ;;  %vm2730_vm2 = vcmask 1043459   ;;  %vm7707_vm5 = vmmov %vm7706_vm4 }
 0x294   :  { %v2601_v40 = vsel %vm2108_vm7, %v2600_v2, %v2596_v52  ;;  %v2675_v6 = vsel %vm2101_vm6, %v2674_v42, %v2670_v33  ;;  %v2615_v55 = vrot.slane %v6316_v43, %v5704_v9  ;;  %v2689_v58 = vrot.slane %v6336_v13, %v7623_v12 }
 0x295   :  { %vm2732_vm3 = vcmask 1044484   ;;  %v2532_v62 = vsel %vm2122_vm9, %v2531_v34, %v2527_v56  ;;  %v2606_v15 = vsel %vm2115_vm8, %v2605_v29, %v2601_v40  ;;  %v2680_v20 = vsel %vm2108_vm7, %v2679_v7, %v2675_v6 }
 0x296   :  { %v6399_v36 = vpop.xlane.xlu0 %1914  ;;  %v6401_v0 = vpop.xlane.xlu1 %1827  ;;  %v2546_v22 = vrot.slane %v6338_v54, %v5725_v1  ;;  %v2537_v57 = vsel %vm2129_vm10, %v2536_v35, %v2532_v62  ;;  %v2611_v17 = vsel %vm2122_vm9, %v2610_v18, %v2606_v15  ;;  %v2685_v30 = vsel %vm2115_vm8, %v2684_v25, %v2680_v20  ;;  %vm7708_vm8 = vmmov %vm7706_vm4  ;;  %v7710_v20 = vld [vmem:[#allocation15_spill] sm:$0xff] }
 0x297   :  { %v2620_v43 = vrot.slane %v6358_v32, %v5710_v46  ;;  %v2542_v12 = vsel %vm2136_vm11, %v2541_v19, %v2537_v57  ;;  %v2694_v13 = vrot.slane %v6360_v8, %v5704_v9  ;;  %v2551_v11 = vrot.slane %v6378_v61, %v5731_v41  ;;  %v7711_v57 = vld [vmem:[#allocation14_spill] sm:$0xff] }
 0x298   :  { %v2625_v54 = vrot.slane %v6380_v44, %v5725_v1  ;;  %v2616_v26 = vsel %vm2129_vm10, %v2615_v55, %v2611_v17  ;;  %v2690_v51 = vsel %vm2122_vm9, %v2689_v58, %v2685_v30  ;;  %v2556_v32 = vrot.slane %v6401_v0, %v5746_v3 }
 0x299   :  { %v2547_v9 = vsel %vm2143_vm12, %v2546_v22, %v2542_v12  ;;  %v2699_v8 = vrot.slane %v6399_v36, %v5710_v46  ;;  %v2621_v28 = vsel %vm2136_vm11, %v2620_v43, %v2616_v26  ;;  %v2695_v27 = vsel %vm2129_vm10, %v2694_v13, %v2690_v51 }
 0x29a   :  { %v6433_v5 = vpop.xlane.xlu0 %1872  ;;  %v6435_v48 = vpop.xlane.xlu1 %1917  ;;  %v2552_v53 = vsel %vm2150_vm13, %v2551_v11, %v2547_v9  ;;  %v2626_v46 = vsel %vm2143_vm12, %v2625_v54, %v2621_v28  ;;  %vm2734_vm6 = vcmask 1045509   ;;  %v2731_v7 = vsel %vm2730_vm2, %v6429_v50, %v6426_v24 }
 0x29b   :  { %v2630_v4 = vrot.slane %v6433_v5, %v5731_v41  ;;  %v2704_v37 = vrot.slane %v6435_v48, %v5725_v1  ;;  %v2700_v2 = vsel %vm2136_vm11, %v2699_v8, %v2695_v27  ;;  %vm2736_vm7 = vcmask 1046534  }
 0x29c   :  { %v2733_v18 = vsel %vm2732_vm3, %v6444_v49, %v2731_v7  ;;  %vm2738_vm9 = vcmask 1047559   ;;  %v4319_v49 = vmov 0   ;;  %vm7709_vm11 = vcmask 7168  }
 0x29d   :  { %v2631_v23 = vsel %vm2150_vm13, %v2630_v4, %v2626_v46  ;;  %3980 = vset.pattern.permute.xlu0 %v4319_v49  ;;  %3981 = vset.pattern.permute.xlu1 %v4319_v49  ;;  %v7712_v17 = vsub.s32 1, %v7711_v57  ;;  %v7713_v43 = vsub.s32 2, %v7711_v57  ;;  %v7714_v13 = vsub.s32 3, %v7711_v57 }
 0x29e   :  { %v6462_v47 = vpop.xlane.xlu0 %1830  ;;  %v6464_v60 = vpop.xlane.xlu1 %1875  ;;  %v7718_v46 = vsub.s32 6, %v7711_v57 }
 0x29f   :  { %v2561_v61 = vrot.slane %v6462_v47, %v7674_v16  ;;  %v2635_v44 = vrot.slane %v6464_v60, %v5746_v3  ;;  %v2557_v60 = vsel %vm7706_vm4, %v2556_v32, %v2552_v53 }
 0x2a1   :  { %v2562_v45 = vsel %vm2164_vm15, %v2561_v61, %v2557_v60  ;;  %v2636_v42 = vsel %vm7707_vm5, %v2635_v44, %v2631_v23  ;;  %v2759_v61 = vld [vmem:[#allocation5] sm:$0xff] }
 0x2a2   :  { %v1921_v21 = vpop.xlane.xlu0 %1920  ;;  %v1834_v31 = vpop.xlane.xlu1 %1833 }
 0x2a3   :  { %v2566_v0 = vrot.slane %v1834_v31, %v7677_v59  ;;  %v2709_v36 = vrot.slane %v1921_v21, %v5731_v41  ;;  %v2705_v41 = vsel %vm2143_vm12, %v2704_v37, %v2700_v2  ;;  %v7716_v37 = vsub.s32 5, %v7711_v57  ;;  %vm7717_vm12 = vmmov %vm7709_vm11 }
 0x2a5   :  { %v2567_v34 = vsel %vm2171_vm1, %v2566_v0, %v2562_v45  ;;  %v2710_v39 = vsel %vm2150_vm13, %v2709_v36, %v2705_v41  ;;  %vm7720_vm13 = vcmask 261120  }
 0x2a6   :  { %v1879_v10 = vpop.xlane.xlu0 %1878  ;;  %v1924_v38 = vpop.xlane.xlu1 %1923  ;;  %v2735_v56 = vsel %vm2734_vm6, %v2567_v34, %v2733_v18 }
 0x2a7   :  { %v2640_v5 = vrot.slane %v1879_v10, %v7674_v16  ;;  %v2714_v1 = vrot.slane %v1924_v38, %v5746_v3  ;;  %v1932_v3 = vld [vmem:[%s7480_s3] sm:$0xff]  ;;  %v7715_v38 = vsub.s32 4, %v7711_v57  ;;  %s3934_s3 = sshll.u32 %s4321_s6, 4  ;;  %s3935_s3 = int_to_ptr.vmem [resolvable:$true] %s3934_s3 }
 0x2a8   :  { %vm1933_vm10 = vcmp.gt.f32.partialorder %v1932_v3, 0.0 }
 0x2a9   :  { %v2641_v29 = vsel %vm2164_vm15, %v2640_v5, %v2636_v42  ;;  %v2715_v25 = vsel %vm7708_vm8, %v2714_v1, %v2710_v39  ;;  %v7719_v1 = vsub.s32 7, %v7711_v57 }
 0x2aa   :  { %v1882_v47 = vpop.xlane.xlu0 %1881  ;;  %v1927_v63 = vpop.xlane.xlu1 %1926 }
 0x2ab   :  { %v2645_v48 = vrot.slane %v1882_v47, %v7677_v59  ;;  %v2719_v14 = vrot.slane %v1927_v63, %v7674_v16 }
 0x2ad   :  { %v2646_v35 = vsel %vm2171_vm1, %v2645_v48, %v2641_v29  ;;  %v2720_v33 = vsel %vm2164_vm15, %v2719_v14, %v2715_v25  ;;  %vm7721_vm15 = vmmov %vm7720_vm13 }
 0x2ae   :  { %v1930_v16 = vpop.xlane.xlu0 %1929  ;;  %v2737_v50 = vsel %vm2736_vm7, %v2646_v35, %v2735_v56 }
 0x2af   :  { %v2724_v52 = vrot.slane %v1930_v16, %v7677_v59  ;;  %v6567_v59 = vld [vmem:[#allocation4] sm:$0xff] }
 0x2b1   :  { %v2725_v24 = vsel %vm2171_vm1, %v2724_v52, %v2720_v33  ;;  %vm7722_vm1 = vmmov %vm7720_vm13 }
 0x2b2   :  { %v2739_v19 = vsel %vm2738_vm9, %v2725_v24, %v2737_v50  ;;  %vm7723_vm14 = vmmov %vm7722_vm1 }
 0x2b3   :  { %v6564_v21 = vsel %vm1933_vm10, %v2739_v19, -1e+30  ;;  %vm7724_vm4 = vmmov %vm7722_vm1 }
 0x2b4   :  { %2745 = vmax.xlane.f32.xlu1 %v6564_v21  ;;  %vm7725_vm5 = vmmov %vm7722_vm1 }
 0x2b5   :  { %vm7726_vm8 = vmmov %vm7722_vm1 }
 0x2b6   :  { %vm7727_vm10 = vmmov %vm7722_vm1 }
 0x33d   :  { %v2746_v31 = vpop.xlane.xlu1 %2745 }
 0x33e   :  { %v6570_v40 = vmax.f32 %v6567_v59, %v2746_v31 }
 0x340   :  { %v2748_v6 = vsub.f32 %v6567_v59, %v6570_v40  ;;  %3879 = vst.msk [vmem:[#allocation4] sm:$0xff] %vm7709_vm11, %v6570_v40  ;;  %2753 = vperm.xlu0 %3980, %v6570_v40   ;;  %vm7728_vm11 = vmmov %vm7722_vm1 }
 0x342   :  { %v2749_v54 = vmul.f32 1.442695, %v2748_v6 }
 0x3bb   :  { %v2754_v55 = vpop.permute.xlu0 %2753 }
 0x3bc   :  { %v2756_v58 = vsub.f32 %v6564_v21, %v2754_v55 }
 0x3be   :  { %v2757_v62 = vmul.f32 1.442695, %v2756_v58 }
 0x3c0   :  { %4239 = vpow2.f32 %v2757_v62  ;;  %v3318_v62 = vld [vmem:[%s7478_s1 + $0x80] sm:$0xff] }
 0x3c1   :  { %4241 = vpow2.f32 %v2749_v54  ;;  %v3321_v54 = vld [vmem:[%s7478_s1 + $0x98] sm:$0xff] }
 0x3cd   :  { %v6578_v15 = vpop.eup %4239 }
 0x3ce   :  { %2761 = vadd.xlane.f32.xlu1 %v6578_v15  ;;  %v2769_v22 = vrot.slane %v6578_v15, %v7710_v20  ;;  %v2836_v30 = vrot.slane %v6578_v15, %v7712_v17  ;;  %v2903_v12 = vrot.slane %v6578_v15, %v7713_v43  ;;  %v2970_v11 = vrot.slane %v6578_v15, %v7714_v13  ;;  %v6614_v8 = vpop.eup %4241  ;;  %v3319_v20 = vld [vmem:[%s7478_s1 + $0x88] sm:$0xff] }
 0x3cf   :  { %v6600_v26 = vrot.slane %v6578_v15, %v7715_v38  ;;  %v2760_v28 = vmul.f32 %v6614_v8, %v2759_v61  ;;  %v6623_v0 = vrot.slane %v6578_v15, %v7716_v37  ;;  %v6632_v36 = vrot.slane %v6578_v15, %v7718_v46 }
 0x3d0   :  { %2799 = vbcast.lane.b32.xlu0 %v2769_v22, 312  ;;  %v6647_v48 = vrot.slane %v6578_v15, %v7719_v1  ;;  %v3302_v1 = vld [vmem:[%s7478_s1] sm:$0xff] }
 0x3d4   :  { %2807 = vbcast.lane.b32.xlu0 %v2769_v22, 328 }
 0x3d8   :  { %2815 = vbcast.lane.b32.xlu0 %v2769_v22, 344 }
 0x3dc   :  { %2823 = vbcast.lane.b32.xlu0 %v2769_v22, 360 }
 0x3df   :  { %2771 = vbcast.lane.b32.xlu1 %v2769_v22, 256 }
 0x3e0   :  { %2831 = vbcast.lane.b32.xlu0 %v2769_v22, 376 }
 0x3e3   :  { %2775 = vbcast.lane.b32.xlu1 %v2769_v22, 264 }
 0x3e4   :  { %2842 = vbcast.lane.b32.xlu0 %v2836_v30, 264 }
 0x3e7   :  { %2779 = vbcast.lane.b32.xlu1 %v2769_v22, 272 }
 0x3e8   :  { %2850 = vbcast.lane.b32.xlu0 %v2836_v30, 280 }
 0x3eb   :  { %2783 = vbcast.lane.b32.xlu1 %v2769_v22, 280 }
 0x3ec   :  { %2858 = vbcast.lane.b32.xlu0 %v2836_v30, 296 }
 0x3ef   :  { %2787 = vbcast.lane.b32.xlu1 %v2769_v22, 288 }
 0x3f0   :  { %2866 = vbcast.lane.b32.xlu0 %v2836_v30, 312 }
 0x3f3   :  { %2791 = vbcast.lane.b32.xlu1 %v2769_v22, 296 }
 0x3f4   :  { %2874 = vbcast.lane.b32.xlu0 %v2836_v30, 328 }
 0x3f7   :  { %2795 = vbcast.lane.b32.xlu1 %v2769_v22, 304 }
 0x3f8   :  { %2882 = vbcast.lane.b32.xlu0 %v2836_v30, 344 }
 0x3fb   :  { %2803 = vbcast.lane.b32.xlu1 %v2769_v22, 320 }
 0x3fc   :  { %2890 = vbcast.lane.b32.xlu0 %v2836_v30, 360 }
 0x3ff   :  { %2811 = vbcast.lane.b32.xlu1 %v2769_v22, 336 }
 0x400   :  { %2898 = vbcast.lane.b32.xlu0 %v2836_v30, 376 }
 0x403   :  { %2819 = vbcast.lane.b32.xlu1 %v2769_v22, 352 }
 0x404   :  { %2909 = vbcast.lane.b32.xlu0 %v2903_v12, 264 }
 0x407   :  { %2827 = vbcast.lane.b32.xlu1 %v2769_v22, 368  ;;  %v3320_v22 = vld [vmem:[%s7478_s1 + $0x90] sm:$0xff] }
 0x408   :  { %2917 = vbcast.lane.b32.xlu0 %v2903_v12, 280 }
 0x40b   :  { %2838 = vbcast.lane.b32.xlu1 %v2836_v30, 256 }
 0x40c   :  { %2925 = vbcast.lane.b32.xlu0 %v2903_v12, 296 }
 0x40f   :  { %2846 = vbcast.lane.b32.xlu1 %v2836_v30, 272 }
 0x410   :  { %2933 = vbcast.lane.b32.xlu0 %v2903_v12, 312 }
 0x413   :  { %2854 = vbcast.lane.b32.xlu1 %v2836_v30, 288 }
 0x414   :  { %2941 = vbcast.lane.b32.xlu0 %v2903_v12, 328 }
 0x417   :  { %2862 = vbcast.lane.b32.xlu1 %v2836_v30, 304 }
 0x418   :  { %2949 = vbcast.lane.b32.xlu0 %v2903_v12, 344 }
 0x41b   :  { %2870 = vbcast.lane.b32.xlu1 %v2836_v30, 320 }
 0x41c   :  { %2957 = vbcast.lane.b32.xlu0 %v2903_v12, 360 }
 0x41f   :  { %2878 = vbcast.lane.b32.xlu1 %v2836_v30, 336 }
 0x420   :  { %2965 = vbcast.lane.b32.xlu0 %v2903_v12, 376 }
 0x423   :  { %2886 = vbcast.lane.b32.xlu1 %v2836_v30, 352 }
 0x424   :  { %2976 = vbcast.lane.b32.xlu0 %v2970_v11, 264 }
 0x427   :  { %2894 = vbcast.lane.b32.xlu1 %v2836_v30, 368 }
 0x428   :  { %2984 = vbcast.lane.b32.xlu0 %v2970_v11, 280 }
 0x42b   :  { %2905 = vbcast.lane.b32.xlu1 %v2903_v12, 256 }
 0x42c   :  { %2992 = vbcast.lane.b32.xlu0 %v2970_v11, 296 }
 0x42f   :  { %2913 = vbcast.lane.b32.xlu1 %v2903_v12, 272 }
 0x430   :  { %3000 = vbcast.lane.b32.xlu0 %v2970_v11, 312 }
 0x433   :  { %2921 = vbcast.lane.b32.xlu1 %v2903_v12, 288 }
 0x434   :  { %3008 = vbcast.lane.b32.xlu0 %v2970_v11, 328 }
 0x437   :  { %2929 = vbcast.lane.b32.xlu1 %v2903_v12, 304 }
 0x438   :  { %3016 = vbcast.lane.b32.xlu0 %v2970_v11, 344 }
 0x43b   :  { %2937 = vbcast.lane.b32.xlu1 %v2903_v12, 320 }
 0x43c   :  { %3024 = vbcast.lane.b32.xlu0 %v2970_v11, 360 }
 0x43f   :  { %2945 = vbcast.lane.b32.xlu1 %v2903_v12, 336 }
 0x440   :  { %3032 = vbcast.lane.b32.xlu0 %v2970_v11, 376 }
 0x442   :  { %v6595_v10 = vpop.permute.xlu0 %2799 }
 0x443   :  { %2953 = vbcast.lane.b32.xlu1 %v2903_v12, 352 }
 0x444   :  { %3043 = vbcast.lane.b32.xlu0 %v6600_v26, 264 }
 0x446   :  { %v6603_v51 = vpop.permute.xlu0 %2807 }
 0x447   :  { %2961 = vbcast.lane.b32.xlu1 %v2903_v12, 368 }
 0x448   :  { %3051 = vbcast.lane.b32.xlu0 %v6600_v26, 280 }
 0x44a   :  { %v6606_v32 = vpop.permute.xlu0 %2815 }
 0x44b   :  { %2972 = vbcast.lane.b32.xlu1 %v2970_v11, 256 }
 0x44c   :  { %3059 = vbcast.lane.b32.xlu0 %v6600_v26, 296 }
 0x44e   :  { %v6609_v4 = vpop.permute.xlu0 %2823 }
 0x44f   :  { %2980 = vbcast.lane.b32.xlu1 %v2970_v11, 272 }
 0x450   :  { %3067 = vbcast.lane.b32.xlu0 %v6600_v26, 312 }
 0x452   :  { %v6612_v9 = vpop.permute.xlu0 %2831 }
 0x453   :  { %2988 = vbcast.lane.b32.xlu1 %v2970_v11, 288 }
 0x454   :  { %3075 = vbcast.lane.b32.xlu0 %v6600_v26, 328 }
 0x456   :  { %v6617_v44 = vpop.permute.xlu0 %2842 }
 0x457   :  { %v2762_v5 = vpop.xlane.xlu1 %2761  ;;  %2996 = vbcast.lane.b32.xlu1 %v2970_v11, 304  ;;  %v3447_v30 = vmul.f32 %v3319_v20, %v6617_v44  ;;  %v3334_v20 = vld [vmem:[%s7478_s1 + $0x100] sm:$0xff] }
 0x458   :  { %v2763_v27 = vadd.f32 %v2762_v5, %v2760_v28  ;;  %3106 = vbcast.lane.b32.xlu0 %v6623_v0, 256  ;;  %v3303_v28 = vld [vmem:[%s7478_s1 + $0x8] sm:$0xff]  ;;  %v3322_v5 = vld [vmem:[%s7478_s1 + $0xa0] sm:$0xff] }
 0x459   :  { %v3596_v38 = vsel %vm7721_vm15, %v3447_v30, 0.0  ;;  %vm7731_vm15 = vmmov %vm7722_vm1 }
 0x45a   :  { %2765 = vst.msk [vmem:[#allocation5] sm:$0xff] %vm7717_vm12, %v2763_v27  ;;  %v6627_v53 = vpop.permute.xlu0 %2850  ;;  %vm7729_vm12 = vmmov %vm7722_vm1 }
 0x45b   :  { %3004 = vbcast.lane.b32.xlu1 %v2970_v11, 320  ;;  %v6634_v47 = vpop.permute.xlu1 %2771  ;;  %v3449_v46 = vmul.f32 %v3321_v54, %v6627_v53 }
 0x45c   :  { %3173 = vbcast.lane.b32.xlu0 %v6632_v36, 256  ;;  %v3430_v30 = vmul.f32 %v3302_v1, %v6634_v47 }
 0x45d   :  { %v3600_v54 = vsel %vm7723_vm14, %v3449_v46, 0.0  ;;  %vm7732_vm14 = vmmov %vm7722_vm1 }
 0x45e   :  { %v6637_v63 = vpop.permute.xlu0 %2858 }
 0x45f   :  { %3012 = vbcast.lane.b32.xlu1 %v2970_v11, 336  ;;  %v6639_v60 = vpop.permute.xlu1 %2775 }
 0x460   :  { %3114 = vbcast.lane.b32.xlu0 %v6623_v0, 272  ;;  %v3431_v53 = vmul.f32 %v3303_v28, %v6639_v60  ;;  %v3337_v28 = vld [vmem:[%s7478_s1 + $0x118] sm:$0xff] }
 0x462   :  { %v6642_v23 = vpop.permute.xlu0 %2866 }
 0x463   :  { %3020 = vbcast.lane.b32.xlu1 %v2970_v11, 352  ;;  %v6649_v2 = vpop.permute.xlu1 %2779 }
 0x464   :  { %3244 = vbcast.lane.b32.xlu0 %v6647_v48, 264 }
 0x466   :  { %v6652_v45 = vpop.permute.xlu0 %2874 }
 0x467   :  { %3028 = vbcast.lane.b32.xlu1 %v2970_v11, 368  ;;  %v6654_v42 = vpop.permute.xlu1 %2783 }
 0x468   :  { %3118 = vbcast.lane.b32.xlu0 %v6623_v0, 280 }
 0x46a   :  { %v6657_v14 = vpop.permute.xlu0 %2882 }
 0x46b   :  { %3039 = vbcast.lane.b32.xlu1 %v6600_v26, 256  ;;  %v6660_v41 = vpop.permute.xlu1 %2787 }
 0x46c   :  { %3185 = vbcast.lane.b32.xlu0 %v6632_v36, 280 }
 0x46e   :  { %v6663_v34 = vpop.permute.xlu0 %2890 }
 0x46f   :  { %3047 = vbcast.lane.b32.xlu1 %v6600_v26, 272  ;;  %v6666_v29 = vpop.permute.xlu1 %2791 }
 0x470   :  { %3252 = vbcast.lane.b32.xlu0 %v6647_v48, 280 }
 0x472   :  { %v6669_v3 = vpop.permute.xlu0 %2898 }
 0x473   :  { %3055 = vbcast.lane.b32.xlu1 %v6600_v26, 288  ;;  %v6672_v7 = vpop.permute.xlu1 %2795 }
 0x474   :  { %3126 = vbcast.lane.b32.xlu0 %v6623_v0, 296 }
 0x476   :  { %v6675_v39 = vpop.permute.xlu0 %2909 }
 0x477   :  { %3063 = vbcast.lane.b32.xlu1 %v6600_v26, 304  ;;  %v6678_v35 = vpop.permute.xlu1 %2803 }
 0x478   :  { %3193 = vbcast.lane.b32.xlu0 %v6632_v36, 296 }
 0x47a   :  { %v6681_v16 = vpop.permute.xlu0 %2917 }
 0x47b   :  { %3071 = vbcast.lane.b32.xlu1 %v6600_v26, 320  ;;  %v6684_v18 = vpop.permute.xlu1 %2811 }
 0x47c   :  { %3260 = vbcast.lane.b32.xlu0 %v6647_v48, 296 }
 0x47e   :  { %v6687_v25 = vpop.permute.xlu0 %2925 }
 0x47f   :  { %3079 = vbcast.lane.b32.xlu1 %v6600_v26, 336  ;;  %v6690_v52 = vpop.permute.xlu1 %2819 }
 0x480   :  { %3134 = vbcast.lane.b32.xlu0 %v6623_v0, 312 }
 0x482   :  { %v6693_v33 = vpop.permute.xlu0 %2933 }
 0x483   :  { %3110 = vbcast.lane.b32.xlu1 %v6623_v0, 264  ;;  %v6696_v56 = vpop.permute.xlu1 %2827 }
 0x484   :  { %3201 = vbcast.lane.b32.xlu0 %v6632_v36, 312 }
 0x486   :  { %v6699_v24 = vpop.permute.xlu0 %2941 }
 0x487   :  { %3177 = vbcast.lane.b32.xlu1 %v6632_v36, 264  ;;  %v2839_v50 = vpop.permute.xlu1 %2838 }
 0x488   :  { %3268 = vbcast.lane.b32.xlu0 %v6647_v48, 312  ;;  %v3446_v17 = vmul.f32 %v3318_v62, %v2839_v50  ;;  %v3304_v50 = vld [vmem:[%s7478_s1 + $0x10] sm:$0xff] }
 0x489   :  { %v3432_v60 = vmul.f32 %v3304_v50, %v6649_v2  ;;  %v3559_v2 = vsel %vm7724_vm4, %v3431_v53, 0.0  ;;  %vm7733_vm4 = vmmov %vm7722_vm1 }
 0x48a   :  { %v6703_v19 = vpop.permute.xlu0 %2949  ;;  %v3595_v11 = vsel %vm7720_vm13, %v3446_v17, 0.0  ;;  %vm7730_vm13 = vmmov %vm7722_vm1 }
 0x48b   :  { %3240 = vbcast.lane.b32.xlu1 %v6647_v48, 256  ;;  %v2847_v49 = vpop.permute.xlu1 %2846  ;;  %v3597_v37 = vadd.f32 %v3596_v38, %v3595_v11  ;;  %v3323_v38 = vld [vmem:[%s7478_s1 + $0xa8] sm:$0xff] }
 0x48c   :  { %3142 = vbcast.lane.b32.xlu0 %v6623_v0, 328  ;;  %v3448_v43 = vmul.f32 %v3320_v22, %v2847_v49  ;;  %v3335_v49 = vld [vmem:[%s7478_s1 + $0x108] sm:$0xff] }
 0x48d   :  { %v3463_v47 = vmul.f32 %v3335_v49, %v6675_v39  ;;  %v3558_v49 = vsel %vm7727_vm10, %v3430_v30, 0.0  ;;  %v3465_v30 = vmul.f32 %v3337_v28, %v6681_v16  ;;  %vm7736_vm10 = vmmov %vm7722_vm1 }
 0x48e   :  { %v6707_v59 = vpop.permute.xlu0 %2957  ;;  %v3598_v61 = vsel %vm7722_vm1, %v3448_v43, 0.0  ;;  %v3305_v43 = vld [vmem:[%s7478_s1 + $0x18] sm:$0xff] }
 0x48f   :  { %3181 = vbcast.lane.b32.xlu1 %v6632_v36, 272  ;;  %v2855_v31 = vpop.permute.xlu1 %2854  ;;  %v3599_v62 = vadd.f32 %v3598_v61, %v3597_v37  ;;  %v3433_v46 = vmul.f32 %v3305_v43, %v6654_v42  ;;  %v3324_v42 = vld [vmem:[%s7478_s1 + $0xb0] sm:$0xff]  ;;  %v3633_v43 = vsel %vm7729_vm12, %v3463_v47, 0.0  ;;  %vm7738_vm12 = vmmov %vm7722_vm1 }
 0x490   :  { %3209 = vbcast.lane.b32.xlu0 %v6632_v36, 328  ;;  %v3450_v22 = vmul.f32 %v3322_v5, %v2855_v31  ;;  %v3306_v31 = vld [vmem:[%s7478_s1 + $0x20] sm:$0xff]  ;;  %v3336_v5 = vld [vmem:[%s7478_s1 + $0x110] sm:$0xff] }
 0x491   :  { %v3601_v37 = vadd.f32 %v3600_v54, %v3599_v62  ;;  %v3434_v62 = vmul.f32 %v3306_v31, %v6660_v41  ;;  %v3560_v41 = vadd.f32 %v3559_v2, %v3558_v49  ;;  %v3308_v54 = vld [vmem:[%s7478_s1 + $0x30] sm:$0xff]  ;;  %v3563_v16 = vsel %vm7730_vm13, %v3433_v46, 0.0  ;;  %v3325_v46 = vld [vmem:[%s7478_s1 + $0xb8] sm:$0xff]  ;;  %vm7739_vm13 = vmmov %vm7722_vm1 }
 0x492   :  { %v6711_v40 = vpop.permute.xlu0 %2965  ;;  %v3602_v1 = vsel %vm7725_vm5, %v3450_v22, 0.0  ;;  %v3561_v22 = vsel %vm7728_vm11, %v3432_v60, 0.0  ;;  %v3338_v60 = vld [vmem:[%s7478_s1 + $0x120] sm:$0xff]  ;;  %vm7734_vm5 = vmmov %vm7722_vm1 }
 0x493   :  { %3248 = vbcast.lane.b32.xlu1 %v6647_v48, 272  ;;  %v6714_v6 = vpop.permute.xlu1 %2862  ;;  %v3603_v31 = vadd.f32 %v3602_v1, %v3601_v37  ;;  %v3565_v37 = vsel %vm7732_vm14, %v3434_v62, 0.0  ;;  %v3341_v62 = vld [vmem:[%s7478_s1 + $0x138] sm:$0xff]  ;;  %vm7737_vm11 = vmmov %vm7722_vm1 }
 0x494   :  { %3276 = vbcast.lane.b32.xlu0 %v6647_v48, 328  ;;  %v3452_v28 = vmul.f32 %v3324_v42, %v6714_v6  ;;  %v3637_v6 = vsel %vm7733_vm4, %v3465_v30, 0.0  ;;  %vm7741_vm14 = vmmov %vm7722_vm1 }
 0x495   :  { %vm7742_vm4 = vmmov %vm7722_vm1 }
 0x496   :  { %v6717_v55 = vpop.permute.xlu0 %2976 }
 0x497   :  { %3122 = vbcast.lane.b32.xlu1 %v6623_v0, 288  ;;  %v6720_v58 = vpop.permute.xlu1 %2870 }
 0x498   :  { %3213 = vbcast.lane.b32.xlu0 %v6632_v36, 336 }
 0x49a   :  { %v6726_v15 = vpop.permute.xlu0 %2984 }
 0x49b   :  { %3189 = vbcast.lane.b32.xlu1 %v6632_v36, 288  ;;  %v6735_v57 = vpop.permute.xlu1 %2878 }
 0x49c   :  { %3280 = vbcast.lane.b32.xlu0 %v6647_v48, 336 }
 0x49e   :  { %v6739_v12 = vpop.permute.xlu0 %2992 }
 0x49f   :  { %3256 = vbcast.lane.b32.xlu1 %v6647_v48, 288  ;;  %v6742_v13 = vpop.permute.xlu1 %2886 }
 0x4a0   :  { %3217 = vbcast.lane.b32.xlu0 %v6632_v36, 344 }
 0x4a2   :  { %v6751_v44 = vpop.permute.xlu0 %3000 }
 0x4a3   :  { %3130 = vbcast.lane.b32.xlu1 %v6623_v0, 304  ;;  %v6760_v27 = vpop.permute.xlu1 %2894 }
 0x4a4   :  { %3284 = vbcast.lane.b32.xlu0 %v6647_v48, 344 }
 0x4a6   :  { %v6777_v17 = vpop.permute.xlu0 %3008 }
 0x4a7   :  { %3197 = vbcast.lane.b32.xlu1 %v6632_v36, 304  ;;  %v2906_v11 = vpop.permute.xlu1 %2905 }
 0x4a8   :  { %v3462_v61 = vmul.f32 %v3334_v20, %v2906_v11  ;;  %3221 = vbcast.lane.b32.xlu0 %v6632_v36, 352  ;;  %v3451_v20 = vmul.f32 %v3323_v38, %v6637_v63  ;;  %v3307_v11 = vld [vmem:[%s7478_s1 + $0x28] sm:$0xff] }
 0x4a9   :  { %v3339_v38 = vld [vmem:[%s7478_s1 + $0x128] sm:$0xff]  ;;  %v3435_v47 = vmul.f32 %v3307_v11, %v6666_v29  ;;  %v3436_v29 = vmul.f32 %v3308_v54, %v6672_v7  ;;  %v3309_v54 = vld [vmem:[%s7478_s1 + $0x38] sm:$0xff] }
 0x4aa   :  { %v3632_v39 = vsel %vm7726_vm8, %v3462_v61, 0.0  ;;  %v6804_v50 = vpop.permute.xlu0 %3016  ;;  %v3604_v49 = vsel %vm7722_vm1, %v3451_v20, 0.0  ;;  %v3467_v11 = vmul.f32 %v3339_v38, %v6687_v25  ;;  %vm7735_vm8 = vmmov %vm7722_vm1  ;;  %v3453_v38 = vmul.f32 %v3325_v46, %v6642_v23  ;;  %v3310_v23 = vld [vmem:[%s7478_s1 + $0x40] sm:$0xff] }
 0x4ab   :  { %3264 = vbcast.lane.b32.xlu1 %v6647_v48, 304  ;;  %v2914_v53 = vpop.permute.xlu1 %2913  ;;  %v3634_v61 = vadd.f32 %v3633_v43, %v3632_v39  ;;  %v3567_v7 = vsel %vm7734_vm5, %v3435_v47, 0.0  ;;  %v3606_v30 = vsel %vm7735_vm8, %v3452_v28, 0.0  ;;  %v3569_v47 = vsel %vm7737_vm11, %v3436_v29, 0.0  ;;  %v3342_v46 = vld [vmem:[%s7478_s1 + $0x140] sm:$0xff]  ;;  %vm7743_vm5 = vmmov %vm7722_vm1 }
 0x4ac   :  { %v3464_v63 = vmul.f32 %v3336_v5, %v2914_v53  ;;  %3288 = vbcast.lane.b32.xlu0 %v6647_v48, 352  ;;  %v3562_v53 = vadd.f32 %v3561_v22, %v3560_v41  ;;  %v3605_v22 = vadd.f32 %v3604_v49, %v3603_v31  ;;  %v3641_v28 = vsel %vm7738_vm12, %v3467_v11, 0.0  ;;  %vm7744_vm8 = vmmov %vm7722_vm1 }
 0x4ad   :  { %vm7746_vm11 = vmmov %vm7722_vm1 }
 0x4ae   :  { %v3635_v5 = vsel %vm7731_vm15, %v3464_v63, 0.0  ;;  %v6833_v2 = vpop.permute.xlu0 %3024  ;;  %v3564_v20 = vadd.f32 %v3563_v16, %v3562_v53  ;;  %v3340_v63 = vld [vmem:[%s7478_s1 + $0x130] sm:$0xff]  ;;  %vm7740_vm15 = vmmov %vm7722_vm1 }
 0x4af   :  { %v3636_v1 = vadd.f32 %v3635_v5, %v3634_v61  ;;  %3138 = vbcast.lane.b32.xlu1 %v6623_v0, 320  ;;  %v2922_v39 = vpop.permute.xlu1 %2921  ;;  %v3326_v61 = vld [vmem:[%s7478_s1 + $0xc0] sm:$0xff]  ;;  %v3469_v5 = vmul.f32 %v3341_v62, %v6693_v33  ;;  %v3437_v33 = vmul.f32 %v3309_v54, %v6595_v10  ;;  %vm7747_vm12 = vmmov %vm7722_vm1 }
 0x4b0   :  { %v3466_v42 = vmul.f32 %v3338_v60, %v2922_v39  ;;  %3225 = vbcast.lane.b32.xlu0 %v6632_v36, 360  ;;  %v3566_v31 = vadd.f32 %v3565_v37, %v3564_v20  ;;  %v3343_v37 = vld [vmem:[%s7478_s1 + $0x148] sm:$0xff]  ;;  %v3454_v29 = vmul.f32 %v3326_v61, %v6720_v58 }
 0x4b1   :  { %v3638_v43 = vadd.f32 %v3637_v6, %v3636_v1  ;;  %v3607_v1 = vadd.f32 %v3606_v30, %v3605_v22  ;;  %v3645_v10 = vsel %vm7722_vm1, %v3469_v5, 0.0  ;;  %v3471_v58 = vmul.f32 %v3343_v37, %v6699_v24  ;;  %v3345_v30 = vld [vmem:[%s7478_s1 + $0x158] sm:$0xff] }
 0x4b2   :  { %v3639_v25 = vsel %vm7736_vm10, %v3466_v42, 0.0  ;;  %v6854_v41 = vpop.permute.xlu0 %3032  ;;  %v3568_v53 = vadd.f32 %v3567_v7, %v3566_v31  ;;  %v3608_v42 = vsel %vm7740_vm15, %v3453_v38, 0.0  ;;  %v3344_v38 = vld [vmem:[%s7478_s1 + $0x150] sm:$0xff]  ;;  %v3571_v31 = vsel %vm7741_vm14, %v3437_v33, 0.0  ;;  %vm7745_vm10 = vmmov %vm7722_vm1 }
 0x4b3   :  { %v3640_v60 = vadd.f32 %v3639_v25, %v3638_v43  ;;  %3205 = vbcast.lane.b32.xlu1 %v6632_v36, 320  ;;  %v2930_v16 = vpop.permute.xlu1 %2929  ;;  %v3327_v43 = vld [vmem:[%s7478_s1 + $0xc8] sm:$0xff]  ;;  %v3609_v25 = vadd.f32 %v3608_v42, %v3607_v1  ;;  %v3473_v37 = vmul.f32 %v3345_v30, %v6703_v19  ;;  %v3349_v30 = vld [vmem:[%s7478_s1 + $0x178] sm:$0xff]  ;;  %vm7749_vm15 = vmmov %vm7722_vm1 }
 0x4b4   :  { %v3468_v49 = vmul.f32 %v3340_v63, %v2930_v16  ;;  %3292 = vbcast.lane.b32.xlu0 %v6647_v48, 360  ;;  %v3570_v20 = vadd.f32 %v3569_v47, %v3568_v53  ;;  %v3438_v63 = vmul.f32 %v3310_v23, %v6678_v35  ;;  %v3610_v35 = vsel %vm7742_vm4, %v3454_v29, 0.0  ;;  %v3346_v29 = vld [vmem:[%s7478_s1 + $0x160] sm:$0xff]  ;;  %vm7750_vm14 = vmmov %vm7722_vm1 }
 0x4b5   :  { %v3642_v39 = vadd.f32 %v3641_v28, %v3640_v60  ;;  %v3311_v60 = vld [vmem:[%s7478_s1 + $0x48] sm:$0xff]  ;;  %v3455_v16 = vmul.f32 %v3327_v43, %v6652_v45  ;;  %v3328_v28 = vld [vmem:[%s7478_s1 + $0xd0] sm:$0xff]  ;;  %v3649_v23 = vsel %vm7745_vm10, %v3471_v58, 0.0  ;;  %vm7751_vm4 = vmmov %vm7722_vm1 }
 0x4b6   :  { %v3643_v6 = vsel %vm7739_vm13, %v3468_v49, 0.0  ;;  %v6880_v11 = vpop.permute.xlu0 %3043  ;;  %v3572_v47 = vadd.f32 %v3571_v31, %v3570_v20  ;;  %v3573_v53 = vsel %vm7744_vm8, %v3438_v63, 0.0  ;;  %v3312_v45 = vld [vmem:[%s7478_s1 + $0x50] sm:$0xff]  ;;  %v3456_v19 = vmul.f32 %v3328_v28, %v6735_v57  ;;  %vm7748_vm13 = vmmov %vm7722_vm1 }
 0x4b7   :  { %v3644_v62 = vadd.f32 %v3643_v6, %v3642_v39  ;;  %3272 = vbcast.lane.b32.xlu1 %v6647_v48, 320  ;;  %v2938_v22 = vpop.permute.xlu1 %2937  ;;  %v3347_v39 = vld [vmem:[%s7478_s1 + $0x168] sm:$0xff]  ;;  %v3439_v6 = vmul.f32 %v3311_v60, %v6603_v51  ;;  %v3440_v58 = vmul.f32 %v3312_v45, %v6684_v18  ;;  %v3653_v51 = vsel %vm7748_vm13, %v3473_v37, 0.0  ;;  %v3314_v37 = vld [vmem:[%s7478_s1 + $0x60] sm:$0xff]  ;;  %vm7753_vm8 = vmmov %vm7722_vm1 }
 0x4b8   :  { %v3470_v7 = vmul.f32 %v3342_v46, %v2938_v22  ;;  %3229 = vbcast.lane.b32.xlu0 %v6632_v36, 368  ;;  %v3611_v46 = vadd.f32 %v3610_v35, %v3609_v25  ;;  %v3574_v22 = vadd.f32 %v3573_v53, %v3572_v47  ;;  %v3475_v57 = vmul.f32 %v3347_v39, %v6707_v59  ;;  %v3330_v47 = vld [vmem:[%s7478_s1 + $0xe0] sm:$0xff]  ;;  %vm7754_vm10 = vmmov %vm7722_vm1 }
 0x4b9   :  { %v3646_v54 = vadd.f32 %v3645_v10, %v3644_v62  ;;  %v3612_v62 = vsel %vm7747_vm12, %v3455_v16, 0.0  ;;  %v3329_v10 = vld [vmem:[%s7478_s1 + $0xd8] sm:$0xff]  ;;  %v3575_v31 = vsel %vm7749_vm15, %v3439_v6, 0.0  ;;  %v3614_v18 = vsel %vm7722_vm1, %v3456_v19, 0.0  ;;  %v3351_v16 = vld [vmem:[%s7478_s1 + $0x188] sm:$0xff]  ;;  %v3350_v39 = vld [vmem:[%s7478_s1 + $0x180] sm:$0xff] }
 0x4ba   :  { %v3647_v61 = vsel %vm7743_vm5, %v3470_v7, 0.0  ;;  %v6900_v24 = vpop.permute.xlu0 %3051  ;;  %v3613_v25 = vadd.f32 %v3612_v62, %v3611_v46  ;;  %v3576_v60 = vadd.f32 %v3575_v31, %v3574_v22  ;;  %vm7752_vm5 = vmmov %vm7722_vm1  ;;  %v3331_v22 = vld [vmem:[%s7478_s1 + $0xe8] sm:$0xff]  ;;  %v3332_v31 = vld [vmem:[%s7478_s1 + $0xf0] sm:$0xff] }
 0x4bb   :  { %v3648_v5 = vadd.f32 %v3647_v61, %v3646_v54  ;;  %3146 = vbcast.lane.b32.xlu1 %v6623_v0, 336  ;;  %v2946_v49 = vpop.permute.xlu1 %2945  ;;  %v3457_v61 = vmul.f32 %v3329_v10, %v6657_v14  ;;  %v3657_v53 = vsel %vm7752_vm5, %v3475_v57, 0.0  ;;  %vm7756_vm12 = vmmov %vm7722_vm1 }
 0x4bc   :  { %v3472_v1 = vmul.f32 %v3344_v38, %v2946_v49  ;;  %3296 = vbcast.lane.b32.xlu0 %v6647_v48, 368  ;;  %v3348_v38 = vld [vmem:[%s7478_s1 + $0x170] sm:$0xff]  ;;  %v3577_v49 = vsel %vm7751_vm4, %v3440_v58, 0.0  ;;  %vm7757_vm13 = vmmov %vm7722_vm1 }
 0x4bd   :  { %v3650_v33 = vadd.f32 %v3649_v23, %v3648_v5  ;;  %v3477_v23 = vmul.f32 %v3349_v30, %v6711_v40  ;;  %v3616_v62 = vsel %vm7754_vm10, %v3457_v61, 0.0  ;;  %v3352_v58 = vld [vmem:[%s7478_s1 + $0x190] sm:$0xff]  ;;  %vm7758_vm15 = vmmov %vm7722_vm1 }
 0x4be   :  { %v3651_v42 = vsel %vm7746_vm11, %v3472_v1, 0.0  ;;  %v6926_v20 = vpop.permute.xlu0 %3059  ;;  %v3615_v1 = vadd.f32 %v3614_v18, %v3613_v25  ;;  %vm7755_vm11 = vmmov %vm7722_vm1  ;;  %v3315_v25 = vld [vmem:[%s7478_s1 + $0x68] sm:$0xff] }
 0x4bf   :  { %v3652_v43 = vadd.f32 %v3651_v42, %v3650_v33  ;;  %3083 = vbcast.lane.b32.xlu1 %v6600_v26, 344  ;;  %v2954_v63 = vpop.permute.xlu1 %2953  ;;  %v3479_v33 = vmul.f32 %v3351_v16, %v6717_v55  ;;  %v3661_v55 = vsel %vm7755_vm11, %v3477_v23, 0.0  ;;  %v3316_v16 = vld [vmem:[%s7478_s1 + $0x70] sm:$0xff]  ;;  %vm7760_vm4 = vmmov %vm7722_vm1 }
 0x4c0   :  { %v3474_v7 = vmul.f32 %v3346_v29, %v2954_v63  ;;  %3300 = vbcast.lane.b32.xlu0 %v6647_v48, 376  ;;  %v3313_v48 = vld [vmem:[%s7478_s1 + $0x58] sm:$0xff]  ;;  %v3458_v29 = vmul.f32 %v3330_v47, %v6742_v13  ;;  %v3617_v63 = vadd.f32 %v3616_v62, %v3615_v1  ;;  %vm7761_vm5 = vmmov %vm7722_vm1 }
 0x4c1   :  { %v3654_v54 = vadd.f32 %v3653_v51, %v3652_v43  ;;  %v3441_v46 = vmul.f32 %v3313_v48, %v6606_v32  ;;  %v3442_v32 = vmul.f32 %v3314_v37, %v6690_v52  ;;  %v3353_v43 = vld [vmem:[%s7478_s1 + $0x198] sm:$0xff]  ;;  %v3670_v57 = vsel %vm7757_vm13, %v3479_v33, 0.0  ;;  %vm7763_vm10 = vmmov %vm7722_vm1 }
 0x4c2   :  { %v3655_v35 = vsel %vm7750_vm14, %v3474_v7, 0.0  ;;  %v6946_v59 = vpop.permute.xlu0 %3067  ;;  %v3618_v52 = vsel %vm7758_vm15, %v3458_v29, 0.0  ;;  %vm7759_vm14 = vmmov %vm7722_vm1  ;;  %v3481_v61 = vmul.f32 %v3353_v43, %v6726_v15  ;;  %v3357_v33 = vld [vmem:[%s7478_s1 + $0x1b8] sm:$0xff] }
 0x4c3   :  { %v3656_v28 = vadd.f32 %v3655_v35, %v3654_v54  ;;  %3150 = vbcast.lane.b32.xlu1 %v6623_v0, 344  ;;  %v2962_v5 = vpop.permute.xlu1 %2961  ;;  %v3579_v51 = vsel %vm7756_vm12, %v3441_v46, 0.0  ;;  %v3459_v54 = vmul.f32 %v3331_v22, %v6663_v34  ;;  %v3581_v48 = vsel %vm7759_vm14, %v3442_v32, 0.0  ;;  %v3355_v34 = vld [vmem:[%s7478_s1 + $0x1a8] sm:$0xff]  ;;  %vm7764_vm11 = vmmov %vm7722_vm1 }
 0x4c4   :  { %v3476_v14 = vmul.f32 %v3348_v38, %v2962_v5  ;;  %3857 = vperm.xlu0 %3980, %v6614_v8   ;;  %v3578_v8 = vadd.f32 %v3577_v49, %v3576_v60  ;;  %v3619_v47 = vadd.f32 %v3618_v52, %v3617_v63  ;;  %v3443_v5 = vmul.f32 %v3315_v25, %v6609_v4  ;;  %vm7765_vm12 = vmmov %vm7722_vm1  ;;  %v3359_v52 = vld [vmem:[%s7478_s1 + $0x1c8] sm:$0xff] }
 0x4c5   :  { %v3658_v45 = vadd.f32 %v3657_v53, %v3656_v28  ;;  %v3354_v28 = vld [vmem:[%s7478_s1 + $0x1a0] sm:$0xff]  ;;  %v3460_v49 = vmul.f32 %v3332_v31, %v6760_v27  ;;  %v3620_v23 = vsel %vm7761_vm5, %v3459_v54, 0.0  ;;  %v3483_v27 = vmul.f32 %v3355_v34, %v6739_v12  ;;  %v3317_v12 = vld [vmem:[%s7478_s1 + $0x78] sm:$0xff]  ;;  %vm7766_vm13 = vmmov %vm7722_vm1 }
 0x4c6   :  { %v3659_v40 = vsel %vm7753_vm8, %v3476_v14, 0.0  ;;  %v6973_v6 = vpop.permute.xlu0 %3075  ;;  %v3580_v38 = vadd.f32 %v3579_v51, %v3578_v8  ;;  %vm7762_vm8 = vmmov %vm7722_vm1  ;;  %v3621_v29 = vadd.f32 %v3620_v23, %v3619_v47  ;;  %v3356_v8 = vld [vmem:[%s7478_s1 + $0x1b0] sm:$0xff]  ;;  %v3445_v25 = vmul.f32 %v3317_v12, %v6612_v9  ;;  %v3361_v9 = vld [vmem:[%s7478_s1 + $0x1d8] sm:$0xff] }
 0x4c7   :  { %v3660_v19 = vadd.f32 %v3659_v40, %v3658_v45  ;;  %3087 = vbcast.lane.b32.xlu1 %v6600_v26, 352  ;;  %v2973_v42 = vpop.permute.xlu1 %2972  ;;  %v3333_v45 = vld [vmem:[%s7478_s1 + $0xf8] sm:$0xff]  ;;  %v3674_v4 = vsel %vm7762_vm8, %v3481_v61, 0.0  ;;  %vm7767_vm15 = vmmov %vm7722_vm1  ;;  %v3487_v61 = vmul.f32 %v3359_v52, %v6777_v17  ;;  %v3360_v47 = vld [vmem:[%s7478_s1 + $0x1d0] sm:$0xff] }
 0x4c8   :  { %v3478_v13 = vmul.f32 %v3350_v39, %v2973_v42  ;;  %v3582_v14 = vadd.f32 %v3581_v48, %v3580_v38  ;;  %v3444_v39 = vmul.f32 %v3316_v16, %v6696_v56  ;;  %v3622_v42 = vsel %vm7764_vm11, %v3460_v49, 0.0  ;;  %vm7768_vm14 = vmmov %vm7722_vm1 }
 0x4c9   :  { %v6985_v10 = vadd.f32 %v3661_v55, %v3660_v19  ;;  %v3583_v19 = vsel %vm7763_vm10, %v3443_v5, 0.0  ;;  %v3461_v22 = vmul.f32 %v3333_v45, %v6669_v3  ;;  %v3678_v63 = vsel %vm7767_vm15, %v3483_v27, 0.0  ;;  %v3358_v3 = vld [vmem:[%s7478_s1 + $0x1c0] sm:$0xff]  ;;  %vm7770_vm5 = vmmov %vm7722_vm1 }
 0x4ca   :  { %v3669_v7 = vsel %vm7722_vm1, %v3478_v13, 0.0  ;;  %v6994_v30 = vpop.permute.xlu0 %3106  ;;  %v3584_v32 = vadd.f32 %v3583_v19, %v3582_v14  ;;  %v3585_v43 = vsel %vm7766_vm13, %v3444_v39, 0.0  ;;  %vm7771_vm8 = vmmov %vm7722_vm1  ;;  %v3363_v39 = vld [vmem:[%s7478_s1 + $0x1e8] sm:$0xff]  ;;  %v3362_v27 = vld [vmem:[%s7478_s1 + $0x1e0] sm:$0xff] }
 0x4cb   :  { %v3671_v18 = vadd.f32 %v3670_v57, %v3669_v7  ;;  %3154 = vbcast.lane.b32.xlu1 %v6623_v0, 352  ;;  %v2981_v35 = vpop.permute.xlu1 %2980  ;;  %v3623_v57 = vadd.f32 %v3622_v42, %v3621_v29  ;;  %vm7772_vm10 = vmmov %vm7722_vm1 }
 0x4cc   :  { %v3480_v60 = vmul.f32 %v3352_v58, %v2981_v35  ;;  %v3485_v58 = vmul.f32 %v3357_v33, %v6751_v44  ;;  %v3586_v31 = vadd.f32 %v3585_v43, %v3584_v32  ;;  %v3624_v35 = vsel %vm7768_vm14, %v3461_v22, 0.0  ;;  %vm7773_vm11 = vmmov %vm7722_vm1  ;;  %v3365_v32 = vld [vmem:[%s7478_s1 + $0x1f8] sm:$0xff] }
 0x4cd   :  { %v3625_v16 = vadd.f32 %v3624_v35, %v3623_v57  ;;  %v3686_v14 = vsel %vm7772_vm10, %v3487_v61, 0.0  ;;  %v3663_v33 = vrot.slane %v6985_v10, 4  ;;  %vm7775_vm13 = vmmov %vm7722_vm1 }
 0x4ce   :  { %v3672_v15 = vsel %vm7760_vm4, %v3480_v60, 0.0  ;;  %v7018_v53 = vpop.permute.xlu0 %3173  ;;  %vm7769_vm4 = vmmov %vm7722_vm1 }
 0x4cf   :  { %v3673_v37 = vadd.f32 %v3672_v15, %v3671_v18  ;;  %3091 = vbcast.lane.b32.xlu1 %v6600_v26, 360  ;;  %v2989_v1 = vpop.permute.xlu1 %2988  ;;  %v3682_v48 = vsel %vm7769_vm4, %v3485_v58, 0.0  ;;  %v3626_v45 = vrot.slane %v3625_v16, 4  ;;  %v3664_v43 = vadd.f32 %v3663_v33, %v6985_v10  ;;  %vm7776_vm15 = vmmov %vm7722_vm1 }
 0x4d0   :  { %v3482_v46 = vmul.f32 %v3354_v28, %v2989_v1  ;;  %v3587_v28 = vsel %vm7770_vm5, %v3445_v25, 0.0  ;;  %vm7777_vm14 = vmmov %vm7722_vm1 }
 0x4d1   :  { %v3675_v40 = vadd.f32 %v3674_v4, %v3673_v37  ;;  %v3588_v15 = vadd.f32 %v3587_v28, %v3586_v31  ;;  %v3489_v37 = vmul.f32 %v3361_v9, %v6804_v50  ;;  %v3627_v22 = vadd.f32 %v3626_v45, %v3625_v16  ;;  %v3369_v9 = vld [vmem:[%s7478_s1 + $0x218] sm:$0xff]  ;;  %vm7778_vm4 = vmmov %vm7722_vm1 }
 0x4d2   :  { %v3676_v56 = vsel %vm7765_vm12, %v3482_v46, 0.0  ;;  %v7037_v62 = vpop.permute.xlu0 %3114  ;;  %v3883_v46 = vld [vmem:[#allocation5] sm:$0xff]  ;;  %vm7774_vm12 = vmmov %vm7722_vm1 }
 0x4d3   :  { %v3677_v55 = vadd.f32 %v3676_v56, %v3675_v40  ;;  %3158 = vbcast.lane.b32.xlu1 %v6623_v0, 360  ;;  %v2997_v13 = vpop.permute.xlu1 %2996  ;;  %v3690_v42 = vsel %vm7774_vm12, %v3489_v37, 0.0  ;;  %v3491_v56 = vmul.f32 %v3363_v39, %v6833_v2  ;;  %4243 = vrcp.f32 %v3883_v46  ;;  %v3367_v2 = vld [vmem:[%s7478_s1 + $0x208] sm:$0xff]  ;;  %vm7779_vm5 = vmmov %vm7722_vm1  ;;  %v3370_v46 = vld [vmem:[%s7478_s1 + $0x220] sm:$0xff] }
 0x4d4   :  { %v3484_v51 = vmul.f32 %v3356_v8, %v2997_v13  ;;  %v3589_v8 = vrot.slane %v3588_v15, 4  ;;  %v3364_v13 = vld [vmem:[%s7478_s1 + $0x1f0] sm:$0xff]  ;;  %v3628_v25 = vrot.slane %v3627_v22, 2  ;;  %v3495_v31 = vmul.f32 %v3367_v2, %v6880_v11  ;;  %vm7781_vm10 = vmmov %vm7722_vm1 }
 0x4d5   :  { %v3679_v7 = vadd.f32 %v3678_v63, %v3677_v55  ;;  %v3694_v52 = vsel %vm7776_vm15, %v3491_v56, 0.0  ;;  %v3368_v11 = vld [vmem:[%s7478_s1 + $0x210] sm:$0xff]  ;;  %vm7783_vm12 = vmmov %vm7722_vm1 }
 0x4d6   :  { %v3680_v54 = vsel %vm7722_vm1, %v3484_v51, 0.0  ;;  %v7055_v38 = vpop.permute.xlu0 %3244  ;;  %v3590_v58 = vadd.f32 %v3589_v8, %v3588_v15  ;;  %v3629_v16 = vadd.f32 %v3628_v25, %v3627_v22  ;;  %v3894_v15 = vld [vmem:[#allocation4] sm:$0xff]  ;;  %vm7785_vm15 = vmmov %vm7722_vm1 }
 0x4d7   :  { %v3681_v18 = vadd.f32 %v3680_v54, %v3679_v7  ;;  %3095 = vbcast.lane.b32.xlu1 %v6600_v26, 368  ;;  %v3005_v44 = vpop.permute.xlu1 %3004  ;;  %v3493_v7 = vmul.f32 %v3365_v32, %v6854_v41  ;;  %v3366_v54 = vld [vmem:[%s7478_s1 + $0x200] sm:$0xff] }
 0x4d8   :  { %v3486_v60 = vmul.f32 %v3358_v3, %v3005_v44  ;;  %v3630_v39 = vrot.slane %v3629_v16, 1 }
 0x4d9   :  { %v3683_v34 = vadd.f32 %v3682_v48, %v3681_v18  ;;  %v3665_v18 = vrot.slane %v3664_v43, 2  ;;  %v3698_v41 = vsel %vm7777_vm14, %v3493_v7, 0.0 }
 0x4da   :  { %v3684_v5 = vsel %vm7771_vm8, %v3486_v60, 0.0  ;;  %v7069_v49 = vpop.permute.xlu0 %3118  ;;  %vm7780_vm8 = vmmov %vm7722_vm1 }
 0x4db   :  { %v3685_v23 = vadd.f32 %v3684_v5, %v3683_v34  ;;  %3162 = vbcast.lane.b32.xlu1 %v6623_v0, 368  ;;  %v3013_v17 = vpop.permute.xlu1 %3012  ;;  %v3666_v28 = vadd.f32 %v3665_v18, %v3664_v43  ;;  %v3375_v18 = vld [vmem:[%s7478_s1 + $0x248] sm:$0xff] }
 0x4dc   :  { %v3488_v1 = vmul.f32 %v3360_v47, %v3013_v17  ;;  %v3707_v47 = vsel %vm7778_vm4, %v3495_v31, 0.0 }
 0x4dd   :  { %v3687_v4 = vadd.f32 %v3686_v14, %v3685_v23 }
 0x4de   :  { %v3688_v29 = vsel %vm7773_vm11, %v3488_v1, 0.0  ;;  %v7082_v40 = vpop.permute.xlu0 %3185  ;;  %v3497_v1 = vmul.f32 %v3369_v9, %v6900_v24  ;;  %vm7782_vm11 = vmmov %vm7722_vm1 }
 0x4df   :  { %v3689_v50 = vadd.f32 %v3688_v29, %v3687_v4  ;;  %3099 = vbcast.lane.b32.xlu1 %v6600_v26, 376  ;;  %v3021_v19 = vpop.permute.xlu1 %3020  ;;  %v3371_v4 = vld [vmem:[%s7478_s1 + $0x228] sm:$0xff]  ;;  %v3667_v29 = vrot.slane %v3666_v28, 1 }
 0x4e0   :  { %v3490_v12 = vmul.f32 %v3362_v27, %v3021_v19  ;;  %v4244_v33 = vpop.eup %4243  ;;  %v3499_v22 = vmul.f32 %v3371_v4, %v6926_v20 }
 0x4e1   :  { %v3691_v55 = vadd.f32 %v3690_v42, %v3689_v50  ;;  %v3668_v2 = vadd.f32 %v3667_v29, %v3666_v28  ;;  %v3376_v28 = vld [vmem:[%s7478_s1 + $0x250] sm:$0xff] }
 0x4e2   :  { %v3692_v26 = vsel %vm7775_vm13, %v3490_v12, 0.0  ;;  %v7095_v63 = vpop.permute.xlu0 %3252  ;;  %v3711_v12 = vsel %vm7781_vm10, %v3497_v1, 0.0  ;;  %v3715_v20 = vsel %vm7783_vm12, %v3499_v22, 0.0  ;;  %vm7784_vm13 = vcmask 1041409   ;;  %v3415_v22 = vld [vmem:[%s7478_s1 + $0x388] sm:$0xff] }
 0x4e3   :  { %v3693_v51 = vadd.f32 %v3692_v26, %v3691_v55  ;;  %3166 = vbcast.lane.b32.xlu1 %v6623_v0, 376  ;;  %v3029_v57 = vpop.permute.xlu1 %3028  ;;  %v3591_v0 = vrot.slane %v3590_v58, 2  ;;  %v3631_v55 = vadd.f32 %v3630_v39, %v3629_v16  ;;  %v3383_v39 = vld [vmem:[%s7478_s1 + $0x288] sm:$0xff] }
 0x4e4   :  { %v3492_v3 = vmul.f32 %v3364_v13, %v3029_v57  ;;  %v3373_v13 = vld [vmem:[%s7478_s1 + $0x238] sm:$0xff] }
 0x4e5   :  { %v3695_v10 = vadd.f32 %v3694_v52, %v3693_v51  ;;  %v3592_v23 = vadd.f32 %v3591_v0, %v3590_v58  ;;  %v3372_v58 = vld [vmem:[%s7478_s1 + $0x230] sm:$0xff]  ;;  %v3501_v25 = vmul.f32 %v3373_v13, %v6946_v59 }
 0x4e6   :  { %v3696_v44 = vsel %vm7722_vm1, %v3492_v3, 0.0  ;;  %v7108_v35 = vpop.permute.xlu0 %3126 }
 0x4e7   :  { %v3697_v48 = vadd.f32 %v3696_v44, %v3695_v10  ;;  %3233 = vbcast.lane.b32.xlu1 %v6632_v36, 376  ;;  %v3040_v61 = vpop.permute.xlu1 %3039  ;;  %v3593_v19 = vrot.slane %v3592_v23, 1  ;;  %v3719_v9 = vsel %vm7722_vm1, %v3501_v25, 0.0 }
 0x4e8   :  { %v3494_v60 = vmul.f32 %v3366_v54, %v3040_v61 }
 0x4e9   :  { %v3699_v34 = vadd.f32 %v3698_v41, %v3697_v48  ;;  %v3594_v57 = vadd.f32 %v3593_v19, %v3592_v23  ;;  %v3374_v48 = vld [vmem:[%s7478_s1 + $0x240] sm:$0xff] }
 0x4ea   :  { %v3706_v5 = vsel %vm7779_vm5, %v3494_v60, 0.0  ;;  %v7120_v36 = vpop.permute.xlu0 %3193  ;;  %v3382_v23 = vld [vmem:[%s7478_s1 + $0x280] sm:$0xff] }
 0x4eb   :  { %v3700_v17 = vrot.slane %v3699_v34, 4  ;;  %v3708_v14 = vadd.f32 %v3707_v47, %v3706_v5  ;;  %v3048_v37 = vpop.permute.xlu1 %3047  ;;  %3897 = vperm.xlu1 %3981, %v3894_v15   ;;  %v3869_v31 = vsel %vm7784_vm13, %v3631_v55, %v3594_v57  ;;  %v3510_v4 = vmul.f32 %v3382_v23, %v6994_v30  ;;  %v3418_v23 = vld [vmem:[%s7478_s1 + $0x3a0] sm:$0xff] }
 0x4ec   :  { %v3496_v45 = vmul.f32 %v3368_v11, %v3048_v37  ;;  %v3870_v61 = vsel %vm2728_vm0, %v3668_v2, %v3869_v31  ;;  %vm7786_vm0 = vmmov %vm7722_vm1 }
 0x4ed   :  { %v3701_v27 = vadd.f32 %v3700_v17, %v3699_v34  ;;  %v3503_v34 = vmul.f32 %v3375_v18, %v6973_v6  ;;  %v3384_v6 = vld [vmem:[%s7478_s1 + $0x290] sm:$0xff]  ;;  %vm7788_vm14 = vmmov %vm7786_vm0 }
 0x4ee   :  { %v3709_v8 = vsel %vm7780_vm8, %v3496_v45, 0.0  ;;  %v7130_v50 = vpop.permute.xlu0 %3260  ;;  %vm7789_vm4 = vmmov %vm7786_vm0 }
 0x4ef   :  { %v3702_v42 = vrot.slane %v3701_v27, 2  ;;  %v3710_v24 = vadd.f32 %v3709_v8, %v3708_v14  ;;  %v3056_v56 = vpop.permute.xlu1 %3055  ;;  %3888 = vperm.xlu1 %3981, %v4244_v33   ;;  %v3512_v8 = vmul.f32 %v3384_v6, %v7037_v62  ;;  %v3743_v30 = vsel %vm7789_vm4, %v3510_v4, 0.0  ;;  %vm7790_vm5 = vmmov %vm7786_vm0 }
 0x4f0   :  { %v3498_v32 = vmul.f32 %v3370_v46, %v3056_v56  ;;  %v3398_v46 = vld [vmem:[%s7478_s1 + $0x300] sm:$0xff]  ;;  %vm7791_vm8 = vmmov %vm7786_vm0 }
 0x4f1   :  { %v3703_v43 = vadd.f32 %v3702_v42, %v3701_v27  ;;  %v3712_v26 = vadd.f32 %v3711_v12, %v3710_v24  ;;  %v3399_v24 = vld [vmem:[%s7478_s1 + $0x308] sm:$0xff]  ;;  %v3526_v56 = vmul.f32 %v3398_v46, %v7018_v53  ;;  %v3746_v62 = vsel %vm7791_vm8, %v3512_v8, 0.0  ;;  %vm7792_vm10 = vmmov %vm7786_vm0 }
 0x4f2   :  { %v3713_v51 = vsel %vm7782_vm11, %v3498_v32, 0.0  ;;  %v7143_v10 = vpop.permute.xlu0 %3134  ;;  %v3543_v53 = vmul.f32 %v3415_v22, %v7055_v38  ;;  %vm7793_vm11 = vmmov %vm7786_vm0  ;;  %v3421_v22 = vld [vmem:[%s7478_s1 + $0x3b8] sm:$0xff] }
 0x4f3   :  { %v3704_v52 = vrot.slane %v3703_v43, 1  ;;  %v3714_v7 = vadd.f32 %v3713_v51, %v3712_v26  ;;  %v3064_v3 = vpop.permute.xlu1 %3063  ;;  %v3414_v26 = vld [vmem:[%s7478_s1 + $0x380] sm:$0xff]  ;;  %vm7794_vm12 = vmmov %vm7786_vm0 }
 0x4f4   :  { %v3500_v54 = vmul.f32 %v3372_v58, %v3064_v3  ;;  %v3780_v58 = vsel %vm7792_vm10, %v3526_v56, 0.0  ;;  %v3818_v3 = vsel %vm7794_vm12, %v3543_v53, 0.0  ;;  %vm7795_vm13 = vmmov %vm7786_vm0 }
 0x4f5   :  { %v3705_v44 = vadd.f32 %v3704_v52, %v3703_v43  ;;  %v3716_v0 = vadd.f32 %v3715_v20, %v3714_v7  ;;  %vm7797_vm1 = vmmov %vm7786_vm0 }
 0x4f6   :  { %v3717_v41 = vsel %vm7785_vm15, %v3500_v54, 0.0  ;;  %v7162_v5 = vpop.permute.xlu0 %3201  ;;  %vm7796_vm15 = vmmov %vm7786_vm0 }
 0x4f7   :  { %v7155_v59 = vsel %vm2730_vm2, %v3705_v44, %v3870_v61  ;;  %v3718_v60 = vadd.f32 %v3717_v41, %v3716_v0  ;;  %v3072_v16 = vpop.permute.xlu1 %3071  ;;  %vm7787_vm2 = vmmov %vm7786_vm0 }
 0x4f8   :  { %v3502_v11 = vmul.f32 %v3374_v48, %v3072_v16  ;;  %v3723_v37 = vsel %vm7787_vm2, %v3503_v34, 0.0  ;;  %vm7798_vm2 = vmmov %vm7786_vm0 }
 0x4f9   :  { %v3720_v47 = vadd.f32 %v3719_v9, %v3718_v60  ;;  %v3416_v9 = vld [vmem:[%s7478_s1 + $0x390] sm:$0xff]  ;;  %vm7800_vm4 = vmmov %vm7786_vm0 }
 0x4fa   :  { %v3721_v15 = vsel %vm7786_vm0, %v3502_v11, 0.0  ;;  %v7183_v19 = vpop.permute.xlu0 %3268  ;;  %vm7802_vm8 = vmmov %vm7786_vm0 }
 0x4fb   :  { %v3722_v17 = vadd.f32 %v3721_v15, %v3720_v47  ;;  %v3080_v14 = vpop.permute.xlu1 %3079  ;;  %vm7803_vm10 = vmmov %vm7786_vm0 }
 0x4fc   :  { %v3504_v1 = vmul.f32 %v3376_v28, %v3080_v14  ;;  %v3417_v28 = vld [vmem:[%s7478_s1 + $0x398] sm:$0xff]  ;;  %vm7805_vm12 = vmmov %vm7786_vm0 }
 0x4fd   :  { %v3724_v45 = vadd.f32 %v3723_v37, %v3722_v17  ;;  %v3545_v37 = vmul.f32 %v3417_v28, %v7095_v63  ;;  %v3400_v63 = vld [vmem:[%s7478_s1 + $0x310] sm:$0xff] }
 0x4fe   :  { %v3725_v27 = vsel %vm7788_vm14, %v3504_v1, 0.0  ;;  %v7202_v2 = vpop.permute.xlu0 %3142  ;;  %vm7799_vm14 = vmmov %vm7786_vm0 }
 0x4ff   :  { %v7180_v33 = vadd.f32 %v3725_v27, %v3724_v45  ;;  %v3111_v29 = vpop.permute.xlu1 %3110  ;;  %v3420_v27 = vld [vmem:[%s7478_s1 + $0x3b0] sm:$0xff]  ;;  %v3822_v46 = vsel %vm7797_vm1, %v3545_v37, 0.0  ;;  %vm7808_vm1 = vmmov %vm7786_vm0 }
 0x500   :  { %v3511_v42 = vmul.f32 %v3383_v39, %v3111_v29  ;;  %v3419_v39 = vld [vmem:[%s7478_s1 + $0x3a8] sm:$0xff] }
 0x502   :  { %v3744_v12 = vsel %vm7790_vm5, %v3511_v42, 0.0  ;;  %v7207_v31 = vpop.permute.xlu0 %3209  ;;  %v3547_v42 = vmul.f32 %v3419_v39, %v7130_v50  ;;  %vm7801_vm5 = vmmov %vm7786_vm0 }
 0x503   :  { %v3745_v32 = vadd.f32 %v3744_v12, %v3743_v30  ;;  %v3178_v55 = vpop.permute.xlu1 %3177 }
 0x504   :  { %v3527_v13 = vmul.f32 %v3399_v24, %v3178_v55  ;;  %v3422_v55 = vld [vmem:[%s7478_s1 + $0x3c0] sm:$0xff]  ;;  %v3826_v50 = vsel %vm7798_vm2, %v3547_v42, 0.0  ;;  %vm7809_vm2 = vmmov %vm7786_vm0 }
 0x505   :  { %v7195_v43 = vadd.f32 %v3746_v62, %v3745_v32  ;;  %v3401_v62 = vld [vmem:[%s7478_s1 + $0x318] sm:$0xff] }
 0x506   :  { %v3781_v51 = vsel %vm7793_vm11, %v3527_v13, 0.0  ;;  %v3277_v44 = vpop.permute.xlu0 %3276  ;;  %v3402_v13 = vld [vmem:[%s7478_s1 + $0x320] sm:$0xff]  ;;  %vm7804_vm11 = vmmov %vm7786_vm0 }
 0x507   :  { %v3782_v57 = vadd.f32 %v3781_v51, %v3780_v58  ;;  %v3241_v52 = vpop.permute.xlu1 %3240 }
 0x508   :  { %v3542_v7 = vmul.f32 %v3414_v26, %v3241_v52  ;;  %v3549_v52 = vmul.f32 %v3421_v22, %v7183_v19  ;;  %v3403_v19 = vld [vmem:[%s7478_s1 + $0x328] sm:$0xff] }
 0x50a   :  { %v3817_v20 = vsel %vm7795_vm13, %v3542_v7, 0.0  ;;  %v7211_v48 = vpop.permute.xlu0 %3213  ;;  %vm7806_vm13 = vmmov %vm7786_vm0 }
 0x50b   :  { %v3819_v25 = vadd.f32 %v3818_v3, %v3817_v20  ;;  %v3182_v54 = vpop.permute.xlu1 %3181  ;;  %v3529_v3 = vmul.f32 %v3401_v62, %v7082_v40  ;;  %v3830_v40 = vsel %vm7801_vm5, %v3549_v52, 0.0  ;;  %v3425_v62 = vld [vmem:[%s7478_s1 + $0x3d8] sm:$0xff]  ;;  %vm7812_vm5 = vmmov %vm7786_vm0 }
 0x50c   :  { %v3528_v56 = vmul.f32 %v3400_v63, %v3182_v54 }
 0x50d   :  { %v3785_v28 = vsel %vm7803_vm10, %v3529_v3, 0.0  ;;  %v3389_v3 = vld [vmem:[%s7478_s1 + $0x2b8] sm:$0xff]  ;;  %vm7814_vm10 = vmmov %vm7786_vm0 }
 0x50e   :  { %v7213_v41 = vpop.permute.xlu0 %3280  ;;  %v3783_v53 = vsel %vm7800_vm4, %v3528_v56, 0.0  ;;  %vm7811_vm4 = vmmov %vm7786_vm0 }
 0x50f   :  { %v3249_v18 = vpop.permute.xlu1 %3248  ;;  %v3784_v54 = vadd.f32 %v3783_v53, %v3782_v57  ;;  %v3386_v57 = vld [vmem:[%s7478_s1 + $0x2a0] sm:$0xff] }
 0x510   :  { %v3544_v11 = vmul.f32 %v3416_v9, %v3249_v18  ;;  %v3423_v9 = vld [vmem:[%s7478_s1 + $0x3c8] sm:$0xff] }
 0x512   :  { %v7220_v34 = vpop.permute.xlu0 %3217  ;;  %v3820_v17 = vsel %vm7796_vm15, %v3544_v11, 0.0  ;;  %vm7807_vm15 = vmmov %vm7786_vm0 }
 0x513   :  { %v7209_v0 = vpop.permute.xlu1 %3122  ;;  %v3821_v6 = vadd.f32 %v3820_v17, %v3819_v25 }
 0x514   :  { %v3514_v63 = vmul.f32 %v3386_v57, %v7209_v0  ;;  %v3388_v0 = vld [vmem:[%s7478_s1 + $0x2b0] sm:$0xff] }
 0x515   :  { %v3823_v8 = vadd.f32 %v3822_v46, %v3821_v6  ;;  %v3786_v6 = vadd.f32 %v3785_v28, %v3784_v54  ;;  %v3424_v46 = vld [vmem:[%s7478_s1 + $0x3d0] sm:$0xff] }
 0x516   :  { %v7225_v15 = vpop.permute.xlu0 %3284  ;;  %v3552_v56 = vmul.f32 %v3424_v46, %v7213_v41 }
 0x517   :  { %v3190_v38 = vpop.permute.xlu1 %3189  ;;  %v3553_v54 = vmul.f32 %v3425_v62, %v7225_v15  ;;  %v3390_v15 = vld [vmem:[%s7478_s1 + $0x2c0] sm:$0xff] }
 0x518   :  { %v3530_v20 = vmul.f32 %v3402_v13, %v3190_v38  ;;  %v3404_v38 = vld [vmem:[%s7478_s1 + $0x330] sm:$0xff] }
 0x51a   :  { %v7239_v4 = vpop.permute.xlu0 %3221 }
 0x51b   :  { %v3257_v61 = vpop.permute.xlu1 %3256 }
 0x51c   :  { %v3546_v1 = vmul.f32 %v3418_v23, %v3257_v61  ;;  %v3385_v61 = vld [vmem:[%s7478_s1 + $0x298] sm:$0xff]  ;;  %v3787_v23 = vsel %vm7804_vm11, %v3530_v20, 0.0  ;;  %v3836_v20 = vsel %vm7809_vm2, %v3552_v56, 0.0  ;;  %vm7815_vm11 = vmmov %vm7786_vm0  ;;  %v3378_v56 = vld [vmem:[%s7478_s1 + $0x260] sm:$0xff] }
 0x51d   :  { %v3513_v37 = vmul.f32 %v3385_v61, %v7069_v49  ;;  %v3788_v42 = vadd.f32 %v3787_v23, %v3786_v6  ;;  %v3408_v6 = vld [vmem:[%s7478_s1 + $0x350] sm:$0xff]  ;;  %vm7820_vm2 = vmmov %vm7786_vm0 }
 0x51e   :  { %v3824_v29 = vsel %vm7786_vm0, %v3546_v1, 0.0  ;;  %v7253_v32 = vpop.permute.xlu0 %3288  ;;  %v3551_v1 = vmul.f32 %v3423_v9, %v3277_v44  ;;  %v3407_v9 = vld [vmem:[%s7478_s1 + $0x348] sm:$0xff] }
 0x51f   :  { %v7215_v60 = vpop.permute.xlu1 %3130  ;;  %v3825_v12 = vadd.f32 %v3824_v29, %v3823_v8  ;;  %v3748_v44 = vsel %vm7805_vm12, %v3513_v37, 0.0  ;;  %vm7816_vm12 = vmmov %vm7786_vm0 }
 0x520   :  { %v3516_v52 = vmul.f32 %v3388_v0, %v7215_v60 }
 0x521   :  { %v3827_v51 = vadd.f32 %v3826_v50, %v3825_v12 }
 0x522   :  { %v7279_v11 = vpop.permute.xlu0 %3225  ;;  %v3754_v57 = vsel %vm7812_vm5, %v3516_v52, 0.0  ;;  %vm7823_vm5 = vmmov %vm7786_vm0 }
 0x523   :  { %v3198_v16 = vpop.permute.xlu1 %3197 }
 0x524   :  { %v3532_v29 = vmul.f32 %v3404_v38, %v3198_v16  ;;  %v3406_v16 = vld [vmem:[%s7478_s1 + $0x340] sm:$0xff] }
 0x526   :  { %v3293_v49 = vpop.permute.xlu0 %3292  ;;  %v3791_v41 = vsel %vm7786_vm0, %v3532_v29, 0.0 }
 0x527   :  { %v3265_v47 = vpop.permute.xlu1 %3264 }
 0x528   :  { %v3548_v24 = vmul.f32 %v3420_v27, %v3265_v47  ;;  %v3531_v27 = vmul.f32 %v3403_v19, %v7120_v36  ;;  %v3405_v36 = vld [vmem:[%s7478_s1 + $0x338] sm:$0xff]  ;;  %v3517_v19 = vmul.f32 %v3389_v3, %v7143_v10  ;;  %v3427_v10 = vld [vmem:[%s7478_s1 + $0x3e8] sm:$0xff] }
 0x52a   :  { %v3828_v26 = vsel %vm7799_vm14, %v3548_v24, 0.0  ;;  %v3387_v24 = vld [vmem:[%s7478_s1 + $0x2a8] sm:$0xff]  ;;  %v3789_v22 = vsel %vm7807_vm15, %v3531_v27, 0.0  ;;  %vm7810_vm14 = vmmov %vm7786_vm0 }
 0x52b   :  { %v7231_v14 = vpop.permute.xlu1 %3138  ;;  %v3829_v25 = vadd.f32 %v3828_v26, %v3827_v51  ;;  %v3515_v13 = vmul.f32 %v3387_v24, %v7108_v35  ;;  %v3749_v26 = vadd.f32 %v3748_v44, %v7195_v43  ;;  %v3790_v53 = vadd.f32 %v3789_v22, %v3788_v42  ;;  %v7340_v43 = vpop.permute.xlu0 %3229  ;;  %vm7818_vm15 = vmmov %vm7786_vm0 }
 0x52c   :  { %v3533_v51 = vmul.f32 %v3405_v36, %v7162_v5  ;;  %v3426_v5 = vld [vmem:[%s7478_s1 + $0x3e0] sm:$0xff]  ;;  %v3518_v27 = vmul.f32 %v3390_v15, %v7231_v14  ;;  %v3756_v24 = vsel %vm7815_vm11, %v3517_v19, 0.0  ;;  %v3536_v14 = vmul.f32 %v3408_v6, %v7211_v48  ;;  %v3428_v48 = vld [vmem:[%s7478_s1 + $0x3f0] sm:$0xff]  ;;  %vm7826_vm11 = vmmov %vm7786_vm0 }
 0x52d   :  { %v3831_v17 = vadd.f32 %v3830_v40, %v3829_v25  ;;  %v3792_v61 = vadd.f32 %v3791_v41, %v3790_v53  ;;  %v3554_v28 = vmul.f32 %v3426_v5, %v7253_v32  ;;  %v3377_v32 = vld [vmem:[%s7478_s1 + $0x258] sm:$0xff]  ;;  %v3555_v36 = vmul.f32 %v3427_v10, %v3293_v49  ;;  %v3379_v53 = vld [vmem:[%s7478_s1 + $0x268] sm:$0xff] }
 0x52e   :  { %v3793_v40 = vsel %vm7811_vm4, %v3533_v51, 0.0  ;;  %v3758_v22 = vsel %vm7818_vm15, %v3518_v27, 0.0  ;;  %v3410_v51 = vld [vmem:[%s7478_s1 + $0x360] sm:$0xff]  ;;  %vm7822_vm4 = vmmov %vm7786_vm0 }
 0x52f   :  { %v7234_v45 = vpop.permute.xlu1 %3205  ;;  %v3297_v42 = vpop.permute.xlu0 %3296  ;;  %v3840_v44 = vsel %vm7816_vm12, %v3554_v28, 0.0  ;;  %v3842_v52 = vsel %vm7786_vm0, %v3555_v36, 0.0  ;;  %v3538_v19 = vmul.f32 %v3410_v51, %v7239_v4  ;;  %v3396_v4 = vld [vmem:[%s7478_s1 + $0x2f0] sm:$0xff]  ;;  %vm7827_vm12 = vmmov %vm7786_vm0 }
 0x530   :  { %v3556_v3 = vmul.f32 %v3428_v48, %v3297_v42  ;;  %vm7829_vm15 = vmmov %vm7786_vm0 }
 0x533   :  { %v3273_v30 = vpop.permute.xlu1 %3272 }
 0x534   :  { %v3550_v7 = vmul.f32 %v3422_v55, %v3273_v30  ;;  %v3834_v30 = vsel %vm7806_vm13, %v3551_v1, 0.0  ;;  %v3750_v55 = vsel %vm7808_vm1, %v3514_v63, 0.0  ;;  %v3535_v1 = vmul.f32 %v3407_v9, %v7207_v31  ;;  %v3391_v31 = vld [vmem:[%s7478_s1 + $0x2c8] sm:$0xff]  ;;  %vm7817_vm13 = vmmov %vm7786_vm0 }
 0x535   :  { %v3751_v25 = vadd.f32 %v3750_v55, %v3749_v26  ;;  %v3519_v62 = vmul.f32 %v3391_v31, %v7202_v2  ;;  %v3393_v26 = vld [vmem:[%s7478_s1 + $0x2d8] sm:$0xff]  ;;  %vm7819_vm1 = vmmov %vm7786_vm0 }
 0x536   :  { %v3832_v47 = vsel %vm7802_vm8, %v3550_v7, 0.0  ;;  %v3534_v7 = vmul.f32 %v3406_v16, %v7234_v45  ;;  %v3752_v45 = vsel %vm7810_vm14, %v3515_v13, 0.0  ;;  %vm7813_vm8 = vmmov %vm7786_vm0  ;;  %v3797_v16 = vsel %vm7817_vm13, %v3535_v1, 0.0 }
 0x537   :  { %v7266_v58 = vpop.permute.xlu1 %3146  ;;  %v3833_v8 = vadd.f32 %v3832_v47, %v3831_v17  ;;  %v3838_v47 = vsel %vm7814_vm10, %v3553_v54, 0.0  ;;  %v3753_v23 = vadd.f32 %v3752_v45, %v3751_v25  ;;  %v3794_v17 = vadd.f32 %v3793_v40, %v3792_v61  ;;  %v3380_v25 = vld [vmem:[%s7478_s1 + $0x270] sm:$0xff]  ;;  %vm7821_vm14 = vmmov %vm7786_vm0 }
 0x538   :  { %v3795_v38 = vsel %vm7813_vm8, %v3534_v7, 0.0  ;;  %v3760_v9 = vsel %vm7821_vm14, %v3519_v62, 0.0  ;;  %vm7824_vm8 = vmmov %vm7786_vm0 }
 0x539   :  { %v3835_v50 = vadd.f32 %v3834_v30, %v3833_v8  ;;  %v3755_v63 = vadd.f32 %v3754_v57, %v3753_v23  ;;  %v3796_v29 = vadd.f32 %v3795_v38, %v3794_v17  ;;  %v3409_v8 = vld [vmem:[%s7478_s1 + $0x358] sm:$0xff]  ;;  %v3392_v30 = vld [vmem:[%s7478_s1 + $0x2d0] sm:$0xff]  ;;  %v3395_v57 = vld [vmem:[%s7478_s1 + $0x2e8] sm:$0xff] }
 0x53a   :  { %v3537_v41 = vmul.f32 %v3409_v8, %v7220_v34  ;;  %v3799_v34 = vsel %vm7819_vm1, %v3536_v14, 0.0  ;;  %vm7825_vm10 = vmmov %vm7786_vm0 }
 0x53b   :  { %v7271_v18 = vpop.permute.xlu1 %3083  ;;  %v3837_v60 = vadd.f32 %v3836_v20, %v3835_v50  ;;  %v3757_v50 = vadd.f32 %v3756_v24, %v3755_v63  ;;  %v3798_v13 = vadd.f32 %v3797_v16, %v3796_v29  ;;  %v3394_v20 = vld [vmem:[%s7478_s1 + $0x2e0] sm:$0xff]  ;;  %vm7828_vm13 = vmmov %vm7786_vm0 }
 0x53c   :  { %v3505_v49 = vmul.f32 %v3377_v32, %v7271_v18  ;;  %v3520_v18 = vmul.f32 %v3392_v30, %v7266_v58  ;;  %v3429_v58 = vld [vmem:[%s7478_s1 + $0x3f8] sm:$0xff]  ;;  %v3801_v15 = vsel %vm7822_vm4, %v3537_v41, 0.0  ;;  %vm7830_vm1 = vmmov %vm7786_vm0 }
 0x53d   :  { %v3839_v46 = vadd.f32 %v3838_v47, %v3837_v60  ;;  %v3759_v7 = vadd.f32 %v3758_v22, %v3757_v50  ;;  %v3800_v40 = vadd.f32 %v3799_v34, %v3798_v13  ;;  %v3803_v14 = vsel %vm7830_vm1, %v3538_v19, 0.0  ;;  %v3397_v41 = vld [vmem:[%s7478_s1 + $0x2f8] sm:$0xff]  ;;  %vm7832_vm14 = vmmov %vm7786_vm0 }
 0x53e   :  { %v3727_v5 = vsel %vm7820_vm2, %v3505_v49, 0.0  ;;  %v3762_v38 = vsel %vm7823_vm5, %v3520_v18, 0.0  ;;  %vm7831_vm2 = vmmov %vm7786_vm0 }
 0x53f   :  { %v7295_v39 = vpop.permute.xlu1 %3150  ;;  %v3841_v55 = vadd.f32 %v3840_v44, %v3839_v46  ;;  %v3728_v1 = vadd.f32 %v3727_v5, %v7180_v33  ;;  %v3802_v29 = vadd.f32 %v3801_v15, %v3800_v40  ;;  %v3381_v33 = vld [vmem:[%s7478_s1 + $0x278] sm:$0xff]  ;;  %vm7833_vm4 = vmmov %vm7786_vm0 }
 0x540   :  { %v3521_v60 = vmul.f32 %v3393_v26, %v7295_v39  ;;  %v3844_v39 = vsel %vm7825_vm10, %v3556_v3, 0.0  ;;  %vm7834_vm5 = vmmov %vm7786_vm0 }
 0x541   :  { %v3843_v61 = vadd.f32 %v3842_v52, %v3841_v55  ;;  %v3412_v55 = vld [vmem:[%s7478_s1 + $0x370] sm:$0xff]  ;;  %v3804_v50 = vadd.f32 %v3803_v14, %v3802_v29  ;;  %vm7836_vm10 = vmmov %vm7786_vm0 }
 0x542   :  { %v3764_v27 = vsel %vm7826_vm11, %v3521_v60, 0.0  ;;  %vm7837_vm11 = vmmov %vm7786_vm0 }
 0x543   :  { %v7317_v12 = vpop.permute.xlu1 %3087  ;;  %v3845_v10 = vadd.f32 %v3844_v39, %v3843_v61 }
 0x544   :  { %v3506_v2 = vmul.f32 %v3378_v56, %v7317_v12  ;;  %v3301_v12 = vpop.permute.xlu0 %3300 }
 0x545   :  { %v3557_v17 = vmul.f32 %v3429_v58, %v3301_v12 }
 0x546   :  { %v3729_v47 = vsel %vm7824_vm8, %v3506_v2, 0.0  ;;  %v3540_v2 = vmul.f32 %v3412_v55, %v7340_v43  ;;  %vm7835_vm8 = vmmov %vm7786_vm0 }
 0x547   :  { %v7335_v35 = vpop.permute.xlu1 %3154  ;;  %v3730_v31 = vadd.f32 %v3729_v47, %v3728_v1  ;;  %v3846_v44 = vsel %vm7786_vm0, %v3557_v17, 0.0 }
 0x548   :  { %v3522_v28 = vmul.f32 %v3394_v20, %v7335_v35  ;;  %v3411_v35 = vld [vmem:[%s7478_s1 + $0x368] sm:$0xff]  ;;  %v3847_v16 = vadd.f32 %v3846_v44, %v3845_v10  ;;  %v3413_v20 = vld [vmem:[%s7478_s1 + $0x378] sm:$0xff]  ;;  %v3807_v5 = vsel %vm7836_vm10, %v3540_v2, 0.0  ;;  %s4320_s1 = smov [#allocation9]  }
 0x549   :  { %s3924_s0 = sshll.u32 %s4320_s1, 4  ;;  %s3925_s0 = int_to_ptr.vmem [resolvable:$true] %s3924_s0 }
 0x54a   :  { %v3766_v8 = vsel %vm7828_vm13, %v3522_v28, 0.0  ;;  %v3848_v34 = vrot.slane %v3847_v16, 4  ;;  %s4251_s29 = scalar_lea.vmem %s3925_s0, 128  ;;  %p4256_p1 = scmp.lt.s32.totalorder %s3925_s0, %s3925_s0 }
 0x54b   :  { %v3092_v37 = vpop.permute.xlu1 %3091  ;;  %p4252_p0 = scmp.ne.s32.totalorder %s3925_s0, %s4251_s29  ;;  %p4257_p2 = scmp.lt.s32.totalorder %s4251_s29, %s4251_s29 }
 0x54c   :  { %v3507_v45 = vmul.f32 %v3379_v53, %v3092_v37  ;;  %v3761_v37 = vadd.f32 %v3760_v9, %v3759_v7  ;;  %v3849_v60 = vadd.f32 %v3848_v34, %v3847_v16  ;;  %v3905_v16 = vld [vmem:[%s7481_s4] sm:$0xff] }
 0x54d   :  { %p4258_p3 = por %p4257_p2, %p4256_p1 }
 0x54e   :  { %v3731_v46 = vsel %vm7827_vm12, %v3507_v45, 0.0  ;;  %v3763_v32 = vadd.f32 %v3762_v38, %v3761_v37  ;;  %v3850_v28 = vrot.slane %v3849_v60, 2 }
 0x54f   :  { %v3159_v0 = vpop.permute.xlu1 %3158  ;;  %v3732_v30 = vadd.f32 %v3731_v46, %v3730_v31  ;;  %p4259_p4 = pnand %p4258_p3, %p4252_p0 }
 0x550   :  { %v3523_v63 = vmul.f32 %v3395_v57, %v3159_v0  ;;  %v3765_v36 = vadd.f32 %v3764_v27, %v3763_v32  ;;  %v3539_v0 = vmul.f32 %v3411_v35, %v7279_v11  ;;  %v3851_v27 = vadd.f32 %v3850_v28, %v3849_v60 }
 0x552   :  { %v3768_v22 = vsel %vm7831_vm2, %v3523_v63, 0.0  ;;  %v3767_v49 = vadd.f32 %v3766_v8, %v3765_v36  ;;  %v3805_v18 = vsel %vm7834_vm5, %v3539_v0, 0.0  ;;  %v3852_v31 = vrot.slane %v3851_v27, 1  ;;  %v3854_v8 = vld [vmem:[#allocation6] sm:$0xff] }
 0x553   :  { %v3096_v54 = vpop.permute.xlu1 %3095 }
 0x554   :  { %v3508_v23 = vmul.f32 %v3380_v25, %v3096_v54  ;;  %v3769_v11 = vadd.f32 %v3768_v22, %v3767_v49  ;;  %v3806_v25 = vadd.f32 %v3805_v18, %v3804_v50  ;;  %v3853_v14 = vadd.f32 %v3852_v31, %v3851_v27 }
 0x556   :  { %v3733_v42 = vsel %vm7829_vm15, %v3508_v23, 0.0  ;;  %v3808_v15 = vadd.f32 %v3807_v5, %v3806_v25 }
 0x557   :  { %v3163_v6 = vpop.permute.xlu1 %3162  ;;  %v3734_v62 = vadd.f32 %v3733_v42, %v3732_v30  ;;  %v3858_v42 = vpop.permute.xlu0 %3857 }
 0x558   :  { %v3524_v24 = vmul.f32 %v3396_v4, %v3163_v6  ;;  %v3860_v44 = vmul.f32 %v3858_v42, %v3854_v8 }
 0x55a   :  { %v3770_v13 = vsel %vm7832_vm14, %v3524_v24, 0.0 }
 0x55b   :  { %v3100_v56 = vpop.permute.xlu1 %3099  ;;  %v3771_v7 = vadd.f32 %v3770_v13, %v3769_v11 }
 0x55c   :  { %v3509_v48 = vmul.f32 %v3381_v33, %v3100_v56 }
 0x55e   :  { %v3735_v26 = vsel %vm7833_vm4, %v3509_v48, 0.0 }
 0x55f   :  { %v3736_v53 = vadd.f32 %v3735_v26, %v3734_v62  ;;  %v3167_v51 = vpop.permute.xlu1 %3166 }
 0x560   :  { %v3525_v52 = vmul.f32 %v3397_v41, %v3167_v51 }
 0x561   :  { %v3737_v3 = vrot.slane %v3736_v53, 4 }
 0x562   :  { %v3772_v54 = vsel %vm7835_vm8, %v3525_v52, 0.0 }
 0x563   :  { %v3738_v58 = vadd.f32 %v3737_v3, %v3736_v53  ;;  %v3773_v12 = vadd.f32 %v3772_v54, %v3771_v7  ;;  %v3234_v61 = vpop.permute.xlu1 %3233 }
 0x564   :  { %v3541_v45 = vmul.f32 %v3413_v20, %v3234_v61 }
 0x565   :  { %v3739_v9 = vrot.slane %v3738_v58, 2  ;;  %v3774_v43 = vrot.slane %v3773_v12, 4 }
 0x566   :  { %v3809_v19 = vsel %vm7837_vm11, %v3541_v45, 0.0 }
 0x567   :  { %v3740_v40 = vadd.f32 %v3739_v9, %v3738_v58  ;;  %v3775_v57 = vadd.f32 %v3774_v43, %v3773_v12  ;;  %v3810_v38 = vadd.f32 %v3809_v19, %v3808_v15  ;;  %v3898_v47 = vpop.permute.xlu1 %3897 }
 0x568   :  { %v3900_v23 = vsub.f32 %v6564_v21, %v3898_v47 }
 0x569   :  { %v3741_v39 = vrot.slane %v3740_v40, 1  ;;  %v3776_v17 = vrot.slane %v3775_v57, 2  ;;  %v3811_v37 = vrot.slane %v3810_v38, 4 }
 0x56a   :  { %v3901_v1 = vmul.f32 1.442695, %v3900_v23 }
 0x56b   :  { %v3742_v4 = vadd.f32 %v3741_v39, %v3740_v40  ;;  %v3777_v6 = vadd.f32 %v3776_v17, %v3775_v57  ;;  %v3812_v10 = vadd.f32 %v3811_v37, %v3810_v38  ;;  %v3889_v0 = vpop.permute.xlu1 %3888 }
 0x56c   :  { %4245 = vpow2.f32 %v3901_v1 }
 0x56d   :  { %v3872_v46 = vsel %vm2732_vm3, %v3742_v4, %v7155_v59  ;;  %v3778_v63 = vrot.slane %v3777_v6, 1  ;;  %v3813_v35 = vrot.slane %v3812_v10, 2  ;;  %vm7838_vm3 = vmmov %vm7786_vm0 }
 0x56f   :  { %v3779_v29 = vadd.f32 %v3778_v63, %v3777_v6  ;;  %v3814_v32 = vadd.f32 %v3813_v35, %v3812_v10 }
 0x571   :  { %v3873_v33 = vsel %vm2734_vm6, %v3779_v29, %v3872_v46  ;;  %v3815_v21 = vrot.slane %v3814_v32, 1 }
 0x573   :  { %v3816_v24 = vadd.f32 %v3815_v21, %v3814_v32 }
 0x575   :  { %v3874_v36 = vsel %vm2736_vm7, %v3816_v24, %v3873_v33 }
 0x576   :  { %v3875_v30 = vsel %vm2738_vm9, %v3853_v14, %v3874_v36 }
 0x577   :  { %v3877_v56 = vadd.f32 %v3875_v30, %v3860_v44 }
 0x579   :  { %v4246_v59 = vpop.eup %4245  ;;  %3878 = vst.msk [vmem:[#allocation6] sm:$0xff] %vm7838_vm3, %v3877_v56 }
 0x57a   :  { %v3903_v22 = vmul.f32 %v4246_v59, %v3889_v0 }
 0x57c   :  { %3904 = vst [vmem:[#allocation9] sm:$0xff] %v3903_v22  ;;  %v3906_v48 = vadd.f32 %v3905_v16, %v3903_v22 }
 0x57d   :  { %4262 = shalt.err (!%p4259_p4)
}
 0x57e   :  { %3927 = dma.vmem_to_hbm [thread:$0]  %s3925_s0, 128, %s7487_s10, [#allocation10]   ;;  %3907 = vst [vmem:[#allocation11] sm:$0xff] %v3906_v48 }
 0x57f   :  { %s4322_s12 = smov [#allocation7]   ;;  %s4271_s13 = scalar_lea.vmem %s3935_s3, 128 }
 0x580   :  { %s3914_s4 = sshll.u32 %s4322_s12, 4  ;;  %p4272_p5 = scmp.ne.s32.totalorder %s3935_s3, %s4271_s13  ;;  %s3915_s4 = int_to_ptr.vmem [resolvable:$true] %s3914_s4 }
 0x581   :  { %p4276_p6 = scmp.lt.s32.totalorder %s3935_s3, %s3935_s3  ;;  %p4277_p7 = scmp.lt.s32.totalorder %s4271_s13, %s4271_s13 }
 0x583   :  { %p4278_p8 = por %p4277_p7, %p4276_p6 }
 0x585   :  { %p4279_p9 = pnand %p4278_p8, %p4272_p5 }
 0x587   :  { %4282 = shalt.err (!%p4279_p9)
}
 0x588   :  { %3937 = dma.vmem_to_hbm [thread:$0]  %s3935_s3, 128, %s7488_s11, [#allocation10]   ;;  %v3885_v55 = vld [vmem:[#allocation6] sm:$0xff]  ;;  %vm7839_vm6 = vmmov %vm7786_vm0 }
 0x589   :  { %v3891_v49 = vmul.f32 %v3889_v0, %v3885_v55  ;;  %s4291_s10 = scalar_lea.vmem %s3915_s4, 128  ;;  %p4296_p11 = scmp.lt.s32.totalorder %s3915_s4, %s3915_s4 }
 0x58a   :  { %p4292_p10 = scmp.ne.s32.totalorder %s3915_s4, %s4291_s10  ;;  %p4297_p12 = scmp.lt.s32.totalorder %s4291_s10, %s4291_s10 }
 0x58b   :  { %3892 = vst.msk [vmem:[#allocation7] sm:$0xff] %vm7839_vm6, %v3891_v49 }
 0x58c   :  { %p4298_p13 = por %p4297_p12, %p4296_p11 }
 0x58e   :  { %p4299_p0 = pnand %p4298_p13, %p4292_p10 }
 0x590   :  { %4302 = shalt.err (!%p4299_p0)
}
 0x591   :  { %3917 = dma.vmem_to_hbm [thread:$0]  %s3915_s4, 128, %s7486_s9, [#allocation8]  }
 0x592   :  { %4311 = dma.done.wait [#allocation8], 128  }
 0x593   :  { %4312 = vsyncadd [#allocation8], 4294967168 }
 0x594   :  { %4313 = dma.done.wait [#allocation10], 256  }
 0x595   :  { %4314 = vsyncadd [#allocation10], 4294967040 }
 0x596   :  { %3947 = vsyncpa [#allocation8], 1 }
 0x597   :  { %3948 = vsyncpa [#allocation10], 1 }

</bundles_post_ra>
